<compile_context>
chip_gen: v6e
topology: v6e:2x2x1
jax: 0.10.0
libtpu: 0.0.40
codegen_flags: <defaults>
</compile_context>

<pallas_src>
import math
from functools import partial

import jax
import jax.numpy as jnp
from jax import lax
from jax.experimental import pallas as pl
from jax.experimental.pallas import tpu as pltpu

LANE = 128


def _rup(n, m=LANE):
    return ((n + m - 1) // m) * m


# ----------------------------------------------------------------------------
# Fused kernel: one grid step == one batch block (default: the whole batch).
# Weights, activations and LSTM state stay resident in VMEM.
# ----------------------------------------------------------------------------
def recognition_kernel(x_ref, h0_ref, c0_ref,
                       wconv_ref, bconv_ref, w1_ref, b1_ref, w2_ref, b2_ref,
                       wih_ref, whh_ref, blstm_ref, wout_ref, bout_ref,
                       logits_ref, hn_ref, cn_ref,
                       *xg_scs):
    # x_ref     : (Bb, T+K-1, F)   time-padded input, natural feature width F
    # h0/c0_ref : (Bb, Hp)
    # wconv_ref : (K, F, Fp) ffdt  per-tap conv weights; bconv: (1, Fp) f32
    # w1_ref    : (Fp, Hdp) ffdt, b1: (1, Hdp); w2: (Hdp, Hdp), b2: (1, Hdp)
    # wih_ref   : (Hdp, 4Hp) ffdt; whh_ref: (Hp, 4Hp) f32; blstm: (1, 4Hp) f32
    # wout_ref  : (Hp, Cp) ffdt; bout_ref: (1, Cp) f32
    # logits_ref: (T, Bb, Cp) time-major; hn/cn_ref: (Bb, Hp)
    # xg_scs    : Bb VMEM scratches, each (T, 4Hp) f32 (hoisted input-gate
    #             preactivations for one batch row)
    T, Bb, _ = logits_ref.shape
    Hp = hn_ref.shape[-1]
    K = x_ref.shape[1] - T + 1
    ff_dtype = wconv_ref.dtype          # bf16 (default) or f32 for exact ref

    # ---- hoisted feed-forward: conv + 2x dense + LSTM input projection ------
    # Static loop over the (small) in-kernel batch; each pass is an independent
    # chain of (T, .)-row 2-D matmuls, so they pipeline freely.  Rows are kept
    # 2-D per batch element on purpose: merging (Bb, T) into Bb*T rows would
    # require a sublane-regrouping reshape/relayout.
    for b in range(Bb):
        xb = x_ref[b]                                            # (T+K-1, F) f32
        # Conv1d(F->F, k=K, padding='same') as K accumulated shifted matmuls
        # (no (T, K*F) im2col intermediate).
        h = jnp.dot(xb[0:T, :].astype(ff_dtype), wconv_ref[0],
                    preferred_element_type=jnp.float32)
        for k in range(1, K):
            h = h + jnp.dot(xb[k:k + T, :].astype(ff_dtype), wconv_ref[k],
                            preferred_element_type=jnp.float32)
        h = jnp.maximum(h + bconv_ref[...], 0.0)                 # conv + ReLU
        h = jnp.maximum(jnp.dot(h.astype(ff_dtype), w1_ref[...],
                                preferred_element_type=jnp.float32)
                        + b1_ref[...], 0.0)                      # (T, Hdp)
        h = jnp.maximum(jnp.dot(h.astype(ff_dtype), w2_ref[...],
                                preferred_element_type=jnp.float32)
                        + b2_ref[...], 0.0)                      # (T, Hdp)
        # LSTM input projection hoisted out of the recurrence (one full-T
        # matmul per batch row instead of T tiny ones).
        xg_scs[b][...] = (jnp.dot(h.astype(ff_dtype), wih_ref[...],
                                  preferred_element_type=jnp.float32)
                          + blstm_ref[...])                      # (T, 4Hp)

    # ---- LSTM recurrence, batched over the whole in-kernel batch ------------
    # Carry is (Bb, Hp): ONE (Bb,Hp)x(Hp,4Hp) MXU push per step for all batch
    # rows.  Padded lanes of h/c stay exactly 0 (zero-padded W_hh rows/cols and
    # zero-initialised padded state), so padding never leaks into real lanes.
    # TODO(synk): hold W_hh in MXU weight registers across steps with
    #             pltpu.matmul_push_rhs / matmul_acc_lhs for lower step latency.
    row_ids = lax.broadcasted_iota(jnp.int32, (Bb, 1), 0)        # hoisted const

    def step(t, carry):
        h_t, c_t = carry                                         # (Bb, Hp) f32
        # Assemble this step's hoisted input preactivations for all batch rows
        # (pure VPU select/broadcast; independent of h_t, so it overlaps with
        # the previous step's compute under unrolling).
        xg_t = jnp.zeros((Bb, 4 * Hp), jnp.float32)
        for b in range(Bb):
            row_b = xg_scs[b][pl.ds(t, 1), :]                    # (1, 4Hp)
            xg_t = jnp.where(row_ids == b, row_b, xg_t)          # (Bb, 4Hp)

        gates = xg_t + jnp.dot(h_t, whh_ref[...],
                               preferred_element_type=jnp.float32)
        # sigmoid(x) == 0.5*(tanh(x/2)+1): one EUP push per gate instead of
        # exp + divide; the EUP chain is on the recurrence's critical path.
        # Gate slices start at lane multiples of Hp=128 -> tile aligned.
        i_g = 0.5 * (jnp.tanh(0.5 * gates[:, 0 * Hp:1 * Hp]) + 1.0)
        f_g = 0.5 * (jnp.tanh(0.5 * gates[:, 1 * Hp:2 * Hp]) + 1.0)
        g_g = jnp.tanh(gates[:, 2 * Hp:3 * Hp])
        o_g = 0.5 * (jnp.tanh(0.5 * gates[:, 3 * Hp:4 * Hp]) + 1.0)
        c_new = f_g * c_t + i_g * g_g
        h_new = o_g * jnp.tanh(c_new)

        # Output head (NoLinearityBlock ReLU + out_dense) per step: it is OFF
        # the recurrent h/c dependency chain, so the unrolled loop overlaps it
        # with the next step's MXU/EUP work; writing here lets logits be
        # emitted time-major (T, B, Cp) directly (no XLA transpose afterwards)
        # and removes a (T, Bb, Hp) scratch.
        h_relu = jnp.maximum(h_new, 0.0)
        logits_ref[t] = (jnp.dot(h_relu.astype(wout_ref.dtype), wout_ref[...],
                                 preferred_element_type=jnp.float32)
                         + bout_ref[...])                        # (Bb, Cp)
        return h_new, c_new

    unroll = True if T <= 64 else 8
    h_fin, c_fin = lax.fori_loop(0, T, step, (h0_ref[...], c0_ref[...]),
                                 unroll=unroll)
    hn_ref[...] = h_fin                                          # written once
    cn_ref[...] = c_fin


# ----------------------------------------------------------------------------
# Wrapper: lane-pads the weights (exact), keeps x at its natural feature width,
# calls the fused kernel, slices the padding back off.
# ----------------------------------------------------------------------------
def recognition_forward(x, hidden, params, *, b_block=None,
                        ff_dtype=jnp.bfloat16):
    """x: (B, T, F) float32 (channels-last).  hidden: (h0, c0) each (1, B, H).

    Returns (logits, (hn, cn)) with logits (T, B, C), matching the PyTorch
    module.  Set ff_dtype=jnp.float32 for bit-tight feed-forward numerics.
    """
    B, T, F = x.shape
    K = params["w_conv"].shape[0]
    Hd = params["w1"].shape[1]
    H = params["w_hh_t"].shape[0]
    C = params["w_out_t"].shape[1]
    h0, c0 = hidden

    Fp, Hdp, Hp, Cp = _rup(F), _rup(Hd), _rup(H), _rup(C)
    pad = (K - 1) // 2

    # In-kernel batch block.  Default: the whole batch in one invocation (best
    # on single-TensorCore v5e/v6e).  On v7x pass b_block=B//2 (must be a
    # multiple of 8) to give each TensorCore one batched recurrence.
    Bb = B if b_block is None else b_block
    assert B % Bb == 0 and (Bb == B or Bb % 8 == 0), \
        "b_block must divide B and be a multiple of 8 (or equal to B)"
    nb = B // Bb

    f32 = jnp.float32

    # Time padding only -- the feature axis keeps its natural width F so input
    # HBM DMA is not inflated by lane padding.
    x_p = jnp.pad(x, ((0, 0), (pad, pad), (0, 0)))               # (B, T+K-1, F)

    # Weights: feature/hidden dims zero-padded to 128 lanes (numerically exact,
    # sliced back below).  Feed-forward weights cast to ff_dtype (bf16 default,
    # f32 accumulation in-kernel); the recurrent W_hh stays f32.
    w_conv_p = jnp.pad(params["w_conv"],
                       ((0, 0), (0, 0), (0, Fp - F))).astype(ff_dtype)  # (K,F,Fp)
    b_conv_p = jnp.pad(params["b_conv"], ((0, 0), (0, Fp - F))).astype(f32)
    w1_p = jnp.pad(params["w1"], ((0, Fp - F), (0, Hdp - Hd))).astype(ff_dtype)
    b1_p = jnp.pad(params["b1"], ((0, 0), (0, Hdp - Hd))).astype(f32)
    w2_p = jnp.pad(params["w2"], ((0, Hdp - Hd), (0, Hdp - Hd))).astype(ff_dtype)
    b2_p = jnp.pad(params["b2"], ((0, 0), (0, Hdp - Hd))).astype(f32)

    def pad_gate_cols(w, rows_to):
        # (rows, 4H) -> (rows_to, 4*Hp): pad each of the 4 gate blocks
        # separately so in-kernel gate slices start at lane multiples of Hp.
        rows = w.shape[0]
        w4 = w.reshape(rows, 4, H)
        w4 = jnp.pad(w4, ((0, rows_to - rows), (0, 0), (0, Hp - H)))
        return w4.reshape(rows_to, 4 * Hp)

    w_ih_p = pad_gate_cols(params["w_ih_t"], Hdp).astype(ff_dtype)
    w_hh_p = pad_gate_cols(params["w_hh_t"], Hp).astype(f32)
    b_lstm_p = pad_gate_cols(params["b_lstm"], 1).astype(f32)
    w_out_p = jnp.pad(params["w_out_t"], ((0, Hp - H), (0, Cp - C))).astype(ff_dtype)
    b_out_p = jnp.pad(params["b_out"], ((0, 0), (0, Cp - C))).astype(f32)

    # Padded state lanes MUST be zero: zero pads here + zero-padded W_hh keep
    # padded hidden/cell lanes exactly 0 through the whole recurrence.
    h0_p = jnp.pad(h0[0], ((0, 0), (0, Hp - H)))                 # (B, Hp)
    c0_p = jnp.pad(c0[0], ((0, 0), (0, Hp - H)))

    logits_p, hn_p, cn_p = pl.pallas_call(
        recognition_kernel,
        out_shape=(
            jax.ShapeDtypeStruct((T, B, Cp), f32),               # time-major
            jax.ShapeDtypeStruct((B, Hp), f32),
            jax.ShapeDtypeStruct((B, Hp), f32),
        ),
        grid=(nb,),
        in_specs=[
            pl.BlockSpec((Bb, T + K - 1, F), lambda i: (i, 0, 0)),   # x
            pl.BlockSpec((Bb, Hp), lambda i: (i, 0)),                # h0
            pl.BlockSpec((Bb, Hp), lambda i: (i, 0)),                # c0
            pl.BlockSpec((K, F, Fp), lambda i: (0, 0, 0)),           # conv W
            pl.BlockSpec((1, Fp), lambda i: (0, 0)),                 # conv b
            pl.BlockSpec((Fp, Hdp), lambda i: (0, 0)),               # w1
            pl.BlockSpec((1, Hdp), lambda i: (0, 0)),                # b1
            pl.BlockSpec((Hdp, Hdp), lambda i: (0, 0)),              # w2
            pl.BlockSpec((1, Hdp), lambda i: (0, 0)),                # b2
            pl.BlockSpec((Hdp, 4 * Hp), lambda i: (0, 0)),           # W_ih^T
            pl.BlockSpec((Hp, 4 * Hp), lambda i: (0, 0)),            # W_hh^T
            pl.BlockSpec((1, 4 * Hp), lambda i: (0, 0)),             # b_ih+b_hh
            pl.BlockSpec((Hp, Cp), lambda i: (0, 0)),                # W_out^T
            pl.BlockSpec((1, Cp), lambda i: (0, 0)),                 # b_out
        ],
        out_specs=(
            pl.BlockSpec((T, Bb, Cp), lambda i: (0, i, 0)),
            pl.BlockSpec((Bb, Hp), lambda i: (i, 0)),
            pl.BlockSpec((Bb, Hp), lambda i: (i, 0)),
        ),
        scratch_shapes=[pltpu.VMEM((T, 4 * Hp), f32) for _ in range(Bb)],
        compiler_params=pltpu.CompilerParams(
            dimension_semantics=("parallel",),                   # v7x: 2 TCs
            # Explicit scoped-VMEM cap (usage here is ~2 MiB).
            # TODO(synk): for very long T, chunk the hoisted input projection
            # over time instead of keeping all T steps of xg resident.
            vmem_limit_bytes=64 * 1024 * 1024),
    )(x_p, h0_p, c0_p, w_conv_p, b_conv_p, w1_p, b1_p, w2_p, b2_p,
      w_ih_p, w_hh_p, b_lstm_p, w_out_p, b_out_p)

    logits = logits_p[:, :, :C]                                  # (T, B, C)
    hn = hn_p[:, :H][jnp.newaxis]                                # (1, B, H)
    cn = cn_p[:, :H][jnp.newaxis]
    return logits, (hn, cn)


# ----------------------------------------------------------------------------
# Deterministic parameter construction (PyTorch-style uniform fan-in init).
# ----------------------------------------------------------------------------
def init_params(key, num_features, hidden_dense, hidden_lstm, out_classes, k=3):
    ks = jax.random.split(key, 12)
    F, Hd, H, C = num_features, hidden_dense, hidden_lstm, out_classes

    def u(key, shape, bound):
        return jax.random.uniform(key, shape, jnp.float32, -bound, bound)

    bc = 1.0 / math.sqrt(F * k)
    b1 = 1.0 / math.sqrt(F)
    b2 = 1.0 / math.sqrt(Hd)
    bl = 1.0 / math.sqrt(H)
    bo = 1.0 / math.sqrt(H)

    return {
        # conv weight stored as (K, C_in, C_out) = PyTorch (C_out, C_in, K) permuted
        "w_conv": u(ks[0], (k, F, F), bc),
        "b_conv": u(ks[1], (1, F), bc),
        "w1": u(ks[2], (F, Hd), b1),          # Linear weights stored (in, out)
        "b1": u(ks[3], (1, Hd), b1),
        "w2": u(ks[4], (Hd, Hd), b2),
        "b2": u(ks[5], (1, Hd), b2),
        "w_ih_t": u(ks[6], (Hd, 4 * H), bl),  # W_ih^T
        "w_hh_t": u(ks[7], (H, 4 * H), bl),   # W_hh^T
        "b_lstm": u(ks[8], (1, 4 * H), bl) + u(ks[9], (1, 4 * H), bl),  # b_ih+b_hh
        "w_out_t": u(ks[10], (H, C), bo),
        "b_out": u(ks[11], (1, C), bo),
    }


if __name__ == "__main__":
    B, T = 2, 8
    NUM_FEATURES = 16
    HIDDEN_DENSE = 32
    HIDDEN_LSTM = 64
    OUT_CLASSES = 35

    key = jax.random.PRNGKey(0)
    k_x, k_p = jax.random.split(key)

    x = jax.random.normal(k_x, (B, T, NUM_FEATURES), jnp.float32)   # (B, T, F)
    hidden = (jnp.zeros((1, B, HIDDEN_LSTM), jnp.float32),
              jnp.zeros((1, B, HIDDEN_LSTM), jnp.float32))
    params = init_params(k_p, NUM_FEATURES, HIDDEN_DENSE, HIDDEN_LSTM, OUT_CLASSES)

    fwd = jax.jit(partial(recognition_forward, params=params))
    logits, (hn, cn) = fwd(x, hidden)
    jax.block_until_ready((logits, hn, cn))

    assert logits.shape == (T, B, OUT_CLASSES)
    assert hn.shape == (1, B, HIDDEN_LSTM) and cn.shape == (1, B, HIDDEN_LSTM)
    assert bool(jnp.all(jnp.isfinite(logits)))
    print("KERNEL_OK")
</pallas_src>

<mosaic_0001>
module attributes {stable_mosaic.version = 11 : i64} {
  func.func @recognition_kernel(%arg0: i32, %arg1: memref<2x10x16xf32, #tpu.memory_space<vmem>>, %arg2: memref<2x128xf32, #tpu.memory_space<vmem>>, %arg3: memref<2x128xf32, #tpu.memory_space<vmem>>, %arg4: memref<3x16x128xbf16, #tpu.memory_space<vmem>>, %arg5: memref<1x128xf32, #tpu.memory_space<vmem>>, %arg6: memref<128x128xbf16, #tpu.memory_space<vmem>>, %arg7: memref<1x128xf32, #tpu.memory_space<vmem>>, %arg8: memref<128x128xbf16, #tpu.memory_space<vmem>>, %arg9: memref<1x128xf32, #tpu.memory_space<vmem>>, %arg10: memref<128x512xbf16, #tpu.memory_space<vmem>>, %arg11: memref<128x512xf32, #tpu.memory_space<vmem>>, %arg12: memref<1x512xf32, #tpu.memory_space<vmem>>, %arg13: memref<128x128xbf16, #tpu.memory_space<vmem>>, %arg14: memref<1x128xf32, #tpu.memory_space<vmem>>, %arg15: memref<8x2x128xf32, #tpu.memory_space<vmem>>, %arg16: memref<2x128xf32, #tpu.memory_space<vmem>>, %arg17: memref<2x128xf32, #tpu.memory_space<vmem>>, %arg18: memref<8x512xf32, #tpu.memory_space<vmem>>, %arg19: memref<8x512xf32, #tpu.memory_space<vmem>>) attributes {dimension_semantics = [#tpu.dimension_semantics<parallel>], iteration_bounds = array<i64: 1>, scalar_prefetch = 0 : i64, scratch_operands = 2 : i64, tpu.core_type = #tpu.core_type<tc>, window_params = [{transform_indices = @transform_0, window_bounds = array<i64: 2, 10, 16>}, {transform_indices = @transform_1, window_bounds = array<i64: 2, 128>}, {transform_indices = @transform_2, window_bounds = array<i64: 2, 128>}, {pipeline_mode = #tpu.pipeline_mode<synchronous>, transform_indices = @transform_3, window_bounds = array<i64: 3, 16, 128>}, {pipeline_mode = #tpu.pipeline_mode<synchronous>, transform_indices = @transform_4, window_bounds = array<i64: 1, 128>}, {pipeline_mode = #tpu.pipeline_mode<synchronous>, transform_indices = @transform_5, window_bounds = array<i64: 128, 128>}, {pipeline_mode = #tpu.pipeline_mode<synchronous>, transform_indices = @transform_6, window_bounds = array<i64: 1, 128>}, {pipeline_mode = #tpu.pipeline_mode<synchronous>, transform_indices = @transform_7, window_bounds = array<i64: 128, 128>}, {pipeline_mode = #tpu.pipeline_mode<synchronous>, transform_indices = @transform_8, window_bounds = array<i64: 1, 128>}, {pipeline_mode = #tpu.pipeline_mode<synchronous>, transform_indices = @transform_9, window_bounds = array<i64: 128, 512>}, {pipeline_mode = #tpu.pipeline_mode<synchronous>, transform_indices = @transform_10, window_bounds = array<i64: 128, 512>}, {pipeline_mode = #tpu.pipeline_mode<synchronous>, transform_indices = @transform_11, window_bounds = array<i64: 1, 512>}, {pipeline_mode = #tpu.pipeline_mode<synchronous>, transform_indices = @transform_12, window_bounds = array<i64: 128, 128>}, {pipeline_mode = #tpu.pipeline_mode<synchronous>, transform_indices = @transform_13, window_bounds = array<i64: 1, 128>}, {transform_indices = @transform_14, window_bounds = array<i64: 8, 2, 128>}, {transform_indices = @transform_15, window_bounds = array<i64: 2, 128>}, {transform_indices = @transform_16, window_bounds = array<i64: 2, 128>}]} {
    %c0 = arith.constant 0 : index
    %c0_0 = arith.constant 0 : index
    %c0_1 = arith.constant 0 : index
    %0 = vector.load %arg1[%c0, %c0_0, %c0_1] : memref<2x10x16xf32, #tpu.memory_space<vmem>>, vector<1x10x16xf32>
    %1 = vector.shape_cast %0 : vector<1x10x16xf32> to vector<10x16xf32>
    %2 = vector.extract_strided_slice %1 {offsets = [0, 0], sizes = [8, 16], strides = [1, 1]} : vector<10x16xf32> to vector<8x16xf32>
    %3 = arith.truncf %2 : vector<8x16xf32> to vector<8x16xbf16>
    %c0_2 = arith.constant 0 : index
    %c0_3 = arith.constant 0 : index
    %c0_4 = arith.constant 0 : index
    %4 = vector.load %arg4[%c0_2, %c0_3, %c0_4] : memref<3x16x128xbf16, #tpu.memory_space<vmem>>, vector<1x16x128xbf16>
    %5 = vector.shape_cast %4 : vector<1x16x128xbf16> to vector<16x128xbf16>
    %cst = arith.constant dense<0.000000e+00> : vector<8x128xf32>
    %6 = tpu.matmul %3, %5, %cst {dimension_numbers = #tpu.dot_dimension_numbers<[1], [0], [0], [1], [0, 0, 1, 1], [], []>} : vector<8x16xbf16>, vector<16x128xbf16>, vector<8x128xf32> -> vector<8x128xf32>
    %7 = vector.extract_strided_slice %1 {offsets = [1, 0], sizes = [8, 16], strides = [1, 1]} : vector<10x16xf32> to vector<8x16xf32>
    %8 = arith.truncf %7 : vector<8x16xf32> to vector<8x16xbf16>
    %c1 = arith.constant 1 : index
    %c0_5 = arith.constant 0 : index
    %c0_6 = arith.constant 0 : index
    %9 = vector.load %arg4[%c1, %c0_5, %c0_6] : memref<3x16x128xbf16, #tpu.memory_space<vmem>>, vector<1x16x128xbf16>
    %10 = vector.shape_cast %9 : vector<1x16x128xbf16> to vector<16x128xbf16>
    %cst_7 = arith.constant dense<0.000000e+00> : vector<8x128xf32>
    %11 = tpu.matmul %8, %10, %cst_7 {dimension_numbers = #tpu.dot_dimension_numbers<[1], [0], [0], [1], [0, 0, 1, 1], [], []>} : vector<8x16xbf16>, vector<16x128xbf16>, vector<8x128xf32> -> vector<8x128xf32>
    %12 = arith.addf %6, %11 : vector<8x128xf32>
    %13 = vector.extract_strided_slice %1 {offsets = [2, 0], sizes = [8, 16], strides = [1, 1]} : vector<10x16xf32> to vector<8x16xf32>
    %14 = arith.truncf %13 : vector<8x16xf32> to vector<8x16xbf16>
    %c2 = arith.constant 2 : index
    %c0_8 = arith.constant 0 : index
    %c0_9 = arith.constant 0 : index
    %15 = vector.load %arg4[%c2, %c0_8, %c0_9] : memref<3x16x128xbf16, #tpu.memory_space<vmem>>, vector<1x16x128xbf16>
    %16 = vector.shape_cast %15 : vector<1x16x128xbf16> to vector<16x128xbf16>
    %cst_10 = arith.constant dense<0.000000e+00> : vector<8x128xf32>
    %17 = tpu.matmul %14, %16, %cst_10 {dimension_numbers = #tpu.dot_dimension_numbers<[1], [0], [0], [1], [0, 0, 1, 1], [], []>} : vector<8x16xbf16>, vector<16x128xbf16>, vector<8x128xf32> -> vector<8x128xf32>
    %18 = arith.addf %12, %17 : vector<8x128xf32>
    %c0_11 = arith.constant 0 : index
    %c0_12 = arith.constant 0 : index
    %19 = vector.load %arg5[%c0_11, %c0_12] : memref<1x128xf32, #tpu.memory_space<vmem>>, vector<1x128xf32>
    %20 = vector.broadcast %19 : vector<1x128xf32> to vector<8x128xf32>
    %21 = arith.addf %18, %20 : vector<8x128xf32>
    %cst_13 = arith.constant 0.000000e+00 : f32
    %22 = vector.broadcast %cst_13 : f32 to vector<8x128xf32>
    %23 = arith.maximumf %21, %22 : vector<8x128xf32>
    %24 = arith.truncf %23 : vector<8x128xf32> to vector<8x128xbf16>
    %c0_14 = arith.constant 0 : index
    %c0_15 = arith.constant 0 : index
    %25 = vector.load %arg6[%c0_14, %c0_15] : memref<128x128xbf16, #tpu.memory_space<vmem>>, vector<128x128xbf16>
    %cst_16 = arith.constant dense<0.000000e+00> : vector<8x128xf32>
    %26 = tpu.matmul %24, %25, %cst_16 {dimension_numbers = #tpu.dot_dimension_numbers<[1], [0], [0], [1], [0, 0, 1, 1], [], []>} : vector<8x128xbf16>, vector<128x128xbf16>, vector<8x128xf32> -> vector<8x128xf32>
    %c0_17 = arith.constant 0 : index
    %c0_18 = arith.constant 0 : index
    %27 = vector.load %arg7[%c0_17, %c0_18] : memref<1x128xf32, #tpu.memory_space<vmem>>, vector<1x128xf32>
    %28 = vector.broadcast %27 : vector<1x128xf32> to vector<8x128xf32>
    %29 = arith.addf %26, %28 : vector<8x128xf32>
    %cst_19 = arith.constant 0.000000e+00 : f32
    %30 = vector.broadcast %cst_19 : f32 to vector<8x128xf32>
    %31 = arith.maximumf %29, %30 : vector<8x128xf32>
    %32 = arith.truncf %31 : vector<8x128xf32> to vector<8x128xbf16>
    %c0_20 = arith.constant 0 : index
    %c0_21 = arith.constant 0 : index
    %33 = vector.load %arg8[%c0_20, %c0_21] : memref<128x128xbf16, #tpu.memory_space<vmem>>, vector<128x128xbf16>
    %cst_22 = arith.constant dense<0.000000e+00> : vector<8x128xf32>
    %34 = tpu.matmul %32, %33, %cst_22 {dimension_numbers = #tpu.dot_dimension_numbers<[1], [0], [0], [1], [0, 0, 1, 1], [], []>} : vector<8x128xbf16>, vector<128x128xbf16>, vector<8x128xf32> -> vector<8x128xf32>
    %c0_23 = arith.constant 0 : index
    %c0_24 = arith.constant 0 : index
    %35 = vector.load %arg9[%c0_23, %c0_24] : memref<1x128xf32, #tpu.memory_space<vmem>>, vector<1x128xf32>
    %36 = vector.broadcast %35 : vector<1x128xf32> to vector<8x128xf32>
    %37 = arith.addf %34, %36 : vector<8x128xf32>
    %cst_25 = arith.constant 0.000000e+00 : f32
    %38 = vector.broadcast %cst_25 : f32 to vector<8x128xf32>
    %39 = arith.maximumf %37, %38 : vector<8x128xf32>
    %40 = arith.truncf %39 : vector<8x128xf32> to vector<8x128xbf16>
    %c0_26 = arith.constant 0 : index
    %c0_27 = arith.constant 0 : index
    %41 = vector.load %arg10[%c0_26, %c0_27] : memref<128x512xbf16, #tpu.memory_space<vmem>>, vector<128x512xbf16>
    %cst_28 = arith.constant dense<0.000000e+00> : vector<8x512xf32>
    %42 = tpu.matmul %40, %41, %cst_28 {dimension_numbers = #tpu.dot_dimension_numbers<[1], [0], [0], [1], [0, 0, 1, 1], [], []>} : vector<8x128xbf16>, vector<128x512xbf16>, vector<8x512xf32> -> vector<8x512xf32>
    %c0_29 = arith.constant 0 : index
    %c0_30 = arith.constant 0 : index
    %43 = vector.load %arg12[%c0_29, %c0_30] : memref<1x512xf32, #tpu.memory_space<vmem>>, vector<1x512xf32>
    %44 = vector.broadcast %43 : vector<1x512xf32> to vector<8x512xf32>
    %45 = arith.addf %42, %44 : vector<8x512xf32>
    %c0_31 = arith.constant 0 : index
    %c0_32 = arith.constant 0 : index
    %46 = vector.load %arg18[%c0_31, %c0_32] : memref<8x512xf32, #tpu.memory_space<vmem>>, vector<8x512xf32>
    tpu.vector_store %arg18[%c0_31, %c0_32], %45 {strides = array<i32>} : memref<8x512xf32, #tpu.memory_space<vmem>>, vector<8x512xf32>,
    %c1_33 = arith.constant 1 : index
    %c0_34 = arith.constant 0 : index
    %c0_35 = arith.constant 0 : index
    %47 = vector.load %arg1[%c1_33, %c0_34, %c0_35] : memref<2x10x16xf32, #tpu.memory_space<vmem>>, vector<1x10x16xf32>
    %48 = vector.shape_cast %47 : vector<1x10x16xf32> to vector<10x16xf32>
    %49 = vector.extract_strided_slice %48 {offsets = [0, 0], sizes = [8, 16], strides = [1, 1]} : vector<10x16xf32> to vector<8x16xf32>
    %50 = arith.truncf %49 : vector<8x16xf32> to vector<8x16xbf16>
    %c0_36 = arith.constant 0 : index
    %c0_37 = arith.constant 0 : index
    %c0_38 = arith.constant 0 : index
    %51 = vector.load %arg4[%c0_36, %c0_37, %c0_38] : memref<3x16x128xbf16, #tpu.memory_space<vmem>>, vector<1x16x128xbf16>
    %52 = vector.shape_cast %51 : vector<1x16x128xbf16> to vector<16x128xbf16>
    %cst_39 = arith.constant dense<0.000000e+00> : vector<8x128xf32>
    %53 = tpu.matmul %50, %52, %cst_39 {dimension_numbers = #tpu.dot_dimension_numbers<[1], [0], [0], [1], [0, 0, 1, 1], [], []>} : vector<8x16xbf16>, vector<16x128xbf16>, vector<8x128xf32> -> vector<8x128xf32>
    %54 = vector.extract_strided_slice %48 {offsets = [1, 0], sizes = [8, 16], strides = [1, 1]} : vector<10x16xf32> to vector<8x16xf32>
    %55 = arith.truncf %54 : vector<8x16xf32> to vector<8x16xbf16>
    %c1_40 = arith.constant 1 : index
    %c0_41 = arith.constant 0 : index
    %c0_42 = arith.constant 0 : index
    %56 = vector.load %arg4[%c1_40, %c0_41, %c0_42] : memref<3x16x128xbf16, #tpu.memory_space<vmem>>, vector<1x16x128xbf16>
    %57 = vector.shape_cast %56 : vector<1x16x128xbf16> to vector<16x128xbf16>
    %cst_43 = arith.constant dense<0.000000e+00> : vector<8x128xf32>
    %58 = tpu.matmul %55, %57, %cst_43 {dimension_numbers = #tpu.dot_dimension_numbers<[1], [0], [0], [1], [0, 0, 1, 1], [], []>} : vector<8x16xbf16>, vector<16x128xbf16>, vector<8x128xf32> -> vector<8x128xf32>
    %59 = arith.addf %53, %58 : vector<8x128xf32>
    %60 = vector.extract_strided_slice %48 {offsets = [2, 0], sizes = [8, 16], strides = [1, 1]} : vector<10x16xf32> to vector<8x16xf32>
    %61 = arith.truncf %60 : vector<8x16xf32> to vector<8x16xbf16>
    %c2_44 = arith.constant 2 : index
    %c0_45 = arith.constant 0 : index
    %c0_46 = arith.constant 0 : index
    %62 = vector.load %arg4[%c2_44, %c0_45, %c0_46] : memref<3x16x128xbf16, #tpu.memory_space<vmem>>, vector<1x16x128xbf16>
    %63 = vector.shape_cast %62 : vector<1x16x128xbf16> to vector<16x128xbf16>
    %cst_47 = arith.constant dense<0.000000e+00> : vector<8x128xf32>
    %64 = tpu.matmul %61, %63, %cst_47 {dimension_numbers = #tpu.dot_dimension_numbers<[1], [0], [0], [1], [0, 0, 1, 1], [], []>} : vector<8x16xbf16>, vector<16x128xbf16>, vector<8x128xf32> -> vector<8x128xf32>
    %65 = arith.addf %59, %64 : vector<8x128xf32>
    %c0_48 = arith.constant 0 : index
    %c0_49 = arith.constant 0 : index
    %66 = vector.load %arg5[%c0_48, %c0_49] : memref<1x128xf32, #tpu.memory_space<vmem>>, vector<1x128xf32>
    %67 = vector.broadcast %66 : vector<1x128xf32> to vector<8x128xf32>
    %68 = arith.addf %65, %67 : vector<8x128xf32>
    %cst_50 = arith.constant 0.000000e+00 : f32
    %69 = vector.broadcast %cst_50 : f32 to vector<8x128xf32>
    %70 = arith.maximumf %68, %69 : vector<8x128xf32>
    %71 = arith.truncf %70 : vector<8x128xf32> to vector<8x128xbf16>
    %c0_51 = arith.constant 0 : index
    %c0_52 = arith.constant 0 : index
    %72 = vector.load %arg6[%c0_51, %c0_52] : memref<128x128xbf16, #tpu.memory_space<vmem>>, vector<128x128xbf16>
    %cst_53 = arith.constant dense<0.000000e+00> : vector<8x128xf32>
    %73 = tpu.matmul %71, %72, %cst_53 {dimension_numbers = #tpu.dot_dimension_numbers<[1], [0], [0], [1], [0, 0, 1, 1], [], []>} : vector<8x128xbf16>, vector<128x128xbf16>, vector<8x128xf32> -> vector<8x128xf32>
    %c0_54 = arith.constant 0 : index
    %c0_55 = arith.constant 0 : index
    %74 = vector.load %arg7[%c0_54, %c0_55] : memref<1x128xf32, #tpu.memory_space<vmem>>, vector<1x128xf32>
    %75 = vector.broadcast %74 : vector<1x128xf32> to vector<8x128xf32>
    %76 = arith.addf %73, %75 : vector<8x128xf32>
    %cst_56 = arith.constant 0.000000e+00 : f32
    %77 = vector.broadcast %cst_56 : f32 to vector<8x128xf32>
    %78 = arith.maximumf %76, %77 : vector<8x128xf32>
    %79 = arith.truncf %78 : vector<8x128xf32> to vector<8x128xbf16>
    %c0_57 = arith.constant 0 : index
    %c0_58 = arith.constant 0 : index
    %80 = vector.load %arg8[%c0_57, %c0_58] : memref<128x128xbf16, #tpu.memory_space<vmem>>, vector<128x128xbf16>
    %cst_59 = arith.constant dense<0.000000e+00> : vector<8x128xf32>
    %81 = tpu.matmul %79, %80, %cst_59 {dimension_numbers = #tpu.dot_dimension_numbers<[1], [0], [0], [1], [0, 0, 1, 1], [], []>} : vector<8x128xbf16>, vector<128x128xbf16>, vector<8x128xf32> -> vector<8x128xf32>
    %c0_60 = arith.constant 0 : index
    %c0_61 = arith.constant 0 : index
    %82 = vector.load %arg9[%c0_60, %c0_61] : memref<1x128xf32, #tpu.memory_space<vmem>>, vector<1x128xf32>
    %83 = vector.broadcast %82 : vector<1x128xf32> to vector<8x128xf32>
    %84 = arith.addf %81, %83 : vector<8x128xf32>
    %cst_62 = arith.constant 0.000000e+00 : f32
    %85 = vector.broadcast %cst_62 : f32 to vector<8x128xf32>
    %86 = arith.maximumf %84, %85 : vector<8x128xf32>
    %87 = arith.truncf %86 : vector<8x128xf32> to vector<8x128xbf16>
    %c0_63 = arith.constant 0 : index
    %c0_64 = arith.constant 0 : index
    %88 = vector.load %arg10[%c0_63, %c0_64] : memref<128x512xbf16, #tpu.memory_space<vmem>>, vector<128x512xbf16>
    %cst_65 = arith.constant dense<0.000000e+00> : vector<8x512xf32>
    %89 = tpu.matmul %87, %88, %cst_65 {dimension_numbers = #tpu.dot_dimension_numbers<[1], [0], [0], [1], [0, 0, 1, 1], [], []>} : vector<8x128xbf16>, vector<128x512xbf16>, vector<8x512xf32> -> vector<8x512xf32>
    %c0_66 = arith.constant 0 : index
    %c0_67 = arith.constant 0 : index
    %90 = vector.load %arg12[%c0_66, %c0_67] : memref<1x512xf32, #tpu.memory_space<vmem>>, vector<1x512xf32>
    %91 = vector.broadcast %90 : vector<1x512xf32> to vector<8x512xf32>
    %92 = arith.addf %89, %91 : vector<8x512xf32>
    %c0_68 = arith.constant 0 : index
    %c0_69 = arith.constant 0 : index
    %93 = vector.load %arg19[%c0_68, %c0_69] : memref<8x512xf32, #tpu.memory_space<vmem>>, vector<8x512xf32>
    tpu.vector_store %arg19[%c0_68, %c0_69], %92 {strides = array<i32>} : memref<8x512xf32, #tpu.memory_space<vmem>>, vector<8x512xf32>,
    %94 = tpu.iota {dimensions = array<i32: 0>} : vector<2x1xi32>
    %c0_70 = arith.constant 0 : index
    %c0_71 = arith.constant 0 : index
    %95 = vector.load %arg2[%c0_70, %c0_71] : memref<2x128xf32, #tpu.memory_space<vmem>>, vector<2x128xf32>
    %c0_72 = arith.constant 0 : index
    %c0_73 = arith.constant 0 : index
    %96 = vector.load %arg3[%c0_72, %c0_73] : memref<2x128xf32, #tpu.memory_space<vmem>>, vector<2x128xf32>
    %c0_i32 = arith.constant 0 : i32
    %cst_74 = arith.constant 0.000000e+00 : f32
    %97 = vector.broadcast %cst_74 : f32 to vector<2x512xf32>
    %98 = arith.index_cast %c0_i32 : i32 to index
    %c0_75 = arith.constant 0 : index
    %99 = vector.load %arg18[%98, %c0_75] : memref<8x512xf32, #tpu.memory_space<vmem>>, vector<1x512xf32>
    %c0_i32_76 = arith.constant 0 : i32
    %100 = vector.broadcast %c0_i32_76 : i32 to vector<2x1xi32>
    %101 = arith.cmpi eq, %94, %100 : vector<2x1xi32>
    %102 = vector.shape_cast %101 : vector<2x1xi1> to vector<2x1xi1>
    %103 = vector.broadcast %102 : vector<2x1xi1> to vector<2x512xi1>
    %104 = vector.shape_cast %99 : vector<1x512xf32> to vector<1x512xf32>
    %105 = vector.broadcast %104 : vector<1x512xf32> to vector<2x512xf32>
    %106 = arith.select %103, %105, %97 : vector<2x512xi1>, vector<2x512xf32>
    %107 = arith.index_cast %c0_i32 : i32 to index
    %c0_77 = arith.constant 0 : index
    %108 = vector.load %arg19[%107, %c0_77] : memref<8x512xf32, #tpu.memory_space<vmem>>, vector<1x512xf32>
    %c1_i32 = arith.constant 1 : i32
    %109 = vector.broadcast %c1_i32 : i32 to vector<2x1xi32>
    %110 = arith.cmpi eq, %94, %109 : vector<2x1xi32>
    %111 = vector.shape_cast %110 : vector<2x1xi1> to vector<2x1xi1>
    %112 = vector.broadcast %111 : vector<2x1xi1> to vector<2x512xi1>
    %113 = vector.shape_cast %108 : vector<1x512xf32> to vector<1x512xf32>
    %114 = vector.broadcast %113 : vector<1x512xf32> to vector<2x512xf32>
    %115 = arith.select %112, %114, %106 : vector<2x512xi1>, vector<2x512xf32>
    %c0_78 = arith.constant 0 : index
    %c0_79 = arith.constant 0 : index
    %116 = vector.load %arg11[%c0_78, %c0_79] : memref<128x512xf32, #tpu.memory_space<vmem>>, vector<128x512xf32>
    %cst_80 = arith.constant dense<0.000000e+00> : vector<2x512xf32>
    %117 = tpu.matmul %95, %116, %cst_80 {dimension_numbers = #tpu.dot_dimension_numbers<[1], [0], [0], [1], [0, 0, 1, 1], [], []>} : vector<2x128xf32>, vector<128x512xf32>, vector<2x512xf32> -> vector<2x512xf32>
    %118 = arith.addf %115, %117 : vector<2x512xf32>
    %119 = vector.extract_strided_slice %118 {offsets = [0, 0], sizes = [2, 128], strides = [1, 1]} : vector<2x512xf32> to vector<2x128xf32>
    %cst_81 = arith.constant 5.000000e-01 : f32
    %120 = vector.broadcast %cst_81 : f32 to vector<2x128xf32>
    %121 = arith.mulf %120, %119 : vector<2x128xf32>
    %122 = math.tanh %121 : vector<2x128xf32>
    %cst_82 = arith.constant 1.000000e+00 : f32
    %123 = vector.broadcast %cst_82 : f32 to vector<2x128xf32>
    %124 = arith.addf %122, %123 : vector<2x128xf32>
    %cst_83 = arith.constant 5.000000e-01 : f32
    %125 = vector.broadcast %cst_83 : f32 to vector<2x128xf32>
    %126 = arith.mulf %125, %124 : vector<2x128xf32>
    %127 = vector.extract_strided_slice %118 {offsets = [0, 128], sizes = [2, 128], strides = [1, 1]} : vector<2x512xf32> to vector<2x128xf32>
    %cst_84 = arith.constant 5.000000e-01 : f32
    %128 = vector.broadcast %cst_84 : f32 to vector<2x128xf32>
    %129 = arith.mulf %128, %127 : vector<2x128xf32>
    %130 = math.tanh %129 : vector<2x128xf32>
    %cst_85 = arith.constant 1.000000e+00 : f32
    %131 = vector.broadcast %cst_85 : f32 to vector<2x128xf32>
    %132 = arith.addf %130, %131 : vector<2x128xf32>
    %cst_86 = arith.constant 5.000000e-01 : f32
    %133 = vector.broadcast %cst_86 : f32 to vector<2x128xf32>
    %134 = arith.mulf %133, %132 : vector<2x128xf32>
    %135 = vector.extract_strided_slice %118 {offsets = [0, 256], sizes = [2, 128], strides = [1, 1]} : vector<2x512xf32> to vector<2x128xf32>
    %136 = math.tanh %135 : vector<2x128xf32>
    %137 = vector.extract_strided_slice %118 {offsets = [0, 384], sizes = [2, 128], strides = [1, 1]} : vector<2x512xf32> to vector<2x128xf32>
    %cst_87 = arith.constant 5.000000e-01 : f32
    %138 = vector.broadcast %cst_87 : f32 to vector<2x128xf32>
    %139 = arith.mulf %138, %137 : vector<2x128xf32>
    %140 = math.tanh %139 : vector<2x128xf32>
    %cst_88 = arith.constant 1.000000e+00 : f32
    %141 = vector.broadcast %cst_88 : f32 to vector<2x128xf32>
    %142 = arith.addf %140, %141 : vector<2x128xf32>
    %cst_89 = arith.constant 5.000000e-01 : f32
    %143 = vector.broadcast %cst_89 : f32 to vector<2x128xf32>
    %144 = arith.mulf %143, %142 : vector<2x128xf32>
    %145 = arith.mulf %134, %96 : vector<2x128xf32>
    %146 = arith.mulf %126, %136 : vector<2x128xf32>
    %147 = arith.addf %145, %146 : vector<2x128xf32>
    %148 = math.tanh %147 : vector<2x128xf32>
    %149 = arith.mulf %144, %148 : vector<2x128xf32>
    %cst_90 = arith.constant 0.000000e+00 : f32
    %150 = vector.broadcast %cst_90 : f32 to vector<2x128xf32>
    %151 = arith.maximumf %149, %150 : vector<2x128xf32>
    %152 = arith.truncf %151 : vector<2x128xf32> to vector<2x128xbf16>
    %c0_91 = arith.constant 0 : index
    %c0_92 = arith.constant 0 : index
    %153 = vector.load %arg13[%c0_91, %c0_92] : memref<128x128xbf16, #tpu.memory_space<vmem>>, vector<128x128xbf16>
    %cst_93 = arith.constant dense<0.000000e+00> : vector<2x128xf32>
    %154 = tpu.matmul %152, %153, %cst_93 {dimension_numbers = #tpu.dot_dimension_numbers<[1], [0], [0], [1], [0, 0, 1, 1], [], []>} : vector<2x128xbf16>, vector<128x128xbf16>, vector<2x128xf32> -> vector<2x128xf32>
    %c0_94 = arith.constant 0 : index
    %c0_95 = arith.constant 0 : index
    %155 = vector.load %arg14[%c0_94, %c0_95] : memref<1x128xf32, #tpu.memory_space<vmem>>, vector<1x128xf32>
    %156 = vector.broadcast %155 : vector<1x128xf32> to vector<2x128xf32>
    %157 = arith.addf %154, %156 : vector<2x128xf32>
    %158 = arith.index_cast %c0_i32 : i32 to index
    %c0_96 = arith.constant 0 : index
    %c0_97 = arith.constant 0 : index
    %159 = vector.load %arg15[%158, %c0_96, %c0_97] : memref<8x2x128xf32, #tpu.memory_space<vmem>>, vector<1x2x128xf32>
    %160 = vector.shape_cast %159 : vector<1x2x128xf32> to vector<2x128xf32>
    %161 = vector.shape_cast %157 : vector<2x128xf32> to vector<1x2x128xf32>
    tpu.vector_store %arg15[%158, %c0_96, %c0_97], %161 {strides = array<i32>} : memref<8x2x128xf32, #tpu.memory_space<vmem>>, vector<1x2x128xf32>,
    %c1_i32_98 = arith.constant 1 : i32
    %cst_99 = arith.constant 0.000000e+00 : f32
    %162 = vector.broadcast %cst_99 : f32 to vector<2x512xf32>
    %163 = arith.index_cast %c1_i32_98 : i32 to index
    %c0_100 = arith.constant 0 : index
    %164 = vector.load %arg18[%163, %c0_100] : memref<8x512xf32, #tpu.memory_space<vmem>>, vector<1x512xf32>
    %c0_i32_101 = arith.constant 0 : i32
    %165 = vector.broadcast %c0_i32_101 : i32 to vector<2x1xi32>
    %166 = arith.cmpi eq, %94, %165 : vector<2x1xi32>
    %167 = vector.shape_cast %166 : vector<2x1xi1> to vector<2x1xi1>
    %168 = vector.broadcast %167 : vector<2x1xi1> to vector<2x512xi1>
    %169 = vector.shape_cast %164 : vector<1x512xf32> to vector<1x512xf32>
    %170 = vector.broadcast %169 : vector<1x512xf32> to vector<2x512xf32>
    %171 = arith.select %168, %170, %162 : vector<2x512xi1>, vector<2x512xf32>
    %172 = arith.index_cast %c1_i32_98 : i32 to index
    %c0_102 = arith.constant 0 : index
    %173 = vector.load %arg19[%172, %c0_102] : memref<8x512xf32, #tpu.memory_space<vmem>>, vector<1x512xf32>
    %c1_i32_103 = arith.constant 1 : i32
    %174 = vector.broadcast %c1_i32_103 : i32 to vector<2x1xi32>
    %175 = arith.cmpi eq, %94, %174 : vector<2x1xi32>
    %176 = vector.shape_cast %175 : vector<2x1xi1> to vector<2x1xi1>
    %177 = vector.broadcast %176 : vector<2x1xi1> to vector<2x512xi1>
    %178 = vector.shape_cast %173 : vector<1x512xf32> to vector<1x512xf32>
    %179 = vector.broadcast %178 : vector<1x512xf32> to vector<2x512xf32>
    %180 = arith.select %177, %179, %171 : vector<2x512xi1>, vector<2x512xf32>
    %c0_104 = arith.constant 0 : index
    %c0_105 = arith.constant 0 : index
    %181 = vector.load %arg11[%c0_104, %c0_105] : memref<128x512xf32, #tpu.memory_space<vmem>>, vector<128x512xf32>
    %cst_106 = arith.constant dense<0.000000e+00> : vector<2x512xf32>
    %182 = tpu.matmul %149, %181, %cst_106 {dimension_numbers = #tpu.dot_dimension_numbers<[1], [0], [0], [1], [0, 0, 1, 1], [], []>} : vector<2x128xf32>, vector<128x512xf32>, vector<2x512xf32> -> vector<2x512xf32>
    %183 = arith.addf %180, %182 : vector<2x512xf32>
    %184 = vector.extract_strided_slice %183 {offsets = [0, 0], sizes = [2, 128], strides = [1, 1]} : vector<2x512xf32> to vector<2x128xf32>
    %cst_107 = arith.constant 5.000000e-01 : f32
    %185 = vector.broadcast %cst_107 : f32 to vector<2x128xf32>
    %186 = arith.mulf %185, %184 : vector<2x128xf32>
    %187 = math.tanh %186 : vector<2x128xf32>
    %cst_108 = arith.constant 1.000000e+00 : f32
    %188 = vector.broadcast %cst_108 : f32 to vector<2x128xf32>
    %189 = arith.addf %187, %188 : vector<2x128xf32>
    %cst_109 = arith.constant 5.000000e-01 : f32
    %190 = vector.broadcast %cst_109 : f32 to vector<2x128xf32>
    %191 = arith.mulf %190, %189 : vector<2x128xf32>
    %192 = vector.extract_strided_slice %183 {offsets = [0, 128], sizes = [2, 128], strides = [1, 1]} : vector<2x512xf32> to vector<2x128xf32>
    %cst_110 = arith.constant 5.000000e-01 : f32
    %193 = vector.broadcast %cst_110 : f32 to vector<2x128xf32>
    %194 = arith.mulf %193, %192 : vector<2x128xf32>
    %195 = math.tanh %194 : vector<2x128xf32>
    %cst_111 = arith.constant 1.000000e+00 : f32
    %196 = vector.broadcast %cst_111 : f32 to vector<2x128xf32>
    %197 = arith.addf %195, %196 : vector<2x128xf32>
    %cst_112 = arith.constant 5.000000e-01 : f32
    %198 = vector.broadcast %cst_112 : f32 to vector<2x128xf32>
    %199 = arith.mulf %198, %197 : vector<2x128xf32>
    %200 = vector.extract_strided_slice %183 {offsets = [0, 256], sizes = [2, 128], strides = [1, 1]} : vector<2x512xf32> to vector<2x128xf32>
    %201 = math.tanh %200 : vector<2x128xf32>
    %202 = vector.extract_strided_slice %183 {offsets = [0, 384], sizes = [2, 128], strides = [1, 1]} : vector<2x512xf32> to vector<2x128xf32>
    %cst_113 = arith.constant 5.000000e-01 : f32
    %203 = vector.broadcast %cst_113 : f32 to vector<2x128xf32>
    %204 = arith.mulf %203, %202 : vector<2x128xf32>
    %205 = math.tanh %204 : vector<2x128xf32>
    %cst_114 = arith.constant 1.000000e+00 : f32
    %206 = vector.broadcast %cst_114 : f32 to vector<2x128xf32>
    %207 = arith.addf %205, %206 : vector<2x128xf32>
    %cst_115 = arith.constant 5.000000e-01 : f32
    %208 = vector.broadcast %cst_115 : f32 to vector<2x128xf32>
    %209 = arith.mulf %208, %207 : vector<2x128xf32>
    %210 = arith.mulf %199, %147 : vector<2x128xf32>
    %211 = arith.mulf %191, %201 : vector<2x128xf32>
    %212 = arith.addf %210, %211 : vector<2x128xf32>
    %213 = math.tanh %212 : vector<2x128xf32>
    %214 = arith.mulf %209, %213 : vector<2x128xf32>
    %cst_116 = arith.constant 0.000000e+00 : f32
    %215 = vector.broadcast %cst_116 : f32 to vector<2x128xf32>
    %216 = arith.maximumf %214, %215 : vector<2x128xf32>
    %217 = arith.truncf %216 : vector<2x128xf32> to vector<2x128xbf16>
    %c0_117 = arith.constant 0 : index
    %c0_118 = arith.constant 0 : index
    %218 = vector.load %arg13[%c0_117, %c0_118] : memref<128x128xbf16, #tpu.memory_space<vmem>>, vector<128x128xbf16>
    %cst_119 = arith.constant dense<0.000000e+00> : vector<2x128xf32>
    %219 = tpu.matmul %217, %218, %cst_119 {dimension_numbers = #tpu.dot_dimension_numbers<[1], [0], [0], [1], [0, 0, 1, 1], [], []>} : vector<2x128xbf16>, vector<128x128xbf16>, vector<2x128xf32> -> vector<2x128xf32>
    %c0_120 = arith.constant 0 : index
    %c0_121 = arith.constant 0 : index
    %220 = vector.load %arg14[%c0_120, %c0_121] : memref<1x128xf32, #tpu.memory_space<vmem>>, vector<1x128xf32>
    %221 = vector.broadcast %220 : vector<1x128xf32> to vector<2x128xf32>
    %222 = arith.addf %219, %221 : vector<2x128xf32>
    %223 = arith.index_cast %c1_i32_98 : i32 to index
    %c0_122 = arith.constant 0 : index
    %c0_123 = arith.constant 0 : index
    %224 = vector.load %arg15[%223, %c0_122, %c0_123] : memref<8x2x128xf32, #tpu.memory_space<vmem>>, vector<1x2x128xf32>
    %225 = vector.shape_cast %224 : vector<1x2x128xf32> to vector<2x128xf32>
    %226 = vector.shape_cast %222 : vector<2x128xf32> to vector<1x2x128xf32>
    tpu.vector_store %arg15[%223, %c0_122, %c0_123], %226 {strides = array<i32>} : memref<8x2x128xf32, #tpu.memory_space<vmem>>, vector<1x2x128xf32>,
    %c2_i32 = arith.constant 2 : i32
    %cst_124 = arith.constant 0.000000e+00 : f32
    %227 = vector.broadcast %cst_124 : f32 to vector<2x512xf32>
    %228 = arith.index_cast %c2_i32 : i32 to index
    %c0_125 = arith.constant 0 : index
    %229 = vector.load %arg18[%228, %c0_125] : memref<8x512xf32, #tpu.memory_space<vmem>>, vector<1x512xf32>
    %c0_i32_126 = arith.constant 0 : i32
    %230 = vector.broadcast %c0_i32_126 : i32 to vector<2x1xi32>
    %231 = arith.cmpi eq, %94, %230 : vector<2x1xi32>
    %232 = vector.shape_cast %231 : vector<2x1xi1> to vector<2x1xi1>
    %233 = vector.broadcast %232 : vector<2x1xi1> to vector<2x512xi1>
    %234 = vector.shape_cast %229 : vector<1x512xf32> to vector<1x512xf32>
    %235 = vector.broadcast %234 : vector<1x512xf32> to vector<2x512xf32>
    %236 = arith.select %233, %235, %227 : vector<2x512xi1>, vector<2x512xf32>
    %237 = arith.index_cast %c2_i32 : i32 to index
    %c0_127 = arith.constant 0 : index
    %238 = vector.load %arg19[%237, %c0_127] : memref<8x512xf32, #tpu.memory_space<vmem>>, vector<1x512xf32>
    %c1_i32_128 = arith.constant 1 : i32
    %239 = vector.broadcast %c1_i32_128 : i32 to vector<2x1xi32>
    %240 = arith.cmpi eq, %94, %239 : vector<2x1xi32>
    %241 = vector.shape_cast %240 : vector<2x1xi1> to vector<2x1xi1>
    %242 = vector.broadcast %241 : vector<2x1xi1> to vector<2x512xi1>
    %243 = vector.shape_cast %238 : vector<1x512xf32> to vector<1x512xf32>
    %244 = vector.broadcast %243 : vector<1x512xf32> to vector<2x512xf32>
    %245 = arith.select %242, %244, %236 : vector<2x512xi1>, vector<2x512xf32>
    %c0_129 = arith.constant 0 : index
    %c0_130 = arith.constant 0 : index
    %246 = vector.load %arg11[%c0_129, %c0_130] : memref<128x512xf32, #tpu.memory_space<vmem>>, vector<128x512xf32>
    %cst_131 = arith.constant dense<0.000000e+00> : vector<2x512xf32>
    %247 = tpu.matmul %214, %246, %cst_131 {dimension_numbers = #tpu.dot_dimension_numbers<[1], [0], [0], [1], [0, 0, 1, 1], [], []>} : vector<2x128xf32>, vector<128x512xf32>, vector<2x512xf32> -> vector<2x512xf32>
    %248 = arith.addf %245, %247 : vector<2x512xf32>
    %249 = vector.extract_strided_slice %248 {offsets = [0, 0], sizes = [2, 128], strides = [1, 1]} : vector<2x512xf32> to vector<2x128xf32>
    %cst_132 = arith.constant 5.000000e-01 : f32
    %250 = vector.broadcast %cst_132 : f32 to vector<2x128xf32>
    %251 = arith.mulf %250, %249 : vector<2x128xf32>
    %252 = math.tanh %251 : vector<2x128xf32>
    %cst_133 = arith.constant 1.000000e+00 : f32
    %253 = vector.broadcast %cst_133 : f32 to vector<2x128xf32>
    %254 = arith.addf %252, %253 : vector<2x128xf32>
    %cst_134 = arith.constant 5.000000e-01 : f32
    %255 = vector.broadcast %cst_134 : f32 to vector<2x128xf32>
    %256 = arith.mulf %255, %254 : vector<2x128xf32>
    %257 = vector.extract_strided_slice %248 {offsets = [0, 128], sizes = [2, 128], strides = [1, 1]} : vector<2x512xf32> to vector<2x128xf32>
    %cst_135 = arith.constant 5.000000e-01 : f32
    %258 = vector.broadcast %cst_135 : f32 to vector<2x128xf32>
    %259 = arith.mulf %258, %257 : vector<2x128xf32>
    %260 = math.tanh %259 : vector<2x128xf32>
    %cst_136 = arith.constant 1.000000e+00 : f32
    %261 = vector.broadcast %cst_136 : f32 to vector<2x128xf32>
    %262 = arith.addf %260, %261 : vector<2x128xf32>
    %cst_137 = arith.constant 5.000000e-01 : f32
    %263 = vector.broadcast %cst_137 : f32 to vector<2x128xf32>
    %264 = arith.mulf %263, %262 : vector<2x128xf32>
    %265 = vector.extract_strided_slice %248 {offsets = [0, 256], sizes = [2, 128], strides = [1, 1]} : vector<2x512xf32> to vector<2x128xf32>
    %266 = math.tanh %265 : vector<2x128xf32>
    %267 = vector.extract_strided_slice %248 {offsets = [0, 384], sizes = [2, 128], strides = [1, 1]} : vector<2x512xf32> to vector<2x128xf32>
    %cst_138 = arith.constant 5.000000e-01 : f32
    %268 = vector.broadcast %cst_138 : f32 to vector<2x128xf32>
    %269 = arith.mulf %268, %267 : vector<2x128xf32>
    %270 = math.tanh %269 : vector<2x128xf32>
    %cst_139 = arith.constant 1.000000e+00 : f32
    %271 = vector.broadcast %cst_139 : f32 to vector<2x128xf32>
    %272 = arith.addf %270, %271 : vector<2x128xf32>
    %cst_140 = arith.constant 5.000000e-01 : f32
    %273 = vector.broadcast %cst_140 : f32 to vector<2x128xf32>
    %274 = arith.mulf %273, %272 : vector<2x128xf32>
    %275 = arith.mulf %264, %212 : vector<2x128xf32>
    %276 = arith.mulf %256, %266 : vector<2x128xf32>
    %277 = arith.addf %275, %276 : vector<2x128xf32>
    %278 = math.tanh %277 : vector<2x128xf32>
    %279 = arith.mulf %274, %278 : vector<2x128xf32>
    %cst_141 = arith.constant 0.000000e+00 : f32
    %280 = vector.broadcast %cst_141 : f32 to vector<2x128xf32>
    %281 = arith.maximumf %279, %280 : vector<2x128xf32>
    %282 = arith.truncf %281 : vector<2x128xf32> to vector<2x128xbf16>
    %c0_142 = arith.constant 0 : index
    %c0_143 = arith.constant 0 : index
    %283 = vector.load %arg13[%c0_142, %c0_143] : memref<128x128xbf16, #tpu.memory_space<vmem>>, vector<128x128xbf16>
    %cst_144 = arith.constant dense<0.000000e+00> : vector<2x128xf32>
    %284 = tpu.matmul %282, %283, %cst_144 {dimension_numbers = #tpu.dot_dimension_numbers<[1], [0], [0], [1], [0, 0, 1, 1], [], []>} : vector<2x128xbf16>, vector<128x128xbf16>, vector<2x128xf32> -> vector<2x128xf32>
    %c0_145 = arith.constant 0 : index
    %c0_146 = arith.constant 0 : index
    %285 = vector.load %arg14[%c0_145, %c0_146] : memref<1x128xf32, #tpu.memory_space<vmem>>, vector<1x128xf32>
    %286 = vector.broadcast %285 : vector<1x128xf32> to vector<2x128xf32>
    %287 = arith.addf %284, %286 : vector<2x128xf32>
    %288 = arith.index_cast %c2_i32 : i32 to index
    %c0_147 = arith.constant 0 : index
    %c0_148 = arith.constant 0 : index
    %289 = vector.load %arg15[%288, %c0_147, %c0_148] : memref<8x2x128xf32, #tpu.memory_space<vmem>>, vector<1x2x128xf32>
    %290 = vector.shape_cast %289 : vector<1x2x128xf32> to vector<2x128xf32>
    %291 = vector.shape_cast %287 : vector<2x128xf32> to vector<1x2x128xf32>
    tpu.vector_store %arg15[%288, %c0_147, %c0_148], %291 {strides = array<i32>} : memref<8x2x128xf32, #tpu.memory_space<vmem>>, vector<1x2x128xf32>,
    %c3_i32 = arith.constant 3 : i32
    %cst_149 = arith.constant 0.000000e+00 : f32
    %292 = vector.broadcast %cst_149 : f32 to vector<2x512xf32>
    %293 = arith.index_cast %c3_i32 : i32 to index
    %c0_150 = arith.constant 0 : index
    %294 = vector.load %arg18[%293, %c0_150] : memref<8x512xf32, #tpu.memory_space<vmem>>, vector<1x512xf32>
    %c0_i32_151 = arith.constant 0 : i32
    %295 = vector.broadcast %c0_i32_151 : i32 to vector<2x1xi32>
    %296 = arith.cmpi eq, %94, %295 : vector<2x1xi32>
    %297 = vector.shape_cast %296 : vector<2x1xi1> to vector<2x1xi1>
    %298 = vector.broadcast %297 : vector<2x1xi1> to vector<2x512xi1>
    %299 = vector.shape_cast %294 : vector<1x512xf32> to vector<1x512xf32>
    %300 = vector.broadcast %299 : vector<1x512xf32> to vector<2x512xf32>
    %301 = arith.select %298, %300, %292 : vector<2x512xi1>, vector<2x512xf32>
    %302 = arith.index_cast %c3_i32 : i32 to index
    %c0_152 = arith.constant 0 : index
    %303 = vector.load %arg19[%302, %c0_152] : memref<8x512xf32, #tpu.memory_space<vmem>>, vector<1x512xf32>
    %c1_i32_153 = arith.constant 1 : i32
    %304 = vector.broadcast %c1_i32_153 : i32 to vector<2x1xi32>
    %305 = arith.cmpi eq, %94, %304 : vector<2x1xi32>
    %306 = vector.shape_cast %305 : vector<2x1xi1> to vector<2x1xi1>
    %307 = vector.broadcast %306 : vector<2x1xi1> to vector<2x512xi1>
    %308 = vector.shape_cast %303 : vector<1x512xf32> to vector<1x512xf32>
    %309 = vector.broadcast %308 : vector<1x512xf32> to vector<2x512xf32>
    %310 = arith.select %307, %309, %301 : vector<2x512xi1>, vector<2x512xf32>
    %c0_154 = arith.constant 0 : index
    %c0_155 = arith.constant 0 : index
    %311 = vector.load %arg11[%c0_154, %c0_155] : memref<128x512xf32, #tpu.memory_space<vmem>>, vector<128x512xf32>
    %cst_156 = arith.constant dense<0.000000e+00> : vector<2x512xf32>
    %312 = tpu.matmul %279, %311, %cst_156 {dimension_numbers = #tpu.dot_dimension_numbers<[1], [0], [0], [1], [0, 0, 1, 1], [], []>} : vector<2x128xf32>, vector<128x512xf32>, vector<2x512xf32> -> vector<2x512xf32>
    %313 = arith.addf %310, %312 : vector<2x512xf32>
    %314 = vector.extract_strided_slice %313 {offsets = [0, 0], sizes = [2, 128], strides = [1, 1]} : vector<2x512xf32> to vector<2x128xf32>
    %cst_157 = arith.constant 5.000000e-01 : f32
    %315 = vector.broadcast %cst_157 : f32 to vector<2x128xf32>
    %316 = arith.mulf %315, %314 : vector<2x128xf32>
    %317 = math.tanh %316 : vector<2x128xf32>
    %cst_158 = arith.constant 1.000000e+00 : f32
    %318 = vector.broadcast %cst_158 : f32 to vector<2x128xf32>
    %319 = arith.addf %317, %318 : vector<2x128xf32>
    %cst_159 = arith.constant 5.000000e-01 : f32
    %320 = vector.broadcast %cst_159 : f32 to vector<2x128xf32>
    %321 = arith.mulf %320, %319 : vector<2x128xf32>
    %322 = vector.extract_strided_slice %313 {offsets = [0, 128], sizes = [2, 128], strides = [1, 1]} : vector<2x512xf32> to vector<2x128xf32>
    %cst_160 = arith.constant 5.000000e-01 : f32
    %323 = vector.broadcast %cst_160 : f32 to vector<2x128xf32>
    %324 = arith.mulf %323, %322 : vector<2x128xf32>
    %325 = math.tanh %324 : vector<2x128xf32>
    %cst_161 = arith.constant 1.000000e+00 : f32
    %326 = vector.broadcast %cst_161 : f32 to vector<2x128xf32>
    %327 = arith.addf %325, %326 : vector<2x128xf32>
    %cst_162 = arith.constant 5.000000e-01 : f32
    %328 = vector.broadcast %cst_162 : f32 to vector<2x128xf32>
    %329 = arith.mulf %328, %327 : vector<2x128xf32>
    %330 = vector.extract_strided_slice %313 {offsets = [0, 256], sizes = [2, 128], strides = [1, 1]} : vector<2x512xf32> to vector<2x128xf32>
    %331 = math.tanh %330 : vector<2x128xf32>
    %332 = vector.extract_strided_slice %313 {offsets = [0, 384], sizes = [2, 128], strides = [1, 1]} : vector<2x512xf32> to vector<2x128xf32>
    %cst_163 = arith.constant 5.000000e-01 : f32
    %333 = vector.broadcast %cst_163 : f32 to vector<2x128xf32>
    %334 = arith.mulf %333, %332 : vector<2x128xf32>
    %335 = math.tanh %334 : vector<2x128xf32>
    %cst_164 = arith.constant 1.000000e+00 : f32
    %336 = vector.broadcast %cst_164 : f32 to vector<2x128xf32>
    %337 = arith.addf %335, %336 : vector<2x128xf32>
    %cst_165 = arith.constant 5.000000e-01 : f32
    %338 = vector.broadcast %cst_165 : f32 to vector<2x128xf32>
    %339 = arith.mulf %338, %337 : vector<2x128xf32>
    %340 = arith.mulf %329, %277 : vector<2x128xf32>
    %341 = arith.mulf %321, %331 : vector<2x128xf32>
    %342 = arith.addf %340, %341 : vector<2x128xf32>
    %343 = math.tanh %342 : vector<2x128xf32>
    %344 = arith.mulf %339, %343 : vector<2x128xf32>
    %cst_166 = arith.constant 0.000000e+00 : f32
    %345 = vector.broadcast %cst_166 : f32 to vector<2x128xf32>
    %346 = arith.maximumf %344, %345 : vector<2x128xf32>
    %347 = arith.truncf %346 : vector<2x128xf32> to vector<2x128xbf16>
    %c0_167 = arith.constant 0 : index
    %c0_168 = arith.constant 0 : index
    %348 = vector.load %arg13[%c0_167, %c0_168] : memref<128x128xbf16, #tpu.memory_space<vmem>>, vector<128x128xbf16>
    %cst_169 = arith.constant dense<0.000000e+00> : vector<2x128xf32>
    %349 = tpu.matmul %347, %348, %cst_169 {dimension_numbers = #tpu.dot_dimension_numbers<[1], [0], [0], [1], [0, 0, 1, 1], [], []>} : vector<2x128xbf16>, vector<128x128xbf16>, vector<2x128xf32> -> vector<2x128xf32>
    %c0_170 = arith.constant 0 : index
    %c0_171 = arith.constant 0 : index
    %350 = vector.load %arg14[%c0_170, %c0_171] : memref<1x128xf32, #tpu.memory_space<vmem>>, vector<1x128xf32>
    %351 = vector.broadcast %350 : vector<1x128xf32> to vector<2x128xf32>
    %352 = arith.addf %349, %351 : vector<2x128xf32>
    %353 = arith.index_cast %c3_i32 : i32 to index
    %c0_172 = arith.constant 0 : index
    %c0_173 = arith.constant 0 : index
    %354 = vector.load %arg15[%353, %c0_172, %c0_173] : memref<8x2x128xf32, #tpu.memory_space<vmem>>, vector<1x2x128xf32>
    %355 = vector.shape_cast %354 : vector<1x2x128xf32> to vector<2x128xf32>
    %356 = vector.shape_cast %352 : vector<2x128xf32> to vector<1x2x128xf32>
    tpu.vector_store %arg15[%353, %c0_172, %c0_173], %356 {strides = array<i32>} : memref<8x2x128xf32, #tpu.memory_space<vmem>>, vector<1x2x128xf32>,
    %c4_i32 = arith.constant 4 : i32
    %cst_174 = arith.constant 0.000000e+00 : f32
    %357 = vector.broadcast %cst_174 : f32 to vector<2x512xf32>
    %358 = arith.index_cast %c4_i32 : i32 to index
    %c0_175 = arith.constant 0 : index
    %359 = vector.load %arg18[%358, %c0_175] : memref<8x512xf32, #tpu.memory_space<vmem>>, vector<1x512xf32>
    %c0_i32_176 = arith.constant 0 : i32
    %360 = vector.broadcast %c0_i32_176 : i32 to vector<2x1xi32>
    %361 = arith.cmpi eq, %94, %360 : vector<2x1xi32>
    %362 = vector.shape_cast %361 : vector<2x1xi1> to vector<2x1xi1>
    %363 = vector.broadcast %362 : vector<2x1xi1> to vector<2x512xi1>
    %364 = vector.shape_cast %359 : vector<1x512xf32> to vector<1x512xf32>
    %365 = vector.broadcast %364 : vector<1x512xf32> to vector<2x512xf32>
    %366 = arith.select %363, %365, %357 : vector<2x512xi1>, vector<2x512xf32>
    %367 = arith.index_cast %c4_i32 : i32 to index
    %c0_177 = arith.constant 0 : index
    %368 = vector.load %arg19[%367, %c0_177] : memref<8x512xf32, #tpu.memory_space<vmem>>, vector<1x512xf32>
    %c1_i32_178 = arith.constant 1 : i32
    %369 = vector.broadcast %c1_i32_178 : i32 to vector<2x1xi32>
    %370 = arith.cmpi eq, %94, %369 : vector<2x1xi32>
    %371 = vector.shape_cast %370 : vector<2x1xi1> to vector<2x1xi1>
    %372 = vector.broadcast %371 : vector<2x1xi1> to vector<2x512xi1>
    %373 = vector.shape_cast %368 : vector<1x512xf32> to vector<1x512xf32>
    %374 = vector.broadcast %373 : vector<1x512xf32> to vector<2x512xf32>
    %375 = arith.select %372, %374, %366 : vector<2x512xi1>, vector<2x512xf32>
    %c0_179 = arith.constant 0 : index
    %c0_180 = arith.constant 0 : index
    %376 = vector.load %arg11[%c0_179, %c0_180] : memref<128x512xf32, #tpu.memory_space<vmem>>, vector<128x512xf32>
    %cst_181 = arith.constant dense<0.000000e+00> : vector<2x512xf32>
    %377 = tpu.matmul %344, %376, %cst_181 {dimension_numbers = #tpu.dot_dimension_numbers<[1], [0], [0], [1], [0, 0, 1, 1], [], []>} : vector<2x128xf32>, vector<128x512xf32>, vector<2x512xf32> -> vector<2x512xf32>
    %378 = arith.addf %375, %377 : vector<2x512xf32>
    %379 = vector.extract_strided_slice %378 {offsets = [0, 0], sizes = [2, 128], strides = [1, 1]} : vector<2x512xf32> to vector<2x128xf32>
    %cst_182 = arith.constant 5.000000e-01 : f32
    %380 = vector.broadcast %cst_182 : f32 to vector<2x128xf32>
    %381 = arith.mulf %380, %379 : vector<2x128xf32>
    %382 = math.tanh %381 : vector<2x128xf32>
    %cst_183 = arith.constant 1.000000e+00 : f32
    %383 = vector.broadcast %cst_183 : f32 to vector<2x128xf32>
    %384 = arith.addf %382, %383 : vector<2x128xf32>
    %cst_184 = arith.constant 5.000000e-01 : f32
    %385 = vector.broadcast %cst_184 : f32 to vector<2x128xf32>
    %386 = arith.mulf %385, %384 : vector<2x128xf32>
    %387 = vector.extract_strided_slice %378 {offsets = [0, 128], sizes = [2, 128], strides = [1, 1]} : vector<2x512xf32> to vector<2x128xf32>
    %cst_185 = arith.constant 5.000000e-01 : f32
    %388 = vector.broadcast %cst_185 : f32 to vector<2x128xf32>
    %389 = arith.mulf %388, %387 : vector<2x128xf32>
    %390 = math.tanh %389 : vector<2x128xf32>
    %cst_186 = arith.constant 1.000000e+00 : f32
    %391 = vector.broadcast %cst_186 : f32 to vector<2x128xf32>
    %392 = arith.addf %390, %391 : vector<2x128xf32>
    %cst_187 = arith.constant 5.000000e-01 : f32
    %393 = vector.broadcast %cst_187 : f32 to vector<2x128xf32>
    %394 = arith.mulf %393, %392 : vector<2x128xf32>
    %395 = vector.extract_strided_slice %378 {offsets = [0, 256], sizes = [2, 128], strides = [1, 1]} : vector<2x512xf32> to vector<2x128xf32>
    %396 = math.tanh %395 : vector<2x128xf32>
    %397 = vector.extract_strided_slice %378 {offsets = [0, 384], sizes = [2, 128], strides = [1, 1]} : vector<2x512xf32> to vector<2x128xf32>
    %cst_188 = arith.constant 5.000000e-01 : f32
    %398 = vector.broadcast %cst_188 : f32 to vector<2x128xf32>
    %399 = arith.mulf %398, %397 : vector<2x128xf32>
    %400 = math.tanh %399 : vector<2x128xf32>
    %cst_189 = arith.constant 1.000000e+00 : f32
    %401 = vector.broadcast %cst_189 : f32 to vector<2x128xf32>
    %402 = arith.addf %400, %401 : vector<2x128xf32>
    %cst_190 = arith.constant 5.000000e-01 : f32
    %403 = vector.broadcast %cst_190 : f32 to vector<2x128xf32>
    %404 = arith.mulf %403, %402 : vector<2x128xf32>
    %405 = arith.mulf %394, %342 : vector<2x128xf32>
    %406 = arith.mulf %386, %396 : vector<2x128xf32>
    %407 = arith.addf %405, %406 : vector<2x128xf32>
    %408 = math.tanh %407 : vector<2x128xf32>
    %409 = arith.mulf %404, %408 : vector<2x128xf32>
    %cst_191 = arith.constant 0.000000e+00 : f32
    %410 = vector.broadcast %cst_191 : f32 to vector<2x128xf32>
    %411 = arith.maximumf %409, %410 : vector<2x128xf32>
    %412 = arith.truncf %411 : vector<2x128xf32> to vector<2x128xbf16>
    %c0_192 = arith.constant 0 : index
    %c0_193 = arith.constant 0 : index
    %413 = vector.load %arg13[%c0_192, %c0_193] : memref<128x128xbf16, #tpu.memory_space<vmem>>, vector<128x128xbf16>
    %cst_194 = arith.constant dense<0.000000e+00> : vector<2x128xf32>
    %414 = tpu.matmul %412, %413, %cst_194 {dimension_numbers = #tpu.dot_dimension_numbers<[1], [0], [0], [1], [0, 0, 1, 1], [], []>} : vector<2x128xbf16>, vector<128x128xbf16>, vector<2x128xf32> -> vector<2x128xf32>
    %c0_195 = arith.constant 0 : index
    %c0_196 = arith.constant 0 : index
    %415 = vector.load %arg14[%c0_195, %c0_196] : memref<1x128xf32, #tpu.memory_space<vmem>>, vector<1x128xf32>
    %416 = vector.broadcast %415 : vector<1x128xf32> to vector<2x128xf32>
    %417 = arith.addf %414, %416 : vector<2x128xf32>
    %418 = arith.index_cast %c4_i32 : i32 to index
    %c0_197 = arith.constant 0 : index
    %c0_198 = arith.constant 0 : index
    %419 = vector.load %arg15[%418, %c0_197, %c0_198] : memref<8x2x128xf32, #tpu.memory_space<vmem>>, vector<1x2x128xf32>
    %420 = vector.shape_cast %419 : vector<1x2x128xf32> to vector<2x128xf32>
    %421 = vector.shape_cast %417 : vector<2x128xf32> to vector<1x2x128xf32>
    tpu.vector_store %arg15[%418, %c0_197, %c0_198], %421 {strides = array<i32>} : memref<8x2x128xf32, #tpu.memory_space<vmem>>, vector<1x2x128xf32>,
    %c5_i32 = arith.constant 5 : i32
    %cst_199 = arith.constant 0.000000e+00 : f32
    %422 = vector.broadcast %cst_199 : f32 to vector<2x512xf32>
    %423 = arith.index_cast %c5_i32 : i32 to index
    %c0_200 = arith.constant 0 : index
    %424 = vector.load %arg18[%423, %c0_200] : memref<8x512xf32, #tpu.memory_space<vmem>>, vector<1x512xf32>
    %c0_i32_201 = arith.constant 0 : i32
    %425 = vector.broadcast %c0_i32_201 : i32 to vector<2x1xi32>
    %426 = arith.cmpi eq, %94, %425 : vector<2x1xi32>
    %427 = vector.shape_cast %426 : vector<2x1xi1> to vector<2x1xi1>
    %428 = vector.broadcast %427 : vector<2x1xi1> to vector<2x512xi1>
    %429 = vector.shape_cast %424 : vector<1x512xf32> to vector<1x512xf32>
    %430 = vector.broadcast %429 : vector<1x512xf32> to vector<2x512xf32>
    %431 = arith.select %428, %430, %422 : vector<2x512xi1>, vector<2x512xf32>
    %432 = arith.index_cast %c5_i32 : i32 to index
    %c0_202 = arith.constant 0 : index
    %433 = vector.load %arg19[%432, %c0_202] : memref<8x512xf32, #tpu.memory_space<vmem>>, vector<1x512xf32>
    %c1_i32_203 = arith.constant 1 : i32
    %434 = vector.broadcast %c1_i32_203 : i32 to vector<2x1xi32>
    %435 = arith.cmpi eq, %94, %434 : vector<2x1xi32>
    %436 = vector.shape_cast %435 : vector<2x1xi1> to vector<2x1xi1>
    %437 = vector.broadcast %436 : vector<2x1xi1> to vector<2x512xi1>
    %438 = vector.shape_cast %433 : vector<1x512xf32> to vector<1x512xf32>
    %439 = vector.broadcast %438 : vector<1x512xf32> to vector<2x512xf32>
    %440 = arith.select %437, %439, %431 : vector<2x512xi1>, vector<2x512xf32>
    %c0_204 = arith.constant 0 : index
    %c0_205 = arith.constant 0 : index
    %441 = vector.load %arg11[%c0_204, %c0_205] : memref<128x512xf32, #tpu.memory_space<vmem>>, vector<128x512xf32>
    %cst_206 = arith.constant dense<0.000000e+00> : vector<2x512xf32>
    %442 = tpu.matmul %409, %441, %cst_206 {dimension_numbers = #tpu.dot_dimension_numbers<[1], [0], [0], [1], [0, 0, 1, 1], [], []>} : vector<2x128xf32>, vector<128x512xf32>, vector<2x512xf32> -> vector<2x512xf32>
    %443 = arith.addf %440, %442 : vector<2x512xf32>
    %444 = vector.extract_strided_slice %443 {offsets = [0, 0], sizes = [2, 128], strides = [1, 1]} : vector<2x512xf32> to vector<2x128xf32>
    %cst_207 = arith.constant 5.000000e-01 : f32
    %445 = vector.broadcast %cst_207 : f32 to vector<2x128xf32>
    %446 = arith.mulf %445, %444 : vector<2x128xf32>
    %447 = math.tanh %446 : vector<2x128xf32>
    %cst_208 = arith.constant 1.000000e+00 : f32
    %448 = vector.broadcast %cst_208 : f32 to vector<2x128xf32>
    %449 = arith.addf %447, %448 : vector<2x128xf32>
    %cst_209 = arith.constant 5.000000e-01 : f32
    %450 = vector.broadcast %cst_209 : f32 to vector<2x128xf32>
    %451 = arith.mulf %450, %449 : vector<2x128xf32>
    %452 = vector.extract_strided_slice %443 {offsets = [0, 128], sizes = [2, 128], strides = [1, 1]} : vector<2x512xf32> to vector<2x128xf32>
    %cst_210 = arith.constant 5.000000e-01 : f32
    %453 = vector.broadcast %cst_210 : f32 to vector<2x128xf32>
    %454 = arith.mulf %453, %452 : vector<2x128xf32>
    %455 = math.tanh %454 : vector<2x128xf32>
    %cst_211 = arith.constant 1.000000e+00 : f32
    %456 = vector.broadcast %cst_211 : f32 to vector<2x128xf32>
    %457 = arith.addf %455, %456 : vector<2x128xf32>
    %cst_212 = arith.constant 5.000000e-01 : f32
    %458 = vector.broadcast %cst_212 : f32 to vector<2x128xf32>
    %459 = arith.mulf %458, %457 : vector<2x128xf32>
    %460 = vector.extract_strided_slice %443 {offsets = [0, 256], sizes = [2, 128], strides = [1, 1]} : vector<2x512xf32> to vector<2x128xf32>
    %461 = math.tanh %460 : vector<2x128xf32>
    %462 = vector.extract_strided_slice %443 {offsets = [0, 384], sizes = [2, 128], strides = [1, 1]} : vector<2x512xf32> to vector<2x128xf32>
    %cst_213 = arith.constant 5.000000e-01 : f32
    %463 = vector.broadcast %cst_213 : f32 to vector<2x128xf32>
    %464 = arith.mulf %463, %462 : vector<2x128xf32>
    %465 = math.tanh %464 : vector<2x128xf32>
    %cst_214 = arith.constant 1.000000e+00 : f32
    %466 = vector.broadcast %cst_214 : f32 to vector<2x128xf32>
    %467 = arith.addf %465, %466 : vector<2x128xf32>
    %cst_215 = arith.constant 5.000000e-01 : f32
    %468 = vector.broadcast %cst_215 : f32 to vector<2x128xf32>
    %469 = arith.mulf %468, %467 : vector<2x128xf32>
    %470 = arith.mulf %459, %407 : vector<2x128xf32>
    %471 = arith.mulf %451, %461 : vector<2x128xf32>
    %472 = arith.addf %470, %471 : vector<2x128xf32>
    %473 = math.tanh %472 : vector<2x128xf32>
    %474 = arith.mulf %469, %473 : vector<2x128xf32>
    %cst_216 = arith.constant 0.000000e+00 : f32
    %475 = vector.broadcast %cst_216 : f32 to vector<2x128xf32>
    %476 = arith.maximumf %474, %475 : vector<2x128xf32>
    %477 = arith.truncf %476 : vector<2x128xf32> to vector<2x128xbf16>
    %c0_217 = arith.constant 0 : index
    %c0_218 = arith.constant 0 : index
    %478 = vector.load %arg13[%c0_217, %c0_218] : memref<128x128xbf16, #tpu.memory_space<vmem>>, vector<128x128xbf16>
    %cst_219 = arith.constant dense<0.000000e+00> : vector<2x128xf32>
    %479 = tpu.matmul %477, %478, %cst_219 {dimension_numbers = #tpu.dot_dimension_numbers<[1], [0], [0], [1], [0, 0, 1, 1], [], []>} : vector<2x128xbf16>, vector<128x128xbf16>, vector<2x128xf32> -> vector<2x128xf32>
    %c0_220 = arith.constant 0 : index
    %c0_221 = arith.constant 0 : index
    %480 = vector.load %arg14[%c0_220, %c0_221] : memref<1x128xf32, #tpu.memory_space<vmem>>, vector<1x128xf32>
    %481 = vector.broadcast %480 : vector<1x128xf32> to vector<2x128xf32>
    %482 = arith.addf %479, %481 : vector<2x128xf32>
    %483 = arith.index_cast %c5_i32 : i32 to index
    %c0_222 = arith.constant 0 : index
    %c0_223 = arith.constant 0 : index
    %484 = vector.load %arg15[%483, %c0_222, %c0_223] : memref<8x2x128xf32, #tpu.memory_space<vmem>>, vector<1x2x128xf32>
    %485 = vector.shape_cast %484 : vector<1x2x128xf32> to vector<2x128xf32>
    %486 = vector.shape_cast %482 : vector<2x128xf32> to vector<1x2x128xf32>
    tpu.vector_store %arg15[%483, %c0_222, %c0_223], %486 {strides = array<i32>} : memref<8x2x128xf32, #tpu.memory_space<vmem>>, vector<1x2x128xf32>,
    %c6_i32 = arith.constant 6 : i32
    %cst_224 = arith.constant 0.000000e+00 : f32
    %487 = vector.broadcast %cst_224 : f32 to vector<2x512xf32>
    %488 = arith.index_cast %c6_i32 : i32 to index
    %c0_225 = arith.constant 0 : index
    %489 = vector.load %arg18[%488, %c0_225] : memref<8x512xf32, #tpu.memory_space<vmem>>, vector<1x512xf32>
    %c0_i32_226 = arith.constant 0 : i32
    %490 = vector.broadcast %c0_i32_226 : i32 to vector<2x1xi32>
    %491 = arith.cmpi eq, %94, %490 : vector<2x1xi32>
    %492 = vector.shape_cast %491 : vector<2x1xi1> to vector<2x1xi1>
    %493 = vector.broadcast %492 : vector<2x1xi1> to vector<2x512xi1>
    %494 = vector.shape_cast %489 : vector<1x512xf32> to vector<1x512xf32>
    %495 = vector.broadcast %494 : vector<1x512xf32> to vector<2x512xf32>
    %496 = arith.select %493, %495, %487 : vector<2x512xi1>, vector<2x512xf32>
    %497 = arith.index_cast %c6_i32 : i32 to index
    %c0_227 = arith.constant 0 : index
    %498 = vector.load %arg19[%497, %c0_227] : memref<8x512xf32, #tpu.memory_space<vmem>>, vector<1x512xf32>
    %c1_i32_228 = arith.constant 1 : i32
    %499 = vector.broadcast %c1_i32_228 : i32 to vector<2x1xi32>
    %500 = arith.cmpi eq, %94, %499 : vector<2x1xi32>
    %501 = vector.shape_cast %500 : vector<2x1xi1> to vector<2x1xi1>
    %502 = vector.broadcast %501 : vector<2x1xi1> to vector<2x512xi1>
    %503 = vector.shape_cast %498 : vector<1x512xf32> to vector<1x512xf32>
    %504 = vector.broadcast %503 : vector<1x512xf32> to vector<2x512xf32>
    %505 = arith.select %502, %504, %496 : vector<2x512xi1>, vector<2x512xf32>
    %c0_229 = arith.constant 0 : index
    %c0_230 = arith.constant 0 : index
    %506 = vector.load %arg11[%c0_229, %c0_230] : memref<128x512xf32, #tpu.memory_space<vmem>>, vector<128x512xf32>
    %cst_231 = arith.constant dense<0.000000e+00> : vector<2x512xf32>
    %507 = tpu.matmul %474, %506, %cst_231 {dimension_numbers = #tpu.dot_dimension_numbers<[1], [0], [0], [1], [0, 0, 1, 1], [], []>} : vector<2x128xf32>, vector<128x512xf32>, vector<2x512xf32> -> vector<2x512xf32>
    %508 = arith.addf %505, %507 : vector<2x512xf32>
    %509 = vector.extract_strided_slice %508 {offsets = [0, 0], sizes = [2, 128], strides = [1, 1]} : vector<2x512xf32> to vector<2x128xf32>
    %cst_232 = arith.constant 5.000000e-01 : f32
    %510 = vector.broadcast %cst_232 : f32 to vector<2x128xf32>
    %511 = arith.mulf %510, %509 : vector<2x128xf32>
    %512 = math.tanh %511 : vector<2x128xf32>
    %cst_233 = arith.constant 1.000000e+00 : f32
    %513 = vector.broadcast %cst_233 : f32 to vector<2x128xf32>
    %514 = arith.addf %512, %513 : vector<2x128xf32>
    %cst_234 = arith.constant 5.000000e-01 : f32
    %515 = vector.broadcast %cst_234 : f32 to vector<2x128xf32>
    %516 = arith.mulf %515, %514 : vector<2x128xf32>
    %517 = vector.extract_strided_slice %508 {offsets = [0, 128], sizes = [2, 128], strides = [1, 1]} : vector<2x512xf32> to vector<2x128xf32>
    %cst_235 = arith.constant 5.000000e-01 : f32
    %518 = vector.broadcast %cst_235 : f32 to vector<2x128xf32>
    %519 = arith.mulf %518, %517 : vector<2x128xf32>
    %520 = math.tanh %519 : vector<2x128xf32>
    %cst_236 = arith.constant 1.000000e+00 : f32
    %521 = vector.broadcast %cst_236 : f32 to vector<2x128xf32>
    %522 = arith.addf %520, %521 : vector<2x128xf32>
    %cst_237 = arith.constant 5.000000e-01 : f32
    %523 = vector.broadcast %cst_237 : f32 to vector<2x128xf32>
    %524 = arith.mulf %523, %522 : vector<2x128xf32>
    %525 = vector.extract_strided_slice %508 {offsets = [0, 256], sizes = [2, 128], strides = [1, 1]} : vector<2x512xf32> to vector<2x128xf32>
    %526 = math.tanh %525 : vector<2x128xf32>
    %527 = vector.extract_strided_slice %508 {offsets = [0, 384], sizes = [2, 128], strides = [1, 1]} : vector<2x512xf32> to vector<2x128xf32>
    %cst_238 = arith.constant 5.000000e-01 : f32
    %528 = vector.broadcast %cst_238 : f32 to vector<2x128xf32>
    %529 = arith.mulf %528, %527 : vector<2x128xf32>
    %530 = math.tanh %529 : vector<2x128xf32>
    %cst_239 = arith.constant 1.000000e+00 : f32
    %531 = vector.broadcast %cst_239 : f32 to vector<2x128xf32>
    %532 = arith.addf %530, %531 : vector<2x128xf32>
    %cst_240 = arith.constant 5.000000e-01 : f32
    %533 = vector.broadcast %cst_240 : f32 to vector<2x128xf32>
    %534 = arith.mulf %533, %532 : vector<2x128xf32>
    %535 = arith.mulf %524, %472 : vector<2x128xf32>
    %536 = arith.mulf %516, %526 : vector<2x128xf32>
    %537 = arith.addf %535, %536 : vector<2x128xf32>
    %538 = math.tanh %537 : vector<2x128xf32>
    %539 = arith.mulf %534, %538 : vector<2x128xf32>
    %cst_241 = arith.constant 0.000000e+00 : f32
    %540 = vector.broadcast %cst_241 : f32 to vector<2x128xf32>
    %541 = arith.maximumf %539, %540 : vector<2x128xf32>
    %542 = arith.truncf %541 : vector<2x128xf32> to vector<2x128xbf16>
    %c0_242 = arith.constant 0 : index
    %c0_243 = arith.constant 0 : index
    %543 = vector.load %arg13[%c0_242, %c0_243] : memref<128x128xbf16, #tpu.memory_space<vmem>>, vector<128x128xbf16>
    %cst_244 = arith.constant dense<0.000000e+00> : vector<2x128xf32>
    %544 = tpu.matmul %542, %543, %cst_244 {dimension_numbers = #tpu.dot_dimension_numbers<[1], [0], [0], [1], [0, 0, 1, 1], [], []>} : vector<2x128xbf16>, vector<128x128xbf16>, vector<2x128xf32> -> vector<2x128xf32>
    %c0_245 = arith.constant 0 : index
    %c0_246 = arith.constant 0 : index
    %545 = vector.load %arg14[%c0_245, %c0_246] : memref<1x128xf32, #tpu.memory_space<vmem>>, vector<1x128xf32>
    %546 = vector.broadcast %545 : vector<1x128xf32> to vector<2x128xf32>
    %547 = arith.addf %544, %546 : vector<2x128xf32>
    %548 = arith.index_cast %c6_i32 : i32 to index
    %c0_247 = arith.constant 0 : index
    %c0_248 = arith.constant 0 : index
    %549 = vector.load %arg15[%548, %c0_247, %c0_248] : memref<8x2x128xf32, #tpu.memory_space<vmem>>, vector<1x2x128xf32>
    %550 = vector.shape_cast %549 : vector<1x2x128xf32> to vector<2x128xf32>
    %551 = vector.shape_cast %547 : vector<2x128xf32> to vector<1x2x128xf32>
    tpu.vector_store %arg15[%548, %c0_247, %c0_248], %551 {strides = array<i32>} : memref<8x2x128xf32, #tpu.memory_space<vmem>>, vector<1x2x128xf32>,
    %c7_i32 = arith.constant 7 : i32
    %cst_249 = arith.constant 0.000000e+00 : f32
    %552 = vector.broadcast %cst_249 : f32 to vector<2x512xf32>
    %553 = arith.index_cast %c7_i32 : i32 to index
    %c0_250 = arith.constant 0 : index
    %554 = vector.load %arg18[%553, %c0_250] : memref<8x512xf32, #tpu.memory_space<vmem>>, vector<1x512xf32>
    %c0_i32_251 = arith.constant 0 : i32
    %555 = vector.broadcast %c0_i32_251 : i32 to vector<2x1xi32>
    %556 = arith.cmpi eq, %94, %555 : vector<2x1xi32>
    %557 = vector.shape_cast %556 : vector<2x1xi1> to vector<2x1xi1>
    %558 = vector.broadcast %557 : vector<2x1xi1> to vector<2x512xi1>
    %559 = vector.shape_cast %554 : vector<1x512xf32> to vector<1x512xf32>
    %560 = vector.broadcast %559 : vector<1x512xf32> to vector<2x512xf32>
    %561 = arith.select %558, %560, %552 : vector<2x512xi1>, vector<2x512xf32>
    %562 = arith.index_cast %c7_i32 : i32 to index
    %c0_252 = arith.constant 0 : index
    %563 = vector.load %arg19[%562, %c0_252] : memref<8x512xf32, #tpu.memory_space<vmem>>, vector<1x512xf32>
    %c1_i32_253 = arith.constant 1 : i32
    %564 = vector.broadcast %c1_i32_253 : i32 to vector<2x1xi32>
    %565 = arith.cmpi eq, %94, %564 : vector<2x1xi32>
    %566 = vector.shape_cast %565 : vector<2x1xi1> to vector<2x1xi1>
    %567 = vector.broadcast %566 : vector<2x1xi1> to vector<2x512xi1>
    %568 = vector.shape_cast %563 : vector<1x512xf32> to vector<1x512xf32>
    %569 = vector.broadcast %568 : vector<1x512xf32> to vector<2x512xf32>
    %570 = arith.select %567, %569, %561 : vector<2x512xi1>, vector<2x512xf32>
    %c0_254 = arith.constant 0 : index
    %c0_255 = arith.constant 0 : index
    %571 = vector.load %arg11[%c0_254, %c0_255] : memref<128x512xf32, #tpu.memory_space<vmem>>, vector<128x512xf32>
    %cst_256 = arith.constant dense<0.000000e+00> : vector<2x512xf32>
    %572 = tpu.matmul %539, %571, %cst_256 {dimension_numbers = #tpu.dot_dimension_numbers<[1], [0], [0], [1], [0, 0, 1, 1], [], []>} : vector<2x128xf32>, vector<128x512xf32>, vector<2x512xf32> -> vector<2x512xf32>
    %573 = arith.addf %570, %572 : vector<2x512xf32>
    %574 = vector.extract_strided_slice %573 {offsets = [0, 0], sizes = [2, 128], strides = [1, 1]} : vector<2x512xf32> to vector<2x128xf32>
    %cst_257 = arith.constant 5.000000e-01 : f32
    %575 = vector.broadcast %cst_257 : f32 to vector<2x128xf32>
    %576 = arith.mulf %575, %574 : vector<2x128xf32>
    %577 = math.tanh %576 : vector<2x128xf32>
    %cst_258 = arith.constant 1.000000e+00 : f32
    %578 = vector.broadcast %cst_258 : f32 to vector<2x128xf32>
    %579 = arith.addf %577, %578 : vector<2x128xf32>
    %cst_259 = arith.constant 5.000000e-01 : f32
    %580 = vector.broadcast %cst_259 : f32 to vector<2x128xf32>
    %581 = arith.mulf %580, %579 : vector<2x128xf32>
    %582 = vector.extract_strided_slice %573 {offsets = [0, 128], sizes = [2, 128], strides = [1, 1]} : vector<2x512xf32> to vector<2x128xf32>
    %cst_260 = arith.constant 5.000000e-01 : f32
    %583 = vector.broadcast %cst_260 : f32 to vector<2x128xf32>
    %584 = arith.mulf %583, %582 : vector<2x128xf32>
    %585 = math.tanh %584 : vector<2x128xf32>
    %cst_261 = arith.constant 1.000000e+00 : f32
    %586 = vector.broadcast %cst_261 : f32 to vector<2x128xf32>
    %587 = arith.addf %585, %586 : vector<2x128xf32>
    %cst_262 = arith.constant 5.000000e-01 : f32
    %588 = vector.broadcast %cst_262 : f32 to vector<2x128xf32>
    %589 = arith.mulf %588, %587 : vector<2x128xf32>
    %590 = vector.extract_strided_slice %573 {offsets = [0, 256], sizes = [2, 128], strides = [1, 1]} : vector<2x512xf32> to vector<2x128xf32>
    %591 = math.tanh %590 : vector<2x128xf32>
    %592 = vector.extract_strided_slice %573 {offsets = [0, 384], sizes = [2, 128], strides = [1, 1]} : vector<2x512xf32> to vector<2x128xf32>
    %cst_263 = arith.constant 5.000000e-01 : f32
    %593 = vector.broadcast %cst_263 : f32 to vector<2x128xf32>
    %594 = arith.mulf %593, %592 : vector<2x128xf32>
    %595 = math.tanh %594 : vector<2x128xf32>
    %cst_264 = arith.constant 1.000000e+00 : f32
    %596 = vector.broadcast %cst_264 : f32 to vector<2x128xf32>
    %597 = arith.addf %595, %596 : vector<2x128xf32>
    %cst_265 = arith.constant 5.000000e-01 : f32
    %598 = vector.broadcast %cst_265 : f32 to vector<2x128xf32>
    %599 = arith.mulf %598, %597 : vector<2x128xf32>
    %600 = arith.mulf %589, %537 : vector<2x128xf32>
    %601 = arith.mulf %581, %591 : vector<2x128xf32>
    %602 = arith.addf %600, %601 : vector<2x128xf32>
    %603 = math.tanh %602 : vector<2x128xf32>
    %604 = arith.mulf %599, %603 : vector<2x128xf32>
    %cst_266 = arith.constant 0.000000e+00 : f32
    %605 = vector.broadcast %cst_266 : f32 to vector<2x128xf32>
    %606 = arith.maximumf %604, %605 : vector<2x128xf32>
    %607 = arith.truncf %606 : vector<2x128xf32> to vector<2x128xbf16>
    %c0_267 = arith.constant 0 : index
    %c0_268 = arith.constant 0 : index
    %608 = vector.load %arg13[%c0_267, %c0_268] : memref<128x128xbf16, #tpu.memory_space<vmem>>, vector<128x128xbf16>
    %cst_269 = arith.constant dense<0.000000e+00> : vector<2x128xf32>
    %609 = tpu.matmul %607, %608, %cst_269 {dimension_numbers = #tpu.dot_dimension_numbers<[1], [0], [0], [1], [0, 0, 1, 1], [], []>} : vector<2x128xbf16>, vector<128x128xbf16>, vector<2x128xf32> -> vector<2x128xf32>
    %c0_270 = arith.constant 0 : index
    %c0_271 = arith.constant 0 : index
    %610 = vector.load %arg14[%c0_270, %c0_271] : memref<1x128xf32, #tpu.memory_space<vmem>>, vector<1x128xf32>
    %611 = vector.broadcast %610 : vector<1x128xf32> to vector<2x128xf32>
    %612 = arith.addf %609, %611 : vector<2x128xf32>
    %613 = arith.index_cast %c7_i32 : i32 to index
    %c0_272 = arith.constant 0 : index
    %c0_273 = arith.constant 0 : index
    %614 = vector.load %arg15[%613, %c0_272, %c0_273] : memref<8x2x128xf32, #tpu.memory_space<vmem>>, vector<1x2x128xf32>
    %615 = vector.shape_cast %614 : vector<1x2x128xf32> to vector<2x128xf32>
    %616 = vector.shape_cast %612 : vector<2x128xf32> to vector<1x2x128xf32>
    tpu.vector_store %arg15[%613, %c0_272, %c0_273], %616 {strides = array<i32>} : memref<8x2x128xf32, #tpu.memory_space<vmem>>, vector<1x2x128xf32>,
    %c8_i32 = arith.constant 8 : i32
    %c0_274 = arith.constant 0 : index
    %c0_275 = arith.constant 0 : index
    %617 = vector.load %arg16[%c0_274, %c0_275] : memref<2x128xf32, #tpu.memory_space<vmem>>, vector<2x128xf32>
    tpu.vector_store %arg16[%c0_274, %c0_275], %604 {strides = array<i32>} : memref<2x128xf32, #tpu.memory_space<vmem>>, vector<2x128xf32>,
    %c0_276 = arith.constant 0 : index
    %c0_277 = arith.constant 0 : index
    %618 = vector.load %arg17[%c0_276, %c0_277] : memref<2x128xf32, #tpu.memory_space<vmem>>, vector<2x128xf32>
    tpu.vector_store %arg17[%c0_276, %c0_277], %602 {strides = array<i32>} : memref<2x128xf32, #tpu.memory_space<vmem>>, vector<2x128xf32>,
    return
  }
  func.func @transform_0(%arg0: i32) -> (i32, i32, i32) {
    %c0_i32 = arith.constant 0 : i32
    %c0_i32_0 = arith.constant 0 : i32
    %c0_i32_1 = arith.constant 0 : i32
    return %arg0, %c0_i32, %c0_i32_0 : i32, i32, i32
  }
  func.func @transform_1(%arg0: i32) -> (i32, i32) {
    %c0_i32 = arith.constant 0 : i32
    %c0_i32_0 = arith.constant 0 : i32
    return %arg0, %c0_i32 : i32, i32
  }
  func.func @transform_2(%arg0: i32) -> (i32, i32) {
    %c0_i32 = arith.constant 0 : i32
    %c0_i32_0 = arith.constant 0 : i32
    return %arg0, %c0_i32 : i32, i32
  }
  func.func @transform_3(%arg0: i32) -> (i32, i32, i32) {
    %c0_i32 = arith.constant 0 : i32
    %c0_i32_0 = arith.constant 0 : i32
    %c0_i32_1 = arith.constant 0 : i32
    %c0_i32_2 = arith.constant 0 : i32
    return %c0_i32, %c0_i32_0, %c0_i32_1 : i32, i32, i32
  }
  func.func @transform_4(%arg0: i32) -> (i32, i32) {
    %c0_i32 = arith.constant 0 : i32
    %c0_i32_0 = arith.constant 0 : i32
    %c0_i32_1 = arith.constant 0 : i32
    return %c0_i32, %c0_i32_0 : i32, i32
  }
  func.func @transform_5(%arg0: i32) -> (i32, i32) {
    %c0_i32 = arith.constant 0 : i32
    %c0_i32_0 = arith.constant 0 : i32
    %c0_i32_1 = arith.constant 0 : i32
    return %c0_i32, %c0_i32_0 : i32, i32
  }
  func.func @transform_6(%arg0: i32) -> (i32, i32) {
    %c0_i32 = arith.constant 0 : i32
    %c0_i32_0 = arith.constant 0 : i32
    %c0_i32_1 = arith.constant 0 : i32
    return %c0_i32, %c0_i32_0 : i32, i32
  }
  func.func @transform_7(%arg0: i32) -> (i32, i32) {
    %c0_i32 = arith.constant 0 : i32
    %c0_i32_0 = arith.constant 0 : i32
    %c0_i32_1 = arith.constant 0 : i32
    return %c0_i32, %c0_i32_0 : i32, i32
  }
  func.func @transform_8(%arg0: i32) -> (i32, i32) {
    %c0_i32 = arith.constant 0 : i32
    %c0_i32_0 = arith.constant 0 : i32
    %c0_i32_1 = arith.constant 0 : i32
    return %c0_i32, %c0_i32_0 : i32, i32
  }
  func.func @transform_9(%arg0: i32) -> (i32, i32) {
    %c0_i32 = arith.constant 0 : i32
    %c0_i32_0 = arith.constant 0 : i32
    %c0_i32_1 = arith.constant 0 : i32
    return %c0_i32, %c0_i32_0 : i32, i32
  }
  func.func @transform_10(%arg0: i32) -> (i32, i32) {
    %c0_i32 = arith.constant 0 : i32
    %c0_i32_0 = arith.constant 0 : i32
    %c0_i32_1 = arith.constant 0 : i32
    return %c0_i32, %c0_i32_0 : i32, i32
  }
  func.func @transform_11(%arg0: i32) -> (i32, i32) {
    %c0_i32 = arith.constant 0 : i32
    %c0_i32_0 = arith.constant 0 : i32
    %c0_i32_1 = arith.constant 0 : i32
    return %c0_i32, %c0_i32_0 : i32, i32
  }
  func.func @transform_12(%arg0: i32) -> (i32, i32) {
    %c0_i32 = arith.constant 0 : i32
    %c0_i32_0 = arith.constant 0 : i32
    %c0_i32_1 = arith.constant 0 : i32
    return %c0_i32, %c0_i32_0 : i32, i32
  }
  func.func @transform_13(%arg0: i32) -> (i32, i32) {
    %c0_i32 = arith.constant 0 : i32
    %c0_i32_0 = arith.constant 0 : i32
    %c0_i32_1 = arith.constant 0 : i32
    return %c0_i32, %c0_i32_0 : i32, i32
  }
  func.func @transform_14(%arg0: i32) -> (i32, i32, i32) {
    %c0_i32 = arith.constant 0 : i32
    %c0_i32_0 = arith.constant 0 : i32
    %c0_i32_1 = arith.constant 0 : i32
    return %c0_i32, %arg0, %c0_i32_0 : i32, i32, i32
  }
  func.func @transform_15(%arg0: i32) -> (i32, i32) {
    %c0_i32 = arith.constant 0 : i32
    %c0_i32_0 = arith.constant 0 : i32
    return %arg0, %c0_i32 : i32, i32
  }
  func.func @transform_16(%arg0: i32) -> (i32, i32) {
    %c0_i32 = arith.constant 0 : i32
    %c0_i32_0 = arith.constant 0 : i32
    return %arg0, %c0_i32 : i32, i32
  }
}

</mosaic_0001>

<bundles_post_ra>
// kernel: recognition_forward.1
= control target key start
LH: loop header
LB: loop body
LE: loop exit
PB: predicated region body
PF: predicated region fallthrough
CT: control target
= control target key end

     0   :  { %s7663_s0 = inlined_call_operand.vmem [shape: f32[2,10,16], index: 0, kind: input, shape index: {}]   ;;  %s7664_s1 = inlined_call_operand.vmem [shape: f32[2,128], index: 1, kind: input, shape index: {}]   ;;  %s7665_s2 = inlined_call_operand.vmem [shape: f32[2,128], index: 2, kind: input, shape index: {}]   ;;  %s7666_s3 = inlined_call_operand.hbm [shape: bf16[3,16,128], index: 3, kind: input, shape index: {}]   ;;  %s7667_s4 = inlined_call_operand.vmem [shape: f32[1,128], index: 4, kind: input, shape index: {}]   ;;  %s7668_s5 = inlined_call_operand.hbm [shape: bf16[128,128], index: 5, kind: input, shape index: {}]   ;;  %s7669_s6 = inlined_call_operand.vmem [shape: f32[1,128], index: 6, kind: input, shape index: {}]   ;;  %s7670_s7 = inlined_call_operand.hbm [shape: bf16[128,128], index: 7, kind: input, shape index: {}]   ;;  %s7671_s8 = inlined_call_operand.vmem [shape: f32[1,128], index: 8, kind: input, shape index: {}]   ;;  %s7672_s9 = inlined_call_operand.hbm [shape: bf16[128,512], index: 9, kind: input, shape index: {}]   ;;  %s7673_s10 = inlined_call_operand.hbm [shape: f32[128,512], index: 10, kind: input, shape index: {}]   ;;  %s7674_s11 = inlined_call_operand.vmem [shape: f32[1,512], index: 11, kind: input, shape index: {}]   ;;  %s7675_s12 = inlined_call_operand.vmem [shape: bf16[128,128], index: 12, kind: input, shape index: {}]   ;;  %s7676_s13 = inlined_call_operand.vmem [shape: f32[1,128], index: 13, kind: input, shape index: {}]   ;;  %s7677_s14 = inlined_call_operand.hbm [shape: f32[8,2,128], index: 14, kind: output, shape index: {0}]   ;;  %s7678_s15 = inlined_call_operand.vmem [shape: f32[2,128], index: 15, kind: output, shape index: {1}]   ;;  %s7679_s16 = inlined_call_operand.vmem [shape: f32[2,128], index: 16, kind: output, shape index: {2}]  }
   0x1   :  { %7772 = sst [smem:[#allocation86_spill]] %s7663_s0 }
   0x2   :  { %22 = vsyncpa [#allocation5], 0 }
   0x3   :  { %23 = vsyncpa [#allocation8], 0 }
   0x4   :  { %24 = vsyncpa [#allocation11], 0 }
   0x5   :  { %25 = vsyncpa [#allocation6], 0  ;;  %s5700_s21 = smov [#allocation7]   ;;  %s5701_s23 = smov [#allocation10]  }
   0x6   :  { %s51_s22 = sshll.u32 %s5700_s21, 4  ;;  %s79_s24 = sshll.u32 %s5701_s23, 4  ;;  %s52_s22 = int_to_ptr.vmem [resolvable:$true] %s51_s22  ;;  %s80_s24 = int_to_ptr.vmem [resolvable:$true] %s79_s24 }
   0x7   :  { %s5580_s25 = scalar_lea.vmem %s52_s22, 1024  ;;  %p5585_p1 = scmp.lt.s32.totalorder %s52_s22, %s52_s22 }
   0x8   :  { %p5581_p0 = scmp.ne.s32.totalorder %s52_s22, %s5580_s25  ;;  %p5586_p2 = scmp.lt.s32.totalorder %s5580_s25, %s5580_s25 }
   0xa   :  { %p5587_p3 = por %p5586_p2, %p5585_p1 }
   0xc   :  { %p5588_p4 = pnand %p5587_p3, %p5581_p0 }
   0xe   :  { %5591 = shalt.err (!%p5588_p4)
}
   0xf   :  { %s5702_s26 = smov 64   ;;  %s5703_s27 = smov 4  }
  0x10   :  { %57 = dma.hbm_to_vmem [thread:$0]  %s7668_s5, 1024, %s52_s22, [#allocation8], %s5702_s26, %s5702_s26, %s5703_s27  }
  0x11   :  { %s5600_s30 = scalar_lea.vmem %s80_s24, 4096  ;;  %p5605_p6 = scmp.lt.s32.totalorder %s80_s24, %s80_s24 }
  0x12   :  { %p5601_p5 = scmp.ne.s32.totalorder %s80_s24, %s5600_s30  ;;  %p5606_p7 = scmp.lt.s32.totalorder %s5600_s30, %s5600_s30 }
  0x14   :  { %p5607_p8 = por %p5606_p7, %p5605_p6 }
  0x16   :  { %p5608_p9 = pnand %p5607_p8, %p5601_p5 }
  0x18   :  { %5611 = shalt.err (!%p5608_p9)
}
  0x19   :  { %s5704_s0 = smov 256   ;;  %s5705_s17 = smov 16  }
  0x1a   :  { %85 = dma.hbm_to_vmem [thread:$0]  %s7672_s9, 4096, %s80_s24, [#allocation11], %s5704_s0, %s5704_s0, %s5705_s17  }
  0x1b   :  { %s5706_s20 = smov [#allocation4]   ;;  %s5707_s23 = smov [#allocation9]  }
  0x1c   :  { %s37_s21 = sshll.u32 %s5706_s20, 4  ;;  %s65_s25 = sshll.u32 %s5707_s23, 4  ;;  %s38_s21 = int_to_ptr.vmem [resolvable:$true] %s37_s21  ;;  %s66_s25 = int_to_ptr.vmem [resolvable:$true] %s65_s25 }
  0x1d   :  { %s5620_s5 = scalar_lea.vmem %s38_s21, 384  ;;  %p5625_p11 = scmp.lt.s32.totalorder %s38_s21, %s38_s21 }
  0x1e   :  { %p5621_p10 = scmp.ne.s32.totalorder %s38_s21, %s5620_s5  ;;  %p5626_p12 = scmp.lt.s32.totalorder %s5620_s5, %s5620_s5 }
  0x20   :  { %p5627_p13 = por %p5626_p12, %p5625_p11 }
  0x22   :  { %p5628_p0 = pnand %p5627_p13, %p5621_p10 }
  0x24   :  { %5631 = shalt.err (!%p5628_p0)
}
  0x25   :  { %43 = dma.hbm_to_vmem [thread:$0]  %s7666_s3, 384, %s38_s21, [#allocation5], %s5702_s26, %s5702_s26, %s5703_s27  }
  0x26   :  { %s5640_s9 = scalar_lea.vmem %s66_s25, 1024  ;;  %p5645_p2 = scmp.lt.s32.totalorder %s66_s25, %s66_s25 }
  0x27   :  { %p5641_p1 = scmp.ne.s32.totalorder %s66_s25, %s5640_s9  ;;  %p5646_p3 = scmp.lt.s32.totalorder %s5640_s9, %s5640_s9 }
  0x29   :  { %p5647_p4 = por %p5646_p3, %p5645_p2 }
  0x2b   :  { %p5648_p5 = pnand %p5647_p4, %p5641_p1 }
  0x2d   :  { %5651 = shalt.err (!%p5648_p5)
}
  0x2e   :  { %71 = dma.hbm_to_vmem [thread:$0]  %s7670_s7, 1024, %s66_s25, [#allocation8], %s5702_s26, %s5702_s26, %s5703_s27  }
  0x2f   :  { %s5708_s30 = smov [#allocation12]  }
  0x30   :  { %s91_s0 = sshll.u32 %s5708_s30, 4  ;;  %s92_s0 = int_to_ptr.vmem [resolvable:$true] %s91_s0 }
  0x31   :  { %s5660_s17 = scalar_lea.vmem %s92_s0, 8192  ;;  %p5665_p7 = scmp.lt.s32.totalorder %s92_s0, %s92_s0 }
  0x32   :  { %p5661_p6 = scmp.ne.s32.totalorder %s92_s0, %s5660_s17  ;;  %p5666_p8 = scmp.lt.s32.totalorder %s5660_s17, %s5660_s17 }
  0x34   :  { %p5667_p9 = por %p5666_p8, %p5665_p7 }
  0x36   :  { %p5668_p10 = pnand %p5667_p9, %p5661_p6 }
  0x38   :  { %5671 = shalt.err (!%p5668_p10)
}
  0x39   :  { %s5709_s3 = smov 512   ;;  %s5710_s18 = smov 32  }
  0x3a   :  { %97 = dma.hbm_to_vmem [thread:$0]  %s7673_s10, 8192, %s92_s0, [#allocation11], %s5709_s3, %s5709_s3, %s5710_s18  }
  0x3b   :  { %5692 = dma.done.wait [#allocation5], 384  }
  0x3c   :  { %5693 = vsyncadd [#allocation5], 4294966912 }
  0x3d   :  { %5694 = dma.done.wait [#allocation8], 2048  }
  0x3e   :  { %5695 = vsyncadd [#allocation8], 4294965248 }
  0x3f   :  { %5696 = dma.done.wait [#allocation11], 12288  }
  0x40   :  { %5697 = vsyncadd [#allocation11], 4294955008  ;;  %v7681_v0 = vmov 0.0   ;;  %vm5712_vm0 = vmmov 0   ;;  %v5342_v1 = vld [vmem:[#allocation4 + $0x8] sm:$0xff]   ;;  %v5343_v2 = vld [vmem:[#allocation4] sm:$0xff]  }
  0x41   :  { %5050 = vmatprep.subr.bf16.mxu0 %v7681_v0  ;;  %5056 = vmatprep.subr.bf16.mxu1 %v7681_v0  ;;  %s7773_s26 = sld [smem:[#allocation86_spill]]  ;;  %vm142_vm1 = vcmask 130048   ;;  %v5345_v7 = vld [vmem:[#allocation7 + $0x38] sm:$0xff]   ;;  %v5346_v13 = vld [vmem:[#allocation7 + $0x30] sm:$0xff]   ;;  %v5347_v15 = vld [vmem:[#allocation7 + $0x28] sm:$0xff]   ;;  %s5714_s28 = smov [#allocation13]  }
  0x42   :  { %5052 = vmatprep.mubr.msk.bf16.mxu0 %vm5712_vm0, %v7681_v0  ;;  %5058 = vmatprep.mubr.msk.bf16.mxu1 %vm5712_vm0, %v7681_v0  ;;  %v5344_v10 = vld [vmem:[#allocation4 + $0x10] sm:$0xff]   ;;  %v5348_v16 = vld [vmem:[#allocation7 + $0x20] sm:$0xff]   ;;  %v5350_v18 = vld [vmem:[#allocation7 + $0x10] sm:$0xff]   ;;  %s4720_s9 = sshll.u32 %s5714_s28, 4  ;;  %s4721_s9 = int_to_ptr.vmem [resolvable:$true] %s4720_s9 }
  0x43   :  { %5051 = vmatpush3.bf16.msra.mxu0 %v5342_v1  ;;  %5057 = vmatpush3.bf16.msra.mxu1 %v5343_v2  ;;  %v5349_v17 = vld [vmem:[#allocation7 + $0x18] sm:$0xff]   ;;  %v5351_v19 = vld [vmem:[#allocation7 + $0x8] sm:$0xff]   ;;  %v5352_v20 = vld [vmem:[#allocation7] sm:$0xff]   ;;  %p5677_p12 = scmp.lt.s32.totalorder %s4721_s9, %s4721_s9 }
  0x44   :  { %5062 = vmatprep.subr.bf16.mxu0 %v7681_v0  ;;  %5068 = vmatprep.subr.bf16.mxu1 %v7681_v0  ;;  %v5353_v21 = vld [vmem:[#allocation9 + $0x38] sm:$0xff]   ;;  %v5354_v22 = vld [vmem:[#allocation9 + $0x30] sm:$0xff]   ;;  %v5355_v23 = vld [vmem:[#allocation9 + $0x28] sm:$0xff]  }
  0x45   :  { %v5356_v24 = vld [vmem:[#allocation9 + $0x20] sm:$0xff]   ;;  %v5357_v25 = vld [vmem:[#allocation9 + $0x18] sm:$0xff]   ;;  %v5358_v26 = vld [vmem:[#allocation9 + $0x10] sm:$0xff]  }
  0x46   :  { %v5866_v37 = vld [vmem:[%s7667_s4] ss:$0 sm:$0xff]  ;;  %v5360_v46 = vld [vmem:[#allocation9] sm:$0xff]   ;;  %v5874_v49 = vld [vmem:[#allocation10 + $0xec] ss:$16 sps:$4 sm:$0xff]  }
  0x47   :  { %v120_v3 = vld [vmem:[%s7773_s26] sm:$0xff]  ;;  %v121_v4 = vld [vmem:[%s7773_s26 + $0x8] sm:$0x3]  ;;  %v5872_v48 = vld [vmem:[#allocation10 + $0xe4] ss:$16 sps:$4 sm:$0xff]  }
  0x48   :  { %v125_v5 = vpack.c.bf16 %v121_v4, %v120_v3  ;;  %v122_v6 = vpack.c.bf16 %v120_v3, %v120_v3  ;;  %v5359_v45 = vld [vmem:[#allocation9 + $0x8] sm:$0xff]   ;;  %v5870_v47 = vld [vmem:[#allocation10 + $0xe0] ss:$16 sps:$4 sm:$0xff]   ;;  %v5876_v50 = vld [vmem:[#allocation10 + $0xc4] ss:$16 sps:$4 sm:$0xff]  }
  0x49   :  { %v5881_v51 = vld [vmem:[#allocation10 + $0xc0] ss:$16 sps:$4 sm:$0xff]   ;;  %v5884_v52 = vld [vmem:[#allocation10 + $0xa4] ss:$16 sps:$4 sm:$0xff]   ;;  %v5918_v62 = vld [vmem:[%s7669_s6] ss:$0 sm:$0xff] }
  0x4a   :  { %v130_v8 = vshrl.u32 %v125_v5, 16  ;;  %v132_v9 = vshll.u32 %v125_v5, 16  ;;  %5059 = vmatmul.mubr.msk.bf16.vlgmr.msra.gmra.mxu1 %vm142_vm1, %v122_v6  ;;  %v239_v11 = vrot.slane %v125_v5, 1  ;;  %v5887_v53 = vld [vmem:[#allocation10 + $0xa0] ss:$16 sps:$4 sm:$0xff]  }
  0x4b   :  { %5069 = vmatpush3.bf16.msra.mxu1 %v5345_v7  ;;  %5084 = vmatprep.mubr.msk.bf16.mxu1 %vm5712_vm0, %v7681_v0  ;;  %v5890_v54 = vld [vmem:[#allocation10 + $0x84] ss:$16 sps:$4 sm:$0xff]   ;;  %v5893_v55 = vld [vmem:[#allocation10 + $0x80] ss:$16 sps:$4 sm:$0xff]   ;;  %v5921_v5 = vld [vmem:[#allocation10 + $0xe8] ss:$16 sps:$4 sm:$0xff]  }
  0x4c   :  { %v134_v12 = vrot.slane %v132_v9, 1  ;;  %5070 = vmatprep.subr.bf16.mxu1 %v7681_v0  ;;  %v5896_v56 = vld [vmem:[#allocation10 + $0x64] ss:$16 sps:$4 sm:$0xff]   ;;  %v5899_v57 = vld [vmem:[#allocation10 + $0x60] ss:$16 sps:$4 sm:$0xff]  }
  0x4d   :  { %v5902_v58 = vld [vmem:[#allocation10 + $0x44] ss:$16 sps:$4 sm:$0xff]   ;;  %v5905_v59 = vld [vmem:[#allocation10 + $0x40] ss:$16 sps:$4 sm:$0xff]   ;;  %v5923_v7 = vld [vmem:[#allocation10 + $0xcc] ss:$16 sps:$4 sm:$0xff]  }
  0x4e   :  { %v135_v14 = vor.u32 %v134_v12, %v130_v8  ;;  %v5908_v60 = vld [vmem:[#allocation10 + $0x24] ss:$16 sps:$4 sm:$0xff]   ;;  %v5911_v61 = vld [vmem:[#allocation10 + $0x20] ss:$16 sps:$4 sm:$0xff]   ;;  %v5926_v9 = vld [vmem:[#allocation10 + $0xc8] ss:$16 sps:$4 sm:$0xff]  }
  0x4f   :  { %5071 = vmatpush3.bf16.msra.mxu1 %v5346_v13  ;;  %v5935_v12 = vld [vmem:[#allocation10 + $0x8c] ss:$16 sps:$4 sm:$0xff]   ;;  %v5938_v13 = vld [vmem:[#allocation10 + $0x88] ss:$16 sps:$4 sm:$0xff]  }
  0x50   :  { %5053 = vmatmul.mubr.msk.bf16.vlgmr.msra.gmra.mxu0 %vm142_vm1, %v135_v14  ;;  %5072 = vmatprep.subr.bf16.mxu1 %v7681_v0  ;;  %v5941_v14 = vld [vmem:[#allocation10 + $0x6c] ss:$16 sps:$4 sm:$0xff]  }
  0x51   :  { %5063 = vmatpush3.bf16.msra.mxu0 %v5344_v10  ;;  %5064 = vmatprep.mubr.msk.bf16.mxu0 %vm5712_vm0, %v7681_v0  ;;  %v5929_v10 = vld [vmem:[#allocation10 + $0xac] ss:$16 sps:$4 sm:$0xff]  }
  0x52   :  { %5088 = vmatprep.subr.bf16.mxu0 %v7681_v0 }
  0x53   :  { %5073 = vmatpush3.bf16.msra.mxu1 %v5347_v15  ;;  %v5944_v15 = vld [vmem:[#allocation10 + $0x68] ss:$16 sps:$4 sm:$0xff]  }
  0x54   :  { %5074 = vmatprep.subr.bf16.mxu1 %v7681_v0 }
  0x57   :  { %5075 = vmatpush3.bf16.msra.mxu1 %v5348_v16  ;;  %v5947_v16 = vld [vmem:[#allocation10 + $0x4c] ss:$16 sps:$4 sm:$0xff]  }
  0x58   :  { %5065 = vmatmul.mubr.msk.bf16.vlgmr.msra.gmra.mxu0 %vm142_vm1, %v239_v11  ;;  %5076 = vmatprep.subr.bf16.mxu1 %v7681_v0  ;;  %v5932_v11 = vld [vmem:[#allocation10 + $0xa8] ss:$16 sps:$4 sm:$0xff]  }
  0x59   :  { %5104 = vmatprep.mubr.msk.bf16.mxu0 %vm5712_vm0, %v7681_v0  ;;  %5089 = vmatpush3.bf16.msra.mxu0 %v5353_v21  ;;  %v5962_v21 = vld [vmem:[#allocation10 + $0xc] ss:$16 sps:$4 sm:$0xff]  }
  0x5a   :  { %5090 = vmatprep.subr.bf16.mxu0 %v7681_v0 }
  0x5b   :  { %5077 = vmatpush3.bf16.msra.mxu1 %v5349_v17  ;;  %v5950_v17 = vld [vmem:[#allocation10 + $0x48] ss:$16 sps:$4 sm:$0xff]  }
  0x5c   :  { %5078 = vmatprep.subr.bf16.mxu1 %v7681_v0 }
  0x5d   :  { %5091 = vmatpush3.bf16.msra.mxu0 %v5354_v22  ;;  %v5964_v22 = vld [vmem:[#allocation10] ss:$16 sps:$4 sm:$0xff]  }
  0x5e   :  { %5092 = vmatprep.subr.bf16.mxu0 %v7681_v0 }
  0x5f   :  { %5079 = vmatpush3.bf16.msra.mxu1 %v5350_v18  ;;  %v5953_v18 = vld [vmem:[#allocation10 + $0x2c] ss:$16 sps:$4 sm:$0xff]  }
  0x60   :  { %5080 = vmatprep.subr.bf16.mxu1 %v7681_v0 }
  0x61   :  { %5093 = vmatpush3.bf16.msra.mxu0 %v5355_v23  ;;  %v5966_v23 = vld [vmem:[#allocation10 + $0x8] ss:$16 sps:$4 sm:$0xff]  }
  0x62   :  { %5094 = vmatprep.subr.bf16.mxu0 %v7681_v0 }
  0x63   :  { %5081 = vmatpush3.bf16.msra.mxu1 %v5351_v19  ;;  %v5956_v19 = vld [vmem:[#allocation10 + $0x28] ss:$16 sps:$4 sm:$0xff]  }
  0x64   :  { %5082 = vmatprep.subr.bf16.mxu1 %v7681_v0 }
  0x65   :  { %5095 = vmatpush3.bf16.msra.mxu0 %v5356_v24  ;;  %v5713_v24 = vmov 0  }
  0x66   :  { %5096 = vmatprep.subr.bf16.mxu0 %v7681_v0 }
  0x67   :  { %5083 = vmatpush3.bf16.msra.mxu1 %v5352_v20  ;;  %v5960_v20 = vld [vmem:[#allocation10 + $0x4] ss:$16 sps:$4 sm:$0xff]  }
  0x68   :  { %740 = vmatprep.subr.bf16.mxu1 %v5872_v48 }
  0x69   :  { %5097 = vmatpush3.bf16.msra.mxu0 %v5357_v25  ;;  %v4799_v25 = vld [vmem:[%s7773_s26 + $0x10] sm:$0xff] }
  0x6a   :  { %5098 = vmatprep.subr.bf16.mxu0 %v7681_v0 }
  0x6d   :  { %5099 = vmatpush3.bf16.msra.mxu0 %v5358_v26  ;;  %v4800_v26 = vld [vmem:[%s7773_s26 + $0x18] sm:$0x3] }
  0x6e   :  { %5100 = vmatprep.subr.bf16.mxu0 %v7681_v0 }
  0x71   :  { %5101 = vmatpush3.bf16.msra.mxu0 %v5359_v45  ;;  %v5412_v45 = vld [vmem:[#allocation7 + $0x38] sm:$0xff]  }
  0x72   :  { %5102 = vmatprep.subr.bf16.mxu0 %v7681_v0 }
  0x75   :  { %5103 = vmatpush3.bf16.msra.mxu0 %v5360_v46  ;;  %v5413_v46 = vld [vmem:[#allocation7 + $0x30] sm:$0xff]  }
  0x76   :  { %781 = vmatprep.subr.bf16.mxu0 %v5874_v49 }
 0x10a   :  { %v229_v27 = vpop.f32.mrf.mxu1 }
 0x10c   :  { %v5060_v28 = vpop.f32.mrf.mxu1 }
 0x10d   :  { %v832_v28 = vpack.c.bf16 %v4800_v26, %v4799_v25  ;;  %v5421_v26 = vld [vmem:[#allocation9 + $0x30] sm:$0xff]  }
 0x10e   :  { %v232_v29 = vpop.f32.mrf.mxu1 }
 0x110   :  { %v180_v30 = vpop.f32.mrf.mxu0  ;;  %v5061_v31 = vpop.f32.mrf.mxu1 }
 0x111   :  { %v230_v35 = vadd.f32 %v229_v27, %v180_v30  ;;  %v5985_v27 = vld [vmem:[%s7671_s8] ss:$0 sm:$0xff] }
 0x112   :  { %v5054_v32 = vpop.f32.mrf.mxu0 }
 0x114   :  { %v183_v33 = vpop.f32.mrf.mxu0 }
 0x115   :  { %v838_v33 = vshll.u32 %v832_v28, 16 }
 0x116   :  { %v5055_v34 = vpop.f32.mrf.mxu0 }
 0x118   :  { %v283_v36 = vpop.f32.mrf.mxu0 }
 0x119   :  { %v289_v38 = vadd.f32 %v283_v36, %v230_v35  ;;  %v5409_v35 = vld [vmem:[#allocation4 + $0x8] sm:$0xff]   ;;  %v5410_v36 = vld [vmem:[#allocation4] sm:$0xff]  }
 0x11a   :  { %v5066_v39 = vpop.f32.mrf.mxu0 }
 0x11b   :  { %v297_v40 = vadd.f32 %v5866_v37, %v289_v38 }
 0x11c   :  { %v286_v41 = vpop.f32.mrf.mxu0 }
 0x11d   :  { %v298_v42 = vmax.f32 %v297_v40, 0.0  ;;  %v836_v40 = vshrl.u32 %v832_v28, 16  ;;  %v840_v41 = vrot.slane %v838_v33, 1 }
 0x11e   :  { %v5067_v43 = vpop.f32.mrf.mxu0 }
 0x11f   :  { %v299_v44 = vpack.c.bf16 %v298_v42, %v298_v42  ;;  %v841_v42 = vor.u32 %v840_v41, %v836_v40  ;;  %v829_v43 = vpack.c.bf16 %v4799_v25, %v4799_v25  ;;  %v5420_v25 = vld [vmem:[#allocation9 + $0x38] sm:$0xff]  }
 0x121   :  { %5085 = vmatmul.mubr.bf16.vlgmr.msra.gmra.mxu1 %v299_v44  ;;  %v5411_v44 = vld [vmem:[#allocation4 + $0x10] sm:$0xff]  }
 0x122   :  { %741 = vmatpush1.bf16.msra.mxu1 %v5870_v47  ;;  %772 = vmatprep.mubr.bf16.mxu1 %v5713_v24 }
 0x123   :  { %742 = vmatprep.subr.bf16.mxu1 %v5876_v50 }
 0x126   :  { %743 = vmatpush1.bf16.msra.mxu1 %v5881_v51 }
 0x127   :  { %744 = vmatprep.subr.bf16.mxu1 %v5884_v52 }
 0x12a   :  { %745 = vmatpush1.bf16.msra.mxu1 %v5887_v53 }
 0x12b   :  { %746 = vmatprep.subr.bf16.mxu1 %v5890_v54 }
 0x12e   :  { %747 = vmatpush1.bf16.msra.mxu1 %v5893_v55 }
 0x12f   :  { %748 = vmatprep.subr.bf16.mxu1 %v5896_v56 }
 0x132   :  { %749 = vmatpush1.bf16.msra.mxu1 %v5899_v57 }
 0x133   :  { %750 = vmatprep.subr.bf16.mxu1 %v5902_v58 }
 0x136   :  { %751 = vmatpush1.bf16.msra.mxu1 %v5905_v59 }
 0x137   :  { %752 = vmatprep.subr.bf16.mxu1 %v5908_v60 }
 0x13a   :  { %753 = vmatpush1.bf16.msra.mxu1 %v5911_v61 }
 0x13b   :  { %754 = vmatprep.subr.bf16.mxu1 %v5960_v20 }
 0x13e   :  { %755 = vmatpush1.bf16.msra.mxu1 %v5964_v22 }
 0x13f   :  { %5108 = vmatprep.subr.bf16.mxu1 %v7681_v0 }
 0x1e1   :  { %v405_v63 = vpop.f32.mrf.mxu1 }
 0x1e2   :  { %v406_v1 = vadd.f32 %v5918_v62, %v405_v63  ;;  %v943_v63 = vrot.slane %v832_v28, 1  ;;  %v5422_v28 = vld [vmem:[#allocation9 + $0x28] sm:$0xff]  }
 0x1e3   :  { %v5086_v2 = vpop.f32.mrf.mxu1 }
 0x1e4   :  { %v411_v3 = vmax.f32 %v406_v1, 0.0  ;;  %v5414_v1 = vld [vmem:[#allocation7 + $0x28] sm:$0xff]   ;;  %v5415_v2 = vld [vmem:[#allocation7 + $0x20] sm:$0xff]  }
 0x1e5   :  { %v408_v4 = vpop.f32.mrf.mxu1 }
 0x1e6   :  { %v412_v6 = vpack.c.bf16 %v411_v3, %v411_v3  ;;  %v5416_v3 = vld [vmem:[#allocation7 + $0x18] sm:$0xff]   ;;  %v5417_v4 = vld [vmem:[#allocation7 + $0x10] sm:$0xff]  }
 0x1e7   :  { %v5087_v8 = vpop.f32.mrf.mxu1 }
 0x1e8   :  { %5105 = vmatmul.mubr.bf16.vlgmr.msra.gmra.mxu0 %v412_v6  ;;  %v5418_v6 = vld [vmem:[#allocation7 + $0x8] sm:$0xff]   ;;  %v5419_v8 = vld [vmem:[#allocation7] sm:$0xff]  }
 0x1e9   :  { %782 = vmatpush1.bf16.msra.mxu0 %v5921_v5  ;;  %813 = vmatprep.mubr.bf16.mxu0 %v5713_v24 }
 0x1ea   :  { %783 = vmatprep.subr.bf16.mxu0 %v5923_v7 }
 0x1ed   :  { %784 = vmatpush1.bf16.msra.mxu0 %v5926_v9 }
 0x1ee   :  { %785 = vmatprep.subr.bf16.mxu0 %v5929_v10 }
 0x1f1   :  { %786 = vmatpush1.bf16.msra.mxu0 %v5932_v11 }
 0x1f2   :  { %787 = vmatprep.subr.bf16.mxu0 %v5935_v12 }
 0x1f5   :  { %788 = vmatpush1.bf16.msra.mxu0 %v5938_v13 }
 0x1f6   :  { %789 = vmatprep.subr.bf16.mxu0 %v5941_v14 }
 0x1f9   :  { %790 = vmatpush1.bf16.msra.mxu0 %v5944_v15 }
 0x1fa   :  { %791 = vmatprep.subr.bf16.mxu0 %v5947_v16 }
 0x1fd   :  { %792 = vmatpush1.bf16.msra.mxu0 %v5950_v17 }
 0x1fe   :  { %793 = vmatprep.subr.bf16.mxu0 %v5953_v18 }
 0x201   :  { %794 = vmatpush1.bf16.msra.mxu0 %v5956_v19 }
 0x202   :  { %795 = vmatprep.subr.bf16.mxu0 %v5962_v21 }
 0x205   :  { %796 = vmatpush1.bf16.msra.mxu0 %v5966_v23 }
 0x206   :  { %5114 = vmatprep.subr.bf16.mxu0 %v7681_v0 }
 0x2a8   :  { %v518_v29 = vpop.f32.mrf.mxu0 }
 0x2a9   :  { %v519_v30 = vadd.f32 %v5985_v27, %v518_v29  ;;  %v5423_v29 = vld [vmem:[#allocation9 + $0x20] sm:$0xff]  }
 0x2aa   :  { %v5106_v31 = vpop.f32.mrf.mxu0 }
 0x2ab   :  { %v524_v32 = vmax.f32 %v519_v30, 0.0  ;;  %v5424_v30 = vld [vmem:[#allocation9 + $0x18] sm:$0xff]   ;;  %v5425_v31 = vld [vmem:[#allocation9 + $0x10] sm:$0xff]  }
 0x2ac   :  { %v521_v34 = vpop.f32.mrf.mxu0 }
 0x2ad   :  { %v525_v38 = vpack.c.bf16 %v524_v32, %v524_v32 }
 0x2ae   :  { %v5107_v39 = vpop.f32.mrf.mxu0 }
 0x2af   :  { %773 = vmatmul.mubr.bf16.vlgmr.msra.gmra.mxu1 %v525_v38  ;;  %814 = vmatmul.mubr.bf16.vlgmr.msra.gmra.mxu0 %v525_v38 }
 0x2b0   :  { %5109 = vmatpush3.bf16.msra.mxu1 %v5409_v35  ;;  %5115 = vmatpush3.bf16.msra.mxu0 %v5410_v36  ;;  %v558_v35 = vld [vmem:[%s7674_s11] sm:$0xf] }
 0x2b1   :  { %5110 = vmatprep.mubr.msk.bf16.mxu1 %vm5712_vm0, %v7681_v0  ;;  %5116 = vmatprep.mubr.msk.bf16.mxu0 %vm5712_vm0, %v7681_v0 }
 0x2b2   :  { %5120 = vmatprep.subr.bf16.mxu1 %v7681_v0  ;;  %5126 = vmatprep.subr.bf16.mxu0 %v7681_v0 }
 0x2b7   :  { %5111 = vmatmul.mubr.msk.bf16.vlgmr.msra.gmra.mxu1 %vm142_vm1, %v841_v42  ;;  %5117 = vmatmul.mubr.msk.bf16.vlgmr.msra.gmra.mxu0 %vm142_vm1, %v829_v43 }
 0x2b8   :  { %5121 = vmatpush3.bf16.msra.mxu1 %v5411_v44  ;;  %5122 = vmatprep.mubr.msk.bf16.mxu1 %vm5712_vm0, %v7681_v0 }
 0x2b9   :  { %5127 = vmatpush3.bf16.msra.mxu0 %v5412_v45  ;;  %5142 = vmatprep.mubr.msk.bf16.mxu0 %vm5712_vm0, %v7681_v0 }
 0x2ba   :  { %5128 = vmatprep.subr.bf16.mxu0 %v7681_v0  ;;  %5146 = vmatprep.subr.bf16.mxu1 %v7681_v0 }
 0x2bd   :  { %5129 = vmatpush3.bf16.msra.mxu0 %v5413_v46 }
 0x2be   :  { %5130 = vmatprep.subr.bf16.mxu0 %v7681_v0 }
 0x2bf   :  { %5123 = vmatmul.mubr.msk.bf16.vlgmr.msra.gmra.mxu1 %vm142_vm1, %v943_v63 }
 0x2c0   :  { %5162 = vmatprep.mubr.msk.bf16.mxu1 %vm5712_vm0, %v7681_v0  ;;  %5147 = vmatpush3.bf16.msra.mxu1 %v5420_v25 }
 0x2c1   :  { %5131 = vmatpush3.bf16.msra.mxu0 %v5414_v1  ;;  %5148 = vmatprep.subr.bf16.mxu1 %v7681_v0 }
 0x2c2   :  { %5132 = vmatprep.subr.bf16.mxu0 %v7681_v0 }
 0x2c4   :  { %5149 = vmatpush3.bf16.msra.mxu1 %v5421_v26 }
 0x2c5   :  { %5133 = vmatpush3.bf16.msra.mxu0 %v5415_v2  ;;  %5150 = vmatprep.subr.bf16.mxu1 %v7681_v0 }
 0x2c6   :  { %5134 = vmatprep.subr.bf16.mxu0 %v7681_v0 }
 0x2c8   :  { %5151 = vmatpush3.bf16.msra.mxu1 %v5422_v28 }
 0x2c9   :  { %5135 = vmatpush3.bf16.msra.mxu0 %v5416_v3  ;;  %5152 = vmatprep.subr.bf16.mxu1 %v7681_v0 }
 0x2ca   :  { %5136 = vmatprep.subr.bf16.mxu0 %v7681_v0 }
 0x2cc   :  { %5153 = vmatpush3.bf16.msra.mxu1 %v5423_v29 }
 0x2cd   :  { %5137 = vmatpush3.bf16.msra.mxu0 %v5417_v4  ;;  %5154 = vmatprep.subr.bf16.mxu1 %v7681_v0 }
 0x2ce   :  { %5138 = vmatprep.subr.bf16.mxu0 %v7681_v0 }
 0x2d0   :  { %5155 = vmatpush3.bf16.msra.mxu1 %v5424_v30 }
 0x2d1   :  { %5139 = vmatpush3.bf16.msra.mxu0 %v5418_v6  ;;  %5156 = vmatprep.subr.bf16.mxu1 %v7681_v0 }
 0x2d2   :  { %5140 = vmatprep.subr.bf16.mxu0 %v7681_v0 }
 0x2d4   :  { %5157 = vmatpush3.bf16.msra.mxu1 %v5425_v31 }
 0x2d5   :  { %5141 = vmatpush3.bf16.msra.mxu0 %v5419_v8  ;;  %5158 = vmatprep.subr.bf16.mxu1 %v7681_v0 }
 0x2d6   :  { %1444 = vmatprep.subr.bf16.mxu0 %v5872_v48  ;;  %v560_v48 = vlaneseq }
 0x2d8   :  { %v6018_v32 = vshrl.u32 %v560_v48, 7 }
 0x2da   :  { %v6021_v33 = vsub.s32 0, %v6018_v32  ;;  %v6024_v34 = vsub.s32 2, %v6018_v32  ;;  %v6030_v36 = vsub.s32 1, %v6018_v32  ;;  %v6033_v38 = vsub.s32 3, %v6018_v32 }
 0x2db   :  { %vm1535_vm2 = vcmp.eq.s32.totalorder %v6018_v32, 0  ;;  %vm1564_vm3 = vcmp.eq.s32.totalorder %v6018_v32, 1 }
 0x2dc   :  { %v563_v39 = vrot.slane %v558_v35, %v6021_v33  ;;  %v571_v40 = vrot.slane %v558_v35, %v6024_v34  ;;  %v567_v41 = vrot.slane %v558_v35, %v6030_v36  ;;  %v575_v42 = vrot.slane %v558_v35, %v6033_v38 }
 0x36f   :  { %v774_v43 = vpop.f32.mrf.mxu1  ;;  %v815_v44 = vpop.f32.mrf.mxu0 }
 0x370   :  { %v775_v45 = vadd.f32 %v774_v43, %v563_v39  ;;  %v816_v46 = vadd.f32 %v815_v44, %v571_v40 }
 0x371   :  { %v776_v63 = vpop.f32.mrf.mxu1  ;;  %v817_v1 = vpop.f32.mrf.mxu0 }
 0x372   :  { %822 = vst [vmem:[#allocation2] sm:$0xff] %v775_v45  ;;  %824 = vst [vmem:[#allocation2 + $0x10] sm:$0xff] %v816_v46  ;;  %v777_v2 = vadd.f32 %v776_v63, %v567_v41  ;;  %v818_v3 = vadd.f32 %v817_v1, %v575_v42 }
 0x373   :  { %v778_v4 = vpop.f32.mrf.mxu1  ;;  %v819_v6 = vpop.f32.mrf.mxu0 }
 0x374   :  { %823 = vst [vmem:[#allocation2 + $0x8] sm:$0xff] %v777_v2  ;;  %825 = vst [vmem:[#allocation2 + $0x18] sm:$0xff] %v818_v3  ;;  %v6128_v2 = vld [vmem:[#allocation12 + $0x170] sm:$0xff]  ;;  %v6132_v3 = vld [vmem:[#allocation12 + $0x148] sm:$0xff] }
 0x375   :  { %v779_v8 = vpop.f32.mrf.mxu1  ;;  %v820_v25 = vpop.f32.mrf.mxu0  ;;  %7784 = vst [vmem:[#allocation28_spill] sm:$0xff] %v6132_v3  ;;  %v6134_v4 = vld [vmem:[#allocation12 + $0x158] sm:$0xff]  ;;  %v6138_v6 = vld [vmem:[#allocation12 + $0x140] sm:$0xff] }
 0x376   :  { %7785 = vst [vmem:[#allocation29_spill] sm:$0xff] %v6138_v6  ;;  %v6140_v8 = vld [vmem:[#allocation12 + $0x150] sm:$0xff]  ;;  %v6144_v25 = vld [vmem:[#allocation12 + $0x128] sm:$0xff] }
 0x377   :  { %v885_v26 = vpop.f32.mrf.mxu1  ;;  %v934_v28 = vpop.f32.mrf.mxu0  ;;  %7786 = vst [vmem:[#allocation30_spill] sm:$0xff] %v6144_v25 }
 0x378   :  { %v935_v40 = vadd.f32 %v934_v28, %v885_v26  ;;  %v6146_v26 = vld [vmem:[#allocation12 + $0x138] sm:$0xff]  ;;  %v6150_v28 = vld [vmem:[#allocation12 + $0x120] sm:$0xff] }
 0x379   :  { %v5112_v29 = vpop.f32.mrf.mxu1  ;;  %v5118_v30 = vpop.f32.mrf.mxu0  ;;  %7787 = vst [vmem:[#allocation31_spill] sm:$0xff] %v6150_v28 }
 0x37a   :  { %v6152_v29 = vld [vmem:[#allocation12 + $0x130] sm:$0xff]  ;;  %v6156_v30 = vld [vmem:[#allocation12 + $0x108] sm:$0xff] }
 0x37b   :  { %v888_v31 = vpop.f32.mrf.mxu1  ;;  %v937_v48 = vpop.f32.mrf.mxu0  ;;  %7788 = vst [vmem:[#allocation32_spill] sm:$0xff] %v6156_v30 }
 0x37c   :  { %v6158_v31 = vld [vmem:[#allocation12 + $0x118] sm:$0xff]  ;;  %v6162_v48 = vld [vmem:[#allocation12 + $0x100] sm:$0xff] }
 0x37d   :  { %v5113_v35 = vpop.f32.mrf.mxu1  ;;  %v5119_v39 = vpop.f32.mrf.mxu0  ;;  %7789 = vst [vmem:[#allocation33_spill] sm:$0xff] %v6162_v48 }
 0x37e   :  { %v6164_v35 = vld [vmem:[#allocation12 + $0x110] sm:$0xff]  ;;  %v6168_v39 = vld [vmem:[#allocation12 + $0xe8] sm:$0xff] }
 0x37f   :  { %v987_v43 = vpop.f32.mrf.mxu1  ;;  %7790 = vst [vmem:[#allocation34_spill] sm:$0xff] %v6168_v39 }
 0x380   :  { %v993_v44 = vadd.f32 %v987_v43, %v935_v40  ;;  %v6170_v40 = vld [vmem:[#allocation12 + $0xf8] sm:$0xff]  ;;  %v6174_v43 = vld [vmem:[#allocation12 + $0xe0] sm:$0xff] }
 0x381   :  { %v5124_v45 = vpop.f32.mrf.mxu1  ;;  %7791 = vst [vmem:[#allocation35_spill] sm:$0xff] %v6174_v43 }
 0x382   :  { %v1001_v41 = vadd.f32 %v5866_v37, %v993_v44  ;;  %v5426_v37 = vld [vmem:[#allocation9 + $0x8] sm:$0xff]   ;;  %v6176_v44 = vld [vmem:[#allocation12 + $0xf0] sm:$0xff] }
 0x383   :  { %v990_v42 = vpop.f32.mrf.mxu1  ;;  %5159 = vmatpush3.bf16.msra.mxu1 %v5426_v37  ;;  %v6180_v45 = vld [vmem:[#allocation12 + $0xc8] sm:$0xff]  ;;  %v6198_v37 = vld [vmem:[#allocation12 + $0xa0] sm:$0xff] }
 0x384   :  { %v1002_v46 = vmax.f32 %v1001_v41, 0.0  ;;  %5160 = vmatprep.subr.bf16.mxu1 %v7681_v0  ;;  %7792 = vst [vmem:[#allocation36_spill] sm:$0xff] %v6180_v45  ;;  %v6182_v41 = vld [vmem:[#allocation12 + $0xd8] sm:$0xff]  ;;  %v6186_v42 = vld [vmem:[#allocation12 + $0xc0] sm:$0xff]  ;;  %7798 = vst [vmem:[#allocation42_spill] sm:$0xff] %v6198_v37 }
 0x385   :  { %v5125_v63 = vpop.f32.mrf.mxu1  ;;  %7793 = vst [vmem:[#allocation37_spill] sm:$0xff] %v6182_v41  ;;  %7794 = vst [vmem:[#allocation38_spill] sm:$0xff] %v6186_v42  ;;  %v6246_v0 = vld [vmem:[#allocation12 + $0x20] sm:$0xff] }
 0x386   :  { %v1003_v1 = vpack.c.bf16 %v1002_v46, %v1002_v46  ;;  %v6188_v46 = vld [vmem:[#allocation12 + $0xd0] sm:$0xff]  ;;  %v6192_v63 = vld [vmem:[#allocation12 + $0xa8] sm:$0xff]  ;;  %7814 = vst [vmem:[#allocation58_spill] sm:$0xff] %v6246_v0 }
 0x387   :  { %7795 = vst [vmem:[#allocation39_spill] sm:$0xff] %v6188_v46  ;;  %7796 = vst [vmem:[#allocation40_spill] sm:$0xff] %v6192_v63 }
 0x388   :  { %5143 = vmatmul.mubr.bf16.vlgmr.msra.gmra.mxu0 %v1003_v1  ;;  %v6194_v1 = vld [vmem:[#allocation12 + $0xb8] sm:$0xff] }
 0x389   :  { %1445 = vmatpush1.bf16.msra.mxu0 %v5870_v47  ;;  %1476 = vmatprep.mubr.bf16.mxu0 %v5713_v24  ;;  %v5427_v47 = vld [vmem:[#allocation9] sm:$0xff]   ;;  %7797 = vst [vmem:[#allocation41_spill] sm:$0xff] %v6194_v1 }
 0x38a   :  { %1446 = vmatprep.subr.bf16.mxu0 %v5876_v50  ;;  %5161 = vmatpush3.bf16.msra.mxu1 %v5427_v47  ;;  %v6200_v47 = vld [vmem:[#allocation12 + $0xb0] sm:$0xff] }
 0x38b   :  { %1485 = vmatprep.subr.bf16.mxu1 %v5874_v49  ;;  %v6075_v49 = vld [vmem:[#allocation12 + $0x1e8] sm:$0xff]  ;;  %7799 = vst [vmem:[#allocation43_spill] sm:$0xff] %v6200_v47 }
 0x38c   :  { %7774 = vst [vmem:[#allocation18_spill] sm:$0xff] %v6075_v49 }
 0x38d   :  { %1447 = vmatpush1.bf16.msra.mxu0 %v5881_v51 }
 0x38e   :  { %1448 = vmatprep.subr.bf16.mxu0 %v5884_v52 }
 0x391   :  { %1449 = vmatpush1.bf16.msra.mxu0 %v5887_v53 }
 0x392   :  { %1450 = vmatprep.subr.bf16.mxu0 %v5890_v54 }
 0x395   :  { %1451 = vmatpush1.bf16.msra.mxu0 %v5893_v55 }
 0x396   :  { %1452 = vmatprep.subr.bf16.mxu0 %v5896_v56 }
 0x399   :  { %1453 = vmatpush1.bf16.msra.mxu0 %v5899_v57  ;;  %v6077_v57 = vld [vmem:[#allocation12 + $0x1f8] sm:$0xff] }
 0x39a   :  { %1454 = vmatprep.subr.bf16.mxu0 %v5902_v58 }
 0x39d   :  { %1455 = vmatpush1.bf16.msra.mxu0 %v5905_v59 }
 0x39e   :  { %1456 = vmatprep.subr.bf16.mxu0 %v5908_v60 }
 0x3a1   :  { %1457 = vmatpush1.bf16.msra.mxu0 %v5911_v61 }
 0x3a2   :  { %1458 = vmatprep.subr.bf16.mxu0 %v5960_v20  ;;  %v6110_v20 = vld [vmem:[#allocation12 + $0x198] sm:$0xff] }
 0x3a5   :  { %1459 = vmatpush1.bf16.msra.mxu0 %v5964_v22  ;;  %v6116_v22 = vld [vmem:[#allocation12 + $0x190] sm:$0xff] }
 0x3a6   :  { %1656 = vmatprep.subr.mxu0 %v6075_v49 }
 0x448   :  { %v1109_v50 = vpop.f32.mrf.mxu0 }
 0x449   :  { %v1110_v51 = vadd.f32 %v5918_v62, %v1109_v50  ;;  %v6204_v50 = vld [vmem:[#allocation12 + $0x88] sm:$0xff] }
 0x44a   :  { %v5144_v52 = vpop.f32.mrf.mxu0  ;;  %7800 = vst [vmem:[#allocation44_spill] sm:$0xff] %v6204_v50 }
 0x44b   :  { %v1115_v53 = vmax.f32 %v1110_v51, 0.0  ;;  %v6206_v51 = vld [vmem:[#allocation12 + $0x98] sm:$0xff]  ;;  %v6210_v52 = vld [vmem:[#allocation12 + $0x80] sm:$0xff] }
 0x44c   :  { %v1112_v54 = vpop.f32.mrf.mxu0  ;;  %7801 = vst [vmem:[#allocation45_spill] sm:$0xff] %v6206_v51  ;;  %7802 = vst [vmem:[#allocation46_spill] sm:$0xff] %v6210_v52 }
 0x44d   :  { %v1116_v55 = vpack.c.bf16 %v1115_v53, %v1115_v53  ;;  %v6212_v53 = vld [vmem:[#allocation12 + $0x90] sm:$0xff]  ;;  %v6216_v54 = vld [vmem:[#allocation12 + $0x68] sm:$0xff] }
 0x44e   :  { %v5145_v56 = vpop.f32.mrf.mxu0  ;;  %7803 = vst [vmem:[#allocation47_spill] sm:$0xff] %v6212_v53  ;;  %7804 = vst [vmem:[#allocation48_spill] sm:$0xff] %v6216_v54 }
 0x44f   :  { %5163 = vmatmul.mubr.bf16.vlgmr.msra.gmra.mxu1 %v1116_v55  ;;  %v6218_v55 = vld [vmem:[#allocation12 + $0x78] sm:$0xff]  ;;  %v6222_v56 = vld [vmem:[#allocation12 + $0x60] sm:$0xff] }
 0x450   :  { %1486 = vmatpush1.bf16.msra.mxu1 %v5921_v5  ;;  %1517 = vmatprep.mubr.bf16.mxu1 %v5713_v24  ;;  %v6122_v24 = vld [vmem:[#allocation12 + $0x178] sm:$0xff]  ;;  %7805 = vst [vmem:[#allocation49_spill] sm:$0xff] %v6218_v55  ;;  %7806 = vst [vmem:[#allocation50_spill] sm:$0xff] %v6222_v56 }
 0x451   :  { %1487 = vmatprep.subr.bf16.mxu1 %v5923_v7  ;;  %v6082_v7 = vld [vmem:[#allocation12 + $0x1e0] sm:$0xff] }
 0x452   :  { %7775 = vst [vmem:[#allocation19_spill] sm:$0xff] %v6082_v7 }
 0x454   :  { %1488 = vmatpush1.bf16.msra.mxu1 %v5926_v9  ;;  %v6084_v9 = vld [vmem:[#allocation12 + $0x1f0] sm:$0xff] }
 0x455   :  { %1489 = vmatprep.subr.bf16.mxu1 %v5929_v10 }
 0x458   :  { %1490 = vmatpush1.bf16.msra.mxu1 %v5932_v11  ;;  %v6086_v11 = vld [vmem:[#allocation12 + $0x1c8] sm:$0xff] }
 0x459   :  { %1491 = vmatprep.subr.bf16.mxu1 %v5935_v12  ;;  %7776 = vst [vmem:[#allocation20_spill] sm:$0xff] %v6086_v11  ;;  %v6088_v12 = vld [vmem:[#allocation12 + $0x1d8] sm:$0xff] }
 0x45c   :  { %1492 = vmatpush1.bf16.msra.mxu1 %v5938_v13  ;;  %v6090_v13 = vld [vmem:[#allocation12 + $0x1c0] sm:$0xff] }
 0x45d   :  { %1493 = vmatprep.subr.bf16.mxu1 %v5941_v14  ;;  %7777 = vst [vmem:[#allocation21_spill] sm:$0xff] %v6090_v13  ;;  %v6092_v14 = vld [vmem:[#allocation12 + $0x1d0] sm:$0xff] }
 0x460   :  { %1494 = vmatpush1.bf16.msra.mxu1 %v5944_v15  ;;  %v6096_v15 = vld [vmem:[#allocation12 + $0x1a8] sm:$0xff] }
 0x461   :  { %1495 = vmatprep.subr.bf16.mxu1 %v5947_v16  ;;  %7778 = vst [vmem:[#allocation22_spill] sm:$0xff] %v6096_v15  ;;  %v6098_v16 = vld [vmem:[#allocation12 + $0x1b8] sm:$0xff] }
 0x464   :  { %1496 = vmatpush1.bf16.msra.mxu1 %v5950_v17  ;;  %v6102_v17 = vld [vmem:[#allocation12 + $0x1a0] sm:$0xff] }
 0x465   :  { %1497 = vmatprep.subr.bf16.mxu1 %v5953_v18  ;;  %7779 = vst [vmem:[#allocation23_spill] sm:$0xff] %v6102_v17  ;;  %v6104_v18 = vld [vmem:[#allocation12 + $0x1b0] sm:$0xff] }
 0x468   :  { %1498 = vmatpush1.bf16.msra.mxu1 %v5956_v19  ;;  %v6108_v19 = vld [vmem:[#allocation12 + $0x188] sm:$0xff] }
 0x469   :  { %1499 = vmatprep.subr.bf16.mxu1 %v5962_v21  ;;  %7780 = vst [vmem:[#allocation24_spill] sm:$0xff] %v6108_v19  ;;  %v6114_v21 = vld [vmem:[#allocation12 + $0x180] sm:$0xff] }
 0x46a   :  { %7781 = vst [vmem:[#allocation25_spill] sm:$0xff] %v6114_v21 }
 0x46c   :  { %1500 = vmatpush1.bf16.msra.mxu1 %v5966_v23  ;;  %v6120_v23 = vld [vmem:[#allocation12 + $0x168] sm:$0xff] }
 0x46d   :  { %1727 = vmatprep.subr.mxu1 %v6077_v57  ;;  %7782 = vst [vmem:[#allocation26_spill] sm:$0xff] %v6120_v23 }
 0x50f   :  { %v1222_v58 = vpop.f32.mrf.mxu1 }
 0x510   :  { %v1223_v59 = vadd.f32 %v5985_v27, %v1222_v58  ;;  %v6126_v27 = vld [vmem:[#allocation12 + $0x160] sm:$0xff]  ;;  %v6224_v58 = vld [vmem:[#allocation12 + $0x70] sm:$0xff] }
 0x511   :  { %v5164_v60 = vpop.f32.mrf.mxu1  ;;  %7783 = vst [vmem:[#allocation27_spill] sm:$0xff] %v6126_v27  ;;  %7807 = vst [vmem:[#allocation51_spill] sm:$0xff] %v6224_v58 }
 0x512   :  { %v1228_v61 = vmax.f32 %v1223_v59, 0.0  ;;  %v6228_v59 = vld [vmem:[#allocation12 + $0x48] sm:$0xff]  ;;  %v6230_v60 = vld [vmem:[#allocation12 + $0x58] sm:$0xff] }
 0x513   :  { %v1225_v62 = vpop.f32.mrf.mxu1  ;;  %7808 = vst [vmem:[#allocation52_spill] sm:$0xff] %v6228_v59  ;;  %7809 = vst [vmem:[#allocation53_spill] sm:$0xff] %v6230_v60 }
 0x514   :  { %v1229_v5 = vpack.c.bf16 %v1228_v61, %v1228_v61  ;;  %v6234_v61 = vld [vmem:[#allocation12 + $0x40] sm:$0xff]  ;;  %v6236_v62 = vld [vmem:[#allocation12 + $0x50] sm:$0xff] }
 0x515   :  { %v5165_v10 = vpop.f32.mrf.mxu1  ;;  %7810 = vst [vmem:[#allocation54_spill] sm:$0xff] %v6234_v61  ;;  %7811 = vst [vmem:[#allocation55_spill] sm:$0xff] %v6236_v62 }
 0x516   :  { %1477 = vmatmul.mubr.bf16.vlgmr.msra.gmra.mxu0 %v1229_v5  ;;  %1518 = vmatmul.mubr.bf16.vlgmr.msra.gmra.mxu1 %v1229_v5  ;;  %v6240_v5 = vld [vmem:[#allocation12 + $0x28] sm:$0xff]  ;;  %v6242_v10 = vld [vmem:[#allocation12 + $0x38] sm:$0xff] }
 0x517   :  { %1657 = vmatpush1.msra.mxu0 %v6082_v7  ;;  %1728 = vmatpush1.msra.mxu1 %v6084_v9  ;;  %7812 = vst [vmem:[#allocation56_spill] sm:$0xff] %v6240_v5  ;;  %7813 = vst [vmem:[#allocation57_spill] sm:$0xff] %v6242_v10 }
 0x518   :  { %1658 = vmatprep.subr.mxu0 %v6086_v11  ;;  %1729 = vmatprep.subr.mxu1 %v6088_v12 }
 0x519   :  { %1659 = vmatpush1.msra.mxu0 %v6090_v13  ;;  %1730 = vmatpush1.msra.mxu1 %v6092_v14 }
 0x51a   :  { %1660 = vmatprep.subr.mxu0 %v6096_v15  ;;  %1731 = vmatprep.subr.mxu1 %v6098_v16 }
 0x51b   :  { %1661 = vmatpush1.msra.mxu0 %v6102_v17  ;;  %1732 = vmatpush1.msra.mxu1 %v6104_v18 }
 0x51c   :  { %1662 = vmatprep.subr.mxu0 %v6108_v19  ;;  %1733 = vmatprep.subr.mxu1 %v6110_v20 }
 0x51d   :  { %1663 = vmatpush1.msra.mxu0 %v6114_v21  ;;  %1734 = vmatpush1.msra.mxu1 %v6116_v22 }
 0x51e   :  { %1664 = vmatprep.subr.mxu0 %v6120_v23  ;;  %1735 = vmatprep.subr.mxu1 %v6122_v24 }
 0x51f   :  { %1665 = vmatpush1.msra.mxu0 %v6126_v27  ;;  %1736 = vmatpush1.msra.mxu1 %v6128_v2 }
 0x520   :  { %1666 = vmatprep.subr.mxu0 %v6132_v3  ;;  %1737 = vmatprep.subr.mxu1 %v6134_v4 }
 0x521   :  { %1667 = vmatpush1.msra.mxu0 %v6138_v6  ;;  %1738 = vmatpush1.msra.mxu1 %v6140_v8 }
 0x522   :  { %1668 = vmatprep.subr.mxu0 %v6144_v25  ;;  %1739 = vmatprep.subr.mxu1 %v6146_v26 }
 0x523   :  { %1669 = vmatpush1.msra.mxu0 %v6150_v28  ;;  %1740 = vmatpush1.msra.mxu1 %v6152_v29 }
 0x524   :  { %1670 = vmatprep.subr.mxu0 %v6156_v30  ;;  %1741 = vmatprep.subr.mxu1 %v6158_v31 }
 0x525   :  { %1671 = vmatpush1.msra.mxu0 %v6162_v48  ;;  %1742 = vmatpush1.msra.mxu1 %v6164_v35 }
 0x526   :  { %1672 = vmatprep.subr.mxu0 %v6168_v39  ;;  %1743 = vmatprep.subr.mxu1 %v6170_v40 }
 0x527   :  { %1673 = vmatpush1.msra.mxu0 %v6174_v43  ;;  %1744 = vmatpush1.msra.mxu1 %v6176_v44 }
 0x528   :  { %1674 = vmatprep.subr.mxu0 %v6180_v45  ;;  %1745 = vmatprep.subr.mxu1 %v6182_v41 }
 0x529   :  { %1675 = vmatpush1.msra.mxu0 %v6186_v42  ;;  %1746 = vmatpush1.msra.mxu1 %v6188_v46 }
 0x52a   :  { %1676 = vmatprep.subr.mxu0 %v6192_v63  ;;  %1747 = vmatprep.subr.mxu1 %v6194_v1 }
 0x52b   :  { %1677 = vmatpush1.msra.mxu0 %v6198_v37  ;;  %1748 = vmatpush1.msra.mxu1 %v6200_v47  ;;  %v7820_v47 = vmov 0.0  }
 0x52c   :  { %1678 = vmatprep.subr.mxu0 %v6204_v50  ;;  %1749 = vmatprep.subr.mxu1 %v6206_v51  ;;  %v6254_v51 = vld [vmem:[#allocation12 + $0x18] sm:$0xff] }
 0x52d   :  { %1679 = vmatpush1.msra.mxu0 %v6210_v52  ;;  %1750 = vmatpush1.msra.mxu1 %v6212_v53  ;;  %v6248_v53 = vld [vmem:[#allocation12 + $0x30] sm:$0xff]  ;;  %7817 = vst [vmem:[#allocation61_spill] sm:$0xff] %v6254_v51 }
 0x52e   :  { %1680 = vmatprep.subr.mxu0 %v6216_v54  ;;  %1751 = vmatprep.subr.mxu1 %v6218_v55  ;;  %7815 = vst [vmem:[#allocation59_spill] sm:$0xff] %v6248_v53  ;;  %v6252_v55 = vld [vmem:[#allocation12 + $0x8] sm:$0xff] }
 0x52f   :  { %1681 = vmatpush1.msra.mxu0 %v6222_v56  ;;  %1752 = vmatpush1.msra.mxu1 %v6224_v58  ;;  %7816 = vst [vmem:[#allocation60_spill] sm:$0xff] %v6252_v55  ;;  %v6258_v58 = vld [vmem:[#allocation12] sm:$0xff] }
 0x530   :  { %1682 = vmatprep.subr.mxu0 %v6228_v59  ;;  %1753 = vmatprep.subr.mxu1 %v6230_v60  ;;  %7818 = vst [vmem:[#allocation62_spill] sm:$0xff] %v6258_v58  ;;  %v6262_v60 = vld [vmem:[#allocation12 + $0x10] sm:$0xff] }
 0x531   :  { %1683 = vmatpush1.msra.mxu0 %v6234_v61  ;;  %1754 = vmatpush1.msra.mxu1 %v6236_v62  ;;  %7819 = vst [vmem:[#allocation63_spill] sm:$0xff] %v6262_v60  ;;  %v1532_v62 = vld [vmem:[%s7664_s1] sm:$0x3] }
 0x532   :  { %1684 = vmatprep.subr.mxu0 %v6240_v5  ;;  %1755 = vmatprep.subr.mxu1 %v6242_v10 }
 0x533   :  { %1685 = vmatpush1.msra.mxu0 %v6246_v0  ;;  %1756 = vmatpush1.msra.mxu1 %v6248_v53 }
 0x534   :  { %1686 = vmatprep.subr.mxu0 %v6252_v55  ;;  %1757 = vmatprep.subr.mxu1 %v6254_v51 }
 0x535   :  { %1687 = vmatpush1.msra.mxu0 %v6258_v58  ;;  %1720 = vmatprep.mubr.f32.mxu0 %v7820_v47 }
 0x536   :  { %1758 = vmatpush1.msra.mxu1 %v6262_v60  ;;  %1791 = vmatprep.mubr.f32.mxu1 %v7820_v47 }
 0x537   :  { %1721 = vmatmul.mubr.f32.vlgmr.msra.gmra.mxu0 %v1532_v62  ;;  %1792 = vmatmul.mubr.f32.vlgmr.msra.gmra.mxu1 %v1532_v62  ;;  %v5428_v62 = vld [vmem:[%s7675_s12 + $0x38] sm:$0xff]  }
 0x538   :  { %2052 = vmatprep.subr.mxu1 %v6075_v49  ;;  %5166 = vmatprep.subr.bf16.mxu0 %v7820_v47 }
 0x539   :  { %2053 = vmatpush1.msra.mxu1 %v6082_v7  ;;  %2116 = vmatprep.mubr.f32.mxu1 %v7820_v47 }
 0x53a   :  { %2054 = vmatprep.subr.mxu1 %v6086_v11  ;;  %5182 = vmatprep.mubr.msk.bf16.mxu0 %vm5712_vm0, %v7820_v47 }
 0x53b   :  { %2055 = vmatpush1.msra.mxu1 %v6090_v13  ;;  %5167 = vmatpush3.bf16.msra.mxu0 %v5428_v62  ;;  %v5431_v62 = vld [vmem:[%s7675_s12 + $0x20] sm:$0xff]  }
 0x53c   :  { %2056 = vmatprep.subr.mxu1 %v6096_v15  ;;  %5168 = vmatprep.subr.bf16.mxu0 %v7820_v47 }
 0x53d   :  { %2057 = vmatpush1.msra.mxu1 %v6102_v17 }
 0x53e   :  { %2058 = vmatprep.subr.mxu1 %v6108_v19 }
 0x53f   :  { %2059 = vmatpush1.msra.mxu1 %v6114_v21 }
 0x540   :  { %2060 = vmatprep.subr.mxu1 %v6120_v23 }
 0x541   :  { %2061 = vmatpush1.msra.mxu1 %v6126_v27 }
 0x542   :  { %2062 = vmatprep.subr.mxu1 %v6132_v3 }
 0x543   :  { %2063 = vmatpush1.msra.mxu1 %v6138_v6 }
 0x544   :  { %2064 = vmatprep.subr.mxu1 %v6144_v25  ;;  %v3126_v25 = vld [vmem:[#allocation2 + $0x4] ss:$8 sm:$0xf] }
 0x545   :  { %2065 = vmatpush1.msra.mxu1 %v6150_v28 }
 0x546   :  { %2066 = vmatprep.subr.mxu1 %v6156_v30 }
 0x547   :  { %2067 = vmatpush1.msra.mxu1 %v6162_v48 }
 0x548   :  { %2068 = vmatprep.subr.mxu1 %v6168_v39 }
 0x549   :  { %2069 = vmatpush1.msra.mxu1 %v6174_v43 }
 0x54a   :  { %2070 = vmatprep.subr.mxu1 %v6180_v45 }
 0x54b   :  { %2071 = vmatpush1.msra.mxu1 %v6186_v42 }
 0x54c   :  { %2072 = vmatprep.subr.mxu1 %v6192_v63 }
 0x54d   :  { %2073 = vmatpush1.msra.mxu1 %v6198_v37 }
 0x54e   :  { %2074 = vmatprep.subr.mxu1 %v6204_v50 }
 0x54f   :  { %2075 = vmatpush1.msra.mxu1 %v6210_v52  ;;  %v2729_v52 = vld [vmem:[#allocation2 + $0x3] ss:$8 sm:$0xf] }
 0x550   :  { %2076 = vmatprep.subr.mxu1 %v6216_v54  ;;  %v2734_v28 = vrot.slane %v2729_v52, %v6021_v33 }
 0x551   :  { %2077 = vmatpush1.msra.mxu1 %v6222_v56 }
 0x552   :  { %2078 = vmatprep.subr.mxu1 %v6228_v59  ;;  %v2332_v59 = vld [vmem:[#allocation2 + $0x2] ss:$8 sm:$0xf] }
 0x553   :  { %2079 = vmatpush1.msra.mxu1 %v6234_v61  ;;  %v5429_v61 = vld [vmem:[%s7675_s12 + $0x30] sm:$0xff]   ;;  %v2337_v42 = vrot.slane %v2332_v59, %v6021_v33  ;;  %v2341_v45 = vrot.slane %v2332_v59, %v6030_v36  ;;  %v2345_v43 = vrot.slane %v2332_v59, %v6024_v34  ;;  %v2349_v30 = vrot.slane %v2332_v59, %v6033_v38 }
 0x554   :  { %2080 = vmatprep.subr.mxu1 %v6240_v5  ;;  %5169 = vmatpush3.bf16.msra.mxu0 %v5429_v61  ;;  %v5433_v61 = vld [vmem:[%s7675_s12 + $0x10] sm:$0xff]   ;;  %v2742_v59 = vrot.slane %v2729_v52, %v6024_v34 }
 0x555   :  { %2081 = vmatpush1.msra.mxu1 %v6246_v0  ;;  %5170 = vmatprep.subr.bf16.mxu0 %v7820_v47 }
 0x556   :  { %2082 = vmatprep.subr.mxu1 %v6252_v55  ;;  %v5432_v55 = vld [vmem:[%s7675_s12 + $0x18] sm:$0xff]  }
 0x557   :  { %2083 = vmatpush1.msra.mxu1 %v6258_v58  ;;  %v5430_v58 = vld [vmem:[%s7675_s12 + $0x28] sm:$0xff]  }
 0x558   :  { %5186 = vmatprep.subr.bf16.mxu1 %v7820_v47  ;;  %5171 = vmatpush3.bf16.msra.mxu0 %v5430_v58  ;;  %v5434_v58 = vld [vmem:[%s7675_s12 + $0x8] sm:$0xff]  }
 0x559   :  { %5172 = vmatprep.subr.bf16.mxu0 %v7820_v47 }
 0x55c   :  { %5173 = vmatpush3.bf16.msra.mxu0 %v5431_v62  ;;  %v5435_v62 = vld [vmem:[%s7675_s12] sm:$0xff]  }
 0x55d   :  { %5174 = vmatprep.subr.bf16.mxu0 %v7820_v47 }
 0x560   :  { %5175 = vmatpush3.bf16.msra.mxu0 %v5432_v55  ;;  %v1262_v55 = vld [vmem:[%s7674_s11] sm:$0xf] }
 0x561   :  { %5176 = vmatprep.subr.bf16.mxu0 %v7820_v47  ;;  %v1267_v0 = vrot.slane %v1262_v55, %v6021_v33  ;;  %v1275_v5 = vrot.slane %v1262_v55, %v6024_v34 }
 0x564   :  { %5177 = vmatpush3.bf16.msra.mxu0 %v5433_v61  ;;  %v1935_v61 = vld [vmem:[#allocation2 + $0x1] ss:$8 sm:$0xf] }
 0x565   :  { %5178 = vmatprep.subr.bf16.mxu0 %v7820_v47  ;;  %v1944_v56 = vrot.slane %v1935_v61, %v6030_v36  ;;  %v1948_v54 = vrot.slane %v1935_v61, %v6024_v34  ;;  %v1952_v63 = vrot.slane %v1935_v61, %v6033_v38 }
 0x567   :  { %v6369_v27 = vsel %vm1535_vm2, %v1948_v54, 0.0  ;;  %v6378_v54 = vsel %vm1535_vm2, %v2337_v42, 0.0  ;;  %v3135_v42 = vrot.slane %v3126_v25, %v6030_v36 }
 0x568   :  { %5179 = vmatpush3.bf16.msra.mxu0 %v5434_v58  ;;  %v1940_v58 = vrot.slane %v1935_v61, %v6021_v33  ;;  %v6365_v61 = vsel %vm1535_vm2, %v1944_v56, 0.0  ;;  %v1960_v56 = vsel %vm1535_vm2, %v1952_v63, 0.0 }
 0x569   :  { %5180 = vmatprep.subr.bf16.mxu0 %v7820_v47 }
 0x56a   :  { %v6361_v3 = vsel %vm1535_vm2, %v1940_v58, 0.0  ;;  %v3523_v58 = vld [vmem:[#allocation2 + $0x5] ss:$8 sm:$0xf] }
 0x56c   :  { %5181 = vmatpush3.bf16.msra.mxu0 %v5435_v62  ;;  %v1271_v62 = vrot.slane %v1262_v55, %v6030_v36 }
 0x56d   :  { %2123 = vmatprep.subr.mxu0 %v6077_v57  ;;  %v1279_v57 = vrot.slane %v1262_v55, %v6033_v38 }
 0x5d6   :  { %v1478_v50 = vpop.f32.mrf.mxu0  ;;  %v1519_v37 = vpop.f32.mrf.mxu1 }
 0x5d7   :  { %v1479_v39 = vadd.f32 %v1478_v50, %v1267_v0  ;;  %v1520_v48 = vadd.f32 %v1519_v37, %v1275_v5  ;;  %v2738_v0 = vrot.slane %v2729_v52, %v6030_v36  ;;  %v2746_v5 = vrot.slane %v2729_v52, %v6033_v38 }
 0x5d8   :  { %v1480_v55 = vpop.f32.mrf.mxu0  ;;  %v1521_v6 = vpop.f32.mrf.mxu1 }
 0x5d9   :  { %1526 = vst [vmem:[#allocation3] sm:$0xff] %v1479_v39  ;;  %1528 = vst [vmem:[#allocation3 + $0x10] sm:$0xff] %v1520_v48  ;;  %v1481_v37 = vadd.f32 %v1480_v55, %v1271_v62  ;;  %v1522_v50 = vadd.f32 %v1521_v6, %v1279_v57  ;;  %v6382_v39 = vsel %vm1535_vm2, %v2341_v45, 0.0  ;;  %v3131_v6 = vrot.slane %v3126_v25, %v6021_v33  ;;  %v3920_v45 = vld [vmem:[#allocation2 + $0x6] ss:$8 sm:$0xf] }
 0x5da   :  { %v1482_v23 = vpop.f32.mrf.mxu0  ;;  %v1523_v21 = vpop.f32.mrf.mxu1  ;;  %v6387_v48 = vsel %vm1535_vm2, %v2345_v43, 0.0  ;;  %v3139_v62 = vrot.slane %v3126_v25, %v6024_v34  ;;  %v3143_v57 = vrot.slane %v3126_v25, %v6033_v38  ;;  %v3528_v43 = vrot.slane %v3523_v58, %v6021_v33 }
 0x5db   :  { %1527 = vst [vmem:[#allocation3 + $0x8] sm:$0xff] %v1481_v37  ;;  %1529 = vst [vmem:[#allocation3 + $0x18] sm:$0xff] %v1522_v50  ;;  %v6391_v21 = vsel %vm1535_vm2, %v2349_v30, 0.0  ;;  %v6395_v23 = vsel %vm1535_vm2, %v2734_v28, 0.0  ;;  %v3532_v55 = vrot.slane %v3523_v58, %v6030_v36  ;;  %v2752_v30 = vsel %vm1535_vm2, %v2738_v0, 0.0 }
 0x5dc   :  { %v1483_v63 = vpop.f32.mrf.mxu0  ;;  %v1524_v52 = vpop.f32.mrf.mxu1  ;;  %v4317_v37 = vld [vmem:[#allocation2 + $0x7] ss:$8 sm:$0xf]  ;;  %v2753_v28 = vsel %vm1535_vm2, %v2742_v59, 0.0  ;;  %v2754_v50 = vsel %vm1535_vm2, %v2746_v5, 0.0  ;;  %v3540_v25 = vrot.slane %v3523_v58, %v6033_v38  ;;  %v3925_v19 = vrot.slane %v3920_v45, %v6021_v33 }
 0x5dd   :  { %v3536_v63 = vrot.slane %v3523_v58, %v6024_v34  ;;  %v6411_v52 = vsel %vm1535_vm2, %v3131_v6, 0.0  ;;  %v3929_v17 = vrot.slane %v3920_v45, %v6030_v36  ;;  %v6418_v0 = vsel %vm1535_vm2, %v3135_v42, 0.0  ;;  %v6431_v42 = vld [vmem:[#allocation2] ss:$8 sm:$0xf] }
 0x5de   :  { %v3933_v59 = vrot.slane %v3920_v45, %v6024_v34  ;;  %v3937_v5 = vrot.slane %v3920_v45, %v6033_v38  ;;  %v4322_v15 = vrot.slane %v4317_v37, %v6021_v33  ;;  %v3150_v6 = vsel %vm1535_vm2, %v3139_v62, 0.0 }
 0x5df   :  { %v3151_v58 = vsel %vm1535_vm2, %v3143_v57, 0.0  ;;  %v3545_v13 = vsel %vm1535_vm2, %v3528_v43, 0.0  ;;  %v3546_v11 = vsel %vm1535_vm2, %v3532_v55, 0.0  ;;  %v3547_v7 = vsel %vm1535_vm2, %v3536_v63, 0.0 }
 0x5e0   :  { %v4326_v45 = vrot.slane %v4317_v37, %v6030_v36  ;;  %v4330_v49 = vrot.slane %v4317_v37, %v6024_v34  ;;  %v4334_v62 = vrot.slane %v4317_v37, %v6033_v38  ;;  %v3548_v57 = vsel %vm1535_vm2, %v3540_v25, 0.0 }
 0x5e1   :  { %v6442_v43 = vsel %vm1535_vm2, %v3925_v19, 0.0  ;;  %v6446_v55 = vsel %vm1535_vm2, %v3929_v17, 0.0  ;;  %v6451_v63 = vsel %vm1535_vm2, %v3933_v59, 0.0  ;;  %v6455_v37 = vsel %vm1535_vm2, %v3937_v5, 0.0 }
 0x5e2   :  { %v1962_v60 = vld [vmem:[#allocation3 + $0x1] ss:$8 sm:$0xf]  ;;  %v6459_v25 = vsel %vm1535_vm2, %v4322_v15, 0.0  ;;  %v4340_v5 = vsel %vm1535_vm2, %v4326_v45, 0.0  ;;  %v4341_v15 = vsel %vm1535_vm2, %v4330_v49, 0.0 }
 0x5e3   :  { %v1967_v19 = vrot.slane %v1962_v60, %v6021_v33  ;;  %v1971_v51 = vrot.slane %v1962_v60, %v6030_v36  ;;  %v1975_v17 = vrot.slane %v1962_v60, %v6024_v34  ;;  %v1979_v53 = vrot.slane %v1962_v60, %v6033_v38  ;;  %v2359_v10 = vld [vmem:[#allocation3 + $0x2] ss:$8 sm:$0xf]  ;;  %v2756_v1 = vld [vmem:[#allocation3 + $0x3] ss:$8 sm:$0xf] }
 0x5e4   :  { %v4342_v46 = vsel %vm1535_vm2, %v4334_v62, 0.0  ;;  %v2364_v62 = vrot.slane %v2359_v10, %v6021_v33  ;;  %v2368_v59 = vrot.slane %v2359_v10, %v6030_v36 }
 0x5e5   :  { %v6476_v41 = vsel %vm1564_vm3, %v1967_v19, %v6361_v3  ;;  %v6481_v60 = vsel %vm1564_vm3, %v1971_v51, %v6365_v61  ;;  %v6486_v45 = vsel %vm1564_vm3, %v1975_v17, %v6369_v27  ;;  %v6490_v49 = vsel %vm1564_vm3, %v1979_v53, %v1960_v56  ;;  %v3153_v17 = vld [vmem:[#allocation3 + $0x4] ss:$8 sm:$0xf] }
 0x5e6   :  { %7821 = vst [vmem:[#allocation64_spill] sm:$0xff] %v6476_v41  ;;  %7822 = vst [vmem:[#allocation65_spill] sm:$0xff] %v6490_v49  ;;  %v2372_v3 = vrot.slane %v2359_v10, %v6024_v34  ;;  %v2376_v19 = vrot.slane %v2359_v10, %v6033_v38  ;;  %v2761_v51 = vrot.slane %v2756_v1, %v6021_v33  ;;  %v3550_v49 = vld [vmem:[#allocation3 + $0x5] ss:$8 sm:$0xf] }
 0x5e7   :  { %v2765_v61 = vrot.slane %v2756_v1, %v6030_v36  ;;  %v2769_v41 = vrot.slane %v2756_v1, %v6024_v34  ;;  %v2773_v27 = vrot.slane %v2756_v1, %v6033_v38  ;;  %v6503_v53 = vsel %vm1564_vm3, %v2364_v62, %v6378_v54 }
 0x5e8   :  { %v6508_v56 = vsel %vm1564_vm3, %v2368_v59, %v6382_v39  ;;  %v6513_v10 = vsel %vm1564_vm3, %v2372_v3, %v6387_v48  ;;  %v6518_v1 = vsel %vm1564_vm3, %v2376_v19, %v6391_v21  ;;  %v6523_v54 = vsel %vm1564_vm3, %v2761_v51, %v6395_v23 }
 0x5e9   :  { %7823 = vst [vmem:[#allocation66_spill] sm:$0xff] %v6523_v54  ;;  %v6527_v39 = vsel %vm1564_vm3, %v2765_v61, %v2752_v30  ;;  %v6531_v59 = vsel %vm1564_vm3, %v2769_v41, %v2753_v28  ;;  %v6535_v48 = vsel %vm1564_vm3, %v2773_v27, %v2754_v50  ;;  %v3158_v21 = vrot.slane %v3153_v17, %v6021_v33  ;;  %v3947_v28 = vld [vmem:[#allocation3 + $0x6] ss:$8 sm:$0xf] }
 0x5ea   :  { %7824 = vst [vmem:[#allocation67_spill] sm:$0xff] %v6527_v39  ;;  %7825 = vst [vmem:[#allocation68_spill] sm:$0xff] %v6531_v59  ;;  %v3162_v62 = vrot.slane %v3153_v17, %v6030_v36  ;;  %v3166_v3 = vrot.slane %v3153_v17, %v6024_v34  ;;  %v3170_v23 = vrot.slane %v3153_v17, %v6033_v38 }
 0x5eb   :  { %7826 = vst [vmem:[#allocation69_spill] sm:$0xff] %v6535_v48  ;;  %v3555_v19 = vrot.slane %v3550_v49, %v6021_v33  ;;  %v3559_v30 = vrot.slane %v3550_v49, %v6030_v36  ;;  %v3563_v51 = vrot.slane %v3550_v49, %v6024_v34  ;;  %v3567_v41 = vrot.slane %v3550_v49, %v6033_v38  ;;  %v4344_v49 = vld [vmem:[#allocation3 + $0x7] ss:$8 sm:$0xf] }
 0x5ec   :  { %v6548_v50 = vsel %vm1564_vm3, %v3158_v21, %v6411_v52  ;;  %v6553_v61 = vsel %vm1564_vm3, %v3162_v62, %v6418_v0  ;;  %v6557_v27 = vsel %vm1564_vm3, %v3166_v3, %v3150_v6  ;;  %v6561_v17 = vsel %vm1564_vm3, %v3170_v23, %v3151_v58  ;;  %v1563_v3 = vld [vmem:[#allocation3] ss:$8 sm:$0xf] }
 0x5ed   :  { %7827 = vst [vmem:[#allocation70_spill] sm:$0xff] %v6548_v50  ;;  %7828 = vst [vmem:[#allocation71_spill] sm:$0xff] %v6553_v61  ;;  %v6565_v48 = vsel %vm1564_vm3, %v3555_v19, %v3545_v13  ;;  %v6569_v52 = vsel %vm1564_vm3, %v3559_v30, %v3546_v11  ;;  %v6573_v0 = vsel %vm1564_vm3, %v3563_v51, %v3547_v7 }
 0x5ee   :  { %7829 = vst [vmem:[#allocation72_spill] sm:$0xff] %v6557_v27  ;;  %7830 = vst [vmem:[#allocation73_spill] sm:$0xff] %v6561_v17  ;;  %v6577_v6 = vsel %vm1564_vm3, %v3567_v41, %v3548_v57  ;;  %v3952_v58 = vrot.slane %v3947_v28, %v6021_v33  ;;  %v3956_v21 = vrot.slane %v3947_v28, %v6030_v36 }
 0x5ef   :  { %7831 = vst [vmem:[#allocation74_spill] sm:$0xff] %v6565_v48  ;;  %7832 = vst [vmem:[#allocation75_spill] sm:$0xff] %v6569_v52  ;;  %v3960_v62 = vrot.slane %v3947_v28, %v6024_v34  ;;  %v3964_v13 = vrot.slane %v3947_v28, %v6033_v38  ;;  %v4349_v11 = vrot.slane %v4344_v49, %v6021_v33 }
 0x5f0   :  { %7833 = vst [vmem:[#allocation76_spill] sm:$0xff] %v6573_v0  ;;  %7834 = vst [vmem:[#allocation77_spill] sm:$0xff] %v6577_v6  ;;  %v4353_v23 = vrot.slane %v4344_v49, %v6030_v36  ;;  %v4357_v7 = vrot.slane %v4344_v49, %v6024_v34  ;;  %v4361_v19 = vrot.slane %v4344_v49, %v6033_v38 }
 0x5f1   :  { %v6590_v57 = vsel %vm1564_vm3, %v3952_v58, %v6442_v43  ;;  %v6595_v30 = vsel %vm1564_vm3, %v3956_v21, %v6446_v55  ;;  %v6600_v51 = vsel %vm1564_vm3, %v3960_v62, %v6451_v63  ;;  %v6605_v41 = vsel %vm1564_vm3, %v3964_v13, %v6455_v37 }
 0x5f2   :  { %7835 = vst [vmem:[#allocation78_spill] sm:$0xff] %v6590_v57  ;;  %7836 = vst [vmem:[#allocation79_spill] sm:$0xff] %v6595_v30  ;;  %v6610_v43 = vsel %vm1564_vm3, %v4349_v11, %v6459_v25  ;;  %v6614_v28 = vsel %vm1564_vm3, %v4353_v23, %v4340_v5  ;;  %v6618_v55 = vsel %vm1564_vm3, %v4357_v7, %v4341_v15  ;;  %v6950_v57 = vld [vmem:[#allocation12] sm:$0xff]  ;;  %v5451_v30 = vld [vmem:[%s7675_s12] sm:$0xff]  }
 0x5f3   :  { %7837 = vst [vmem:[#allocation80_spill] sm:$0xff] %v6600_v51  ;;  %7838 = vst [vmem:[#allocation81_spill] sm:$0xff] %v6605_v41  ;;  %v6622_v63 = vsel %vm1564_vm3, %v4361_v19, %v4342_v46  ;;  %v1571_v37 = vrot.slane %v1563_v3, %v6021_v33  ;;  %v1546_v49 = vrot.slane %v6431_v42, %v6030_v36  ;;  %v6941_v41 = vld [vmem:[#allocation12 + $0x28] sm:$0xff]  ;;  %v6944_v51 = vld [vmem:[#allocation12 + $0x20] sm:$0xff] }
 0x5f4   :  { %7839 = vst [vmem:[#allocation82_spill] sm:$0xff] %v6610_v43  ;;  %7840 = vst [vmem:[#allocation83_spill] sm:$0xff] %v6614_v28  ;;  %v1575_v25 = vrot.slane %v1563_v3, %v6030_v36  ;;  %v7843_v58 = vrot.slane %v6431_v42, %v6021_v33  ;;  %v1550_v46 = vrot.slane %v6431_v42, %v6024_v34  ;;  %v5450_v28 = vld [vmem:[%s7675_s12 + $0x8] sm:$0xff]  }
 0x5f5   :  { %7841 = vst [vmem:[#allocation84_spill] sm:$0xff] %v6618_v55  ;;  %7842 = vst [vmem:[#allocation85_spill] sm:$0xff] %v6622_v63  ;;  %v1560_v13 = vsel %vm1535_vm2, %v1546_v49, 0.0  ;;  %v1579_v11 = vrot.slane %v1563_v3, %v6024_v34  ;;  %v1554_v34 = vrot.slane %v6431_v42, %v6033_v38  ;;  %v1583_v49 = vrot.slane %v1563_v3, %v6033_v38  ;;  %v1533_v38 = vld [vmem:[%s7665_s2] sm:$0x3] }
 0x5f6   :  { %v1559_v5 = vsel %vm1535_vm2, %v7843_v58, 0.0  ;;  %v1589_v36 = vsel %vm1564_vm3, %v1575_v25, %v1560_v13 }
 0x5f7   :  { %v1588_v15 = vsel %vm1564_vm3, %v1571_v37, %v1559_v5  ;;  %v1722_v21 = vpop.f32.mrf.mxu0  ;;  %v1793_v19 = vpop.f32.mrf.mxu1  ;;  %v1561_v37 = vsel %vm1535_vm2, %v1550_v46, 0.0 }
 0x5f8   :  { %v1798_v62 = vadd.f32 %v1722_v21, %v1588_v15  ;;  %v1590_v5 = vsel %vm1564_vm3, %v1579_v11, %v1561_v37  ;;  %v1562_v21 = vsel %vm1535_vm2, %v1554_v34, 0.0 }
 0x5f9   :  { %v1724_v33 = vpop.f32.mrf.mxu0  ;;  %v1800_v15 = vadd.f32 %v1793_v19, %v1590_v5  ;;  %v1795_v25 = vpop.f32.mrf.mxu1 }
 0x5fa   :  { %v1802_v23 = vmul.f32 0.5, %v1798_v62  ;;  %v1799_v7 = vadd.f32 %v1724_v33, %v1589_v36  ;;  %v1591_v62 = vsel %vm1564_vm3, %v1583_v49, %v1562_v21 }
 0x5fb   :  { %v1801_v46 = vadd.f32 %v1795_v25, %v1591_v62  ;;  %v7855_v62 = vld [vmem:[#allocation59_spill] sm:$0xff] }
 0x5fc   :  { %5492 = vtanh.f32 %v1802_v23  ;;  %v1806_v58 = vmul.f32 0.5, %v1799_v7 }
 0x5fd   :  { %v1811_v13 = vmul.f32 0.5, %v1801_v46  ;;  %v7856_v46 = vld [vmem:[#allocation61_spill] sm:$0xff] }
 0x5fe   :  { %5494 = vtanh.f32 %v1806_v58 }
 0x5ff   :  { %5496 = vtanh.f32 %v1800_v15 }
 0x600   :  { %5498 = vtanh.f32 %v1811_v13  ;;  %v7857_v13 = vld [vmem:[#allocation63_spill] sm:$0xff] }
 0x609   :  { %v5493_v36 = vpop.eup %5492 }
 0x60a   :  { %v1804_v33 = vadd.f32 1.0, %v5493_v36  ;;  %v7858_v36 = vld [vmem:[#allocation18_spill] sm:$0xff] }
 0x60b   :  { %v5495_v11 = vpop.eup %5494 }
 0x60c   :  { %v1805_v23 = vmul.f32 0.5, %v1804_v33  ;;  %v1808_v7 = vadd.f32 1.0, %v5495_v11  ;;  %v5497_v3 = vpop.eup %5496  ;;  %v7859_v33 = vld [vmem:[#allocation19_spill] sm:$0xff]  ;;  %v7860_v11 = vld [vmem:[#allocation20_spill] sm:$0xff] }
 0x60d   :  { %v5499_v32 = vpop.eup %5498 }
 0x60e   :  { %v1809_v42 = vmul.f32 0.5, %v1808_v7  ;;  %v1816_v37 = vmul.f32 %v5497_v3, %v1805_v23  ;;  %v1813_v5 = vadd.f32 1.0, %v5499_v32  ;;  %v7861_v23 = vld [vmem:[#allocation21_spill] sm:$0xff]  ;;  %v7862_v7 = vld [vmem:[#allocation22_spill] sm:$0xff]  ;;  %v7868_v32 = vld [vmem:[#allocation28_spill] sm:$0xff] }
 0x60f   :  { %v7865_v3 = vld [vmem:[#allocation25_spill] sm:$0xff]  ;;  %7910 = vst [vmem:[#allocation22_spill] sm:$0xff] %v6941_v41 }
 0x610   :  { %v1815_v19 = vmul.f32 %v1809_v42, %v1533_v38  ;;  %v1814_v15 = vmul.f32 0.5, %v1813_v5  ;;  %v7863_v38 = vld [vmem:[#allocation23_spill] sm:$0xff]  ;;  %v7864_v42 = vld [vmem:[#allocation24_spill] sm:$0xff]  ;;  %v7869_v5 = vld [vmem:[#allocation29_spill] sm:$0xff]  ;;  %7913 = vst [vmem:[#allocation25_spill] sm:$0xff] %v6950_v57 }
 0x611   :  { %7911 = vst [vmem:[#allocation23_spill] sm:$0xff] %v6944_v51 }
 0x612   :  { %v6656_v58 = vadd.f32 %v1816_v37, %v1815_v19  ;;  %v7866_v19 = vld [vmem:[#allocation26_spill] sm:$0xff]  ;;  %v7867_v37 = vld [vmem:[#allocation27_spill] sm:$0xff] }
 0x614   :  { %5500 = vtanh.f32 %v6656_v58 }
 0x621   :  { %v5501_v34 = vpop.eup %5500 }
 0x622   :  { %v1819_v49 = vmul.f32 %v5501_v34, %v1814_v15  ;;  %v7870_v15 = vld [vmem:[#allocation30_spill] sm:$0xff]  ;;  %v7871_v34 = vld [vmem:[#allocation31_spill] sm:$0xff] }
 0x624   :  { %2117 = vmatmul.mubr.f32.vlgmr.msra.gmra.mxu1 %v1819_v49  ;;  %v1820_v25 = vmax.f32 %v1819_v49, 0.0 }
 0x625   :  { %5202 = vmatprep.mubr.msk.bf16.mxu1 %vm5712_vm0, %v7820_v47 }
 0x626   :  { %v1821_v21 = vpack.c.bf16 %v1820_v25, %v1820_v25  ;;  %v7873_v25 = vld [vmem:[#allocation33_spill] sm:$0xff] }
 0x628   :  { %5183 = vmatmul.mubr.bf16.vlgmr.msra.gmra.mxu0 %v1821_v21  ;;  %v7874_v21 = vld [vmem:[#allocation34_spill] sm:$0xff] }
 0x629   :  { %2124 = vmatpush1.msra.mxu0 %v6084_v9  ;;  %2187 = vmatprep.mubr.f32.mxu0 %v7820_v47  ;;  %v7844_v9 = vld [vmem:[#allocation37_spill] sm:$0xff] }
 0x62a   :  { %2125 = vmatprep.subr.mxu0 %v6088_v12  ;;  %v7845_v12 = vld [vmem:[#allocation39_spill] sm:$0xff] }
 0x62b   :  { %2126 = vmatpush1.msra.mxu0 %v6092_v14  ;;  %v7846_v14 = vld [vmem:[#allocation41_spill] sm:$0xff] }
 0x62c   :  { %2127 = vmatprep.subr.mxu0 %v6098_v16  ;;  %v7847_v16 = vld [vmem:[#allocation43_spill] sm:$0xff] }
 0x62d   :  { %2128 = vmatpush1.msra.mxu0 %v6104_v18  ;;  %v7848_v18 = vld [vmem:[#allocation45_spill] sm:$0xff] }
 0x62e   :  { %2129 = vmatprep.subr.mxu0 %v6110_v20  ;;  %v7849_v20 = vld [vmem:[#allocation47_spill] sm:$0xff] }
 0x62f   :  { %2130 = vmatpush1.msra.mxu0 %v6116_v22  ;;  %v7850_v22 = vld [vmem:[#allocation49_spill] sm:$0xff] }
 0x630   :  { %2131 = vmatprep.subr.mxu0 %v6122_v24  ;;  %v7851_v24 = vld [vmem:[#allocation51_spill] sm:$0xff] }
 0x631   :  { %2132 = vmatpush1.msra.mxu0 %v6128_v2  ;;  %v7852_v2 = vld [vmem:[#allocation53_spill] sm:$0xff] }
 0x632   :  { %2133 = vmatprep.subr.mxu0 %v6134_v4  ;;  %v7853_v4 = vld [vmem:[#allocation55_spill] sm:$0xff] }
 0x633   :  { %2134 = vmatpush1.msra.mxu0 %v6140_v8  ;;  %v7854_v8 = vld [vmem:[#allocation57_spill] sm:$0xff] }
 0x634   :  { %2135 = vmatprep.subr.mxu0 %v6146_v26 }
 0x635   :  { %2136 = vmatpush1.msra.mxu0 %v6152_v29 }
 0x636   :  { %2137 = vmatprep.subr.mxu0 %v6158_v31 }
 0x637   :  { %2138 = vmatpush1.msra.mxu0 %v6164_v35 }
 0x638   :  { %2139 = vmatprep.subr.mxu0 %v6170_v40 }
 0x639   :  { %2140 = vmatpush1.msra.mxu0 %v6176_v44 }
 0x63a   :  { %2141 = vmatprep.subr.mxu0 %v7844_v9 }
 0x63b   :  { %2142 = vmatpush1.msra.mxu0 %v7845_v12 }
 0x63c   :  { %2143 = vmatprep.subr.mxu0 %v7846_v14 }
 0x63d   :  { %2144 = vmatpush1.msra.mxu0 %v7847_v16 }
 0x63e   :  { %2145 = vmatprep.subr.mxu0 %v7848_v18 }
 0x63f   :  { %2146 = vmatpush1.msra.mxu0 %v7849_v20 }
 0x640   :  { %2147 = vmatprep.subr.mxu0 %v7850_v22 }
 0x641   :  { %2148 = vmatpush1.msra.mxu0 %v7851_v24 }
 0x642   :  { %2149 = vmatprep.subr.mxu0 %v7852_v2 }
 0x643   :  { %2150 = vmatpush1.msra.mxu0 %v7853_v4 }
 0x644   :  { %2151 = vmatprep.subr.mxu0 %v7854_v8 }
 0x645   :  { %2152 = vmatpush1.msra.mxu0 %v7855_v62 }
 0x646   :  { %2153 = vmatprep.subr.mxu0 %v7856_v46 }
 0x647   :  { %2154 = vmatpush1.msra.mxu0 %v7857_v13 }
 0x648   :  { %2188 = vmatmul.mubr.f32.vlgmr.msra.gmra.mxu0 %v1819_v49  ;;  %2449 = vmatprep.subr.mxu0 %v7858_v36  ;;  %v7872_v49 = vld [vmem:[#allocation32_spill] sm:$0xff]  ;;  %v7875_v36 = vld [vmem:[#allocation35_spill] sm:$0xff] }
 0x649   :  { %2450 = vmatpush1.msra.mxu0 %v7859_v33  ;;  %2513 = vmatprep.mubr.f32.mxu0 %v7820_v47  ;;  %v7876_v33 = vld [vmem:[#allocation36_spill] sm:$0xff] }
 0x64a   :  { %2451 = vmatprep.subr.mxu0 %v7860_v11  ;;  %v7877_v11 = vld [vmem:[#allocation38_spill] sm:$0xff] }
 0x64b   :  { %2452 = vmatpush1.msra.mxu0 %v7861_v23  ;;  %v7878_v23 = vld [vmem:[#allocation40_spill] sm:$0xff] }
 0x64c   :  { %2453 = vmatprep.subr.mxu0 %v7862_v7  ;;  %v7879_v7 = vld [vmem:[#allocation42_spill] sm:$0xff] }
 0x64d   :  { %2454 = vmatpush1.msra.mxu0 %v7863_v38  ;;  %v7880_v38 = vld [vmem:[#allocation44_spill] sm:$0xff] }
 0x64e   :  { %2455 = vmatprep.subr.mxu0 %v7864_v42  ;;  %v7881_v42 = vld [vmem:[#allocation46_spill] sm:$0xff] }
 0x64f   :  { %2456 = vmatpush1.msra.mxu0 %v7865_v3  ;;  %v7882_v3 = vld [vmem:[#allocation48_spill] sm:$0xff] }
 0x650   :  { %2457 = vmatprep.subr.mxu0 %v7866_v19  ;;  %v7883_v19 = vld [vmem:[#allocation50_spill] sm:$0xff] }
 0x651   :  { %2458 = vmatpush1.msra.mxu0 %v7867_v37  ;;  %v7884_v37 = vld [vmem:[#allocation52_spill] sm:$0xff] }
 0x652   :  { %2459 = vmatprep.subr.mxu0 %v7868_v32  ;;  %v7885_v32 = vld [vmem:[#allocation54_spill] sm:$0xff] }
 0x653   :  { %2460 = vmatpush1.msra.mxu0 %v7869_v5  ;;  %v7886_v5 = vld [vmem:[#allocation56_spill] sm:$0xff] }
 0x654   :  { %2461 = vmatprep.subr.mxu0 %v7870_v15  ;;  %v7887_v15 = vld [vmem:[#allocation58_spill] sm:$0xff] }
 0x655   :  { %2462 = vmatpush1.msra.mxu0 %v7871_v34  ;;  %v7888_v34 = vld [vmem:[#allocation60_spill] sm:$0xff] }
 0x656   :  { %2463 = vmatprep.subr.mxu0 %v7872_v49  ;;  %v7889_v49 = vld [vmem:[#allocation62_spill] sm:$0xff] }
 0x657   :  { %2464 = vmatpush1.msra.mxu0 %v7873_v25  ;;  %v5436_v25 = vld [vmem:[%s7675_s12 + $0x38] sm:$0xff]  }
 0x658   :  { %2465 = vmatprep.subr.mxu0 %v7874_v21  ;;  %5187 = vmatpush3.bf16.msra.mxu1 %v5436_v25  ;;  %v5437_v21 = vld [vmem:[%s7675_s12 + $0x30] sm:$0xff]  }
 0x659   :  { %2466 = vmatpush1.msra.mxu0 %v7875_v36  ;;  %5188 = vmatprep.subr.bf16.mxu1 %v7820_v47  ;;  %v5438_v36 = vld [vmem:[%s7675_s12 + $0x28] sm:$0xff]  }
 0x65a   :  { %2467 = vmatprep.subr.mxu0 %v7876_v33  ;;  %v5439_v33 = vld [vmem:[%s7675_s12 + $0x20] sm:$0xff]  }
 0x65b   :  { %2468 = vmatpush1.msra.mxu0 %v7877_v11  ;;  %v5440_v11 = vld [vmem:[%s7675_s12 + $0x18] sm:$0xff]  }
 0x65c   :  { %2469 = vmatprep.subr.mxu0 %v7878_v23  ;;  %5189 = vmatpush3.bf16.msra.mxu1 %v5437_v21  ;;  %v5441_v23 = vld [vmem:[%s7675_s12 + $0x10] sm:$0xff]   ;;  %v7892_v21 = vld [vmem:[#allocation64_spill] sm:$0xff] }
 0x65d   :  { %2470 = vmatpush1.msra.mxu0 %v7879_v7  ;;  %5190 = vmatprep.subr.bf16.mxu1 %v7820_v47  ;;  %v5442_v7 = vld [vmem:[%s7675_s12 + $0x8] sm:$0xff]  }
 0x65e   :  { %2471 = vmatprep.subr.mxu0 %v7880_v38  ;;  %v5443_v38 = vld [vmem:[%s7675_s12] sm:$0xff]  }
 0x65f   :  { %2472 = vmatpush1.msra.mxu0 %v7881_v42  ;;  %v6758_v42 = vld [vmem:[#allocation12 + $0x1f8] sm:$0xff] }
 0x660   :  { %2473 = vmatprep.subr.mxu0 %v7882_v3  ;;  %5191 = vmatpush3.bf16.msra.mxu1 %v5438_v36  ;;  %7890 = vst [vmem:[#allocation37_spill] sm:$0xff] %v6758_v42  ;;  %v6764_v3 = vld [vmem:[%s7676_s13] ss:$0 sm:$0xff] }
 0x661   :  { %2474 = vmatpush1.msra.mxu0 %v7883_v19  ;;  %5192 = vmatprep.subr.bf16.mxu1 %v7820_v47  ;;  %7891 = vst [vmem:[#allocation39_spill] sm:$0xff] %v6764_v3 }
 0x662   :  { %2475 = vmatprep.subr.mxu0 %v7884_v37 }
 0x663   :  { %2476 = vmatpush1.msra.mxu0 %v7885_v32 }
 0x664   :  { %2477 = vmatprep.subr.mxu0 %v7886_v5  ;;  %5193 = vmatpush3.bf16.msra.mxu1 %v5439_v33 }
 0x665   :  { %2478 = vmatpush1.msra.mxu0 %v7887_v15  ;;  %5194 = vmatprep.subr.bf16.mxu1 %v7820_v47 }
 0x666   :  { %2479 = vmatprep.subr.mxu0 %v7888_v34 }
 0x667   :  { %2480 = vmatpush1.msra.mxu0 %v7889_v49 }
 0x668   :  { %5206 = vmatprep.subr.bf16.mxu0 %v7820_v47  ;;  %5195 = vmatpush3.bf16.msra.mxu1 %v5440_v11 }
 0x669   :  { %5196 = vmatprep.subr.bf16.mxu1 %v7820_v47 }
 0x66c   :  { %5197 = vmatpush3.bf16.msra.mxu1 %v5441_v23 }
 0x66d   :  { %5198 = vmatprep.subr.bf16.mxu1 %v7820_v47 }
 0x670   :  { %5199 = vmatpush3.bf16.msra.mxu1 %v5442_v7 }
 0x671   :  { %5200 = vmatprep.subr.bf16.mxu1 %v7820_v47 }
 0x674   :  { %5201 = vmatpush3.bf16.msra.mxu1 %v5443_v38 }
 0x675   :  { %2520 = vmatprep.subr.mxu1 %v6758_v42 }
 0x6e4   :  { %v2118_v34 = vpop.f32.mrf.mxu1 }
 0x6e5   :  { %v2194_v36 = vadd.f32 %v2118_v34, %v7892_v21 }
 0x6e6   :  { %v2120_v49 = vpop.f32.mrf.mxu1 }
 0x6e7   :  { %v2195_v25 = vadd.f32 %v2120_v49, %v6481_v60  ;;  %v2198_v11 = vmul.f32 0.5, %v2194_v36 }
 0x6e8   :  { %v1927_v19 = vpop.f32.mrf.mxu0 }
 0x6e9   :  { %v1928_v37 = vadd.f32 %v6764_v3, %v1927_v19  ;;  %v2202_v33 = vmul.f32 0.5, %v2195_v25  ;;  %v7893_v19 = vld [vmem:[#allocation65_spill] sm:$0xff] }
 0x6ea   :  { %v5184_v32 = vpop.f32.mrf.mxu0 }
 0x6eb   :  { %1933 = vst [vmem:[#allocation13] sm:$0x3] %v1928_v37  ;;  %5502 = vtanh.f32 %v2202_v33 }
 0x6ec   :  { %v1930_v5 = vpop.f32.mrf.mxu0  ;;  %5504 = vtanh.f32 %v2198_v11 }
 0x6ee   :  { %v5185_v15 = vpop.f32.mrf.mxu0 }
 0x6f8   :  { %v5503_v37 = vpop.eup %5502 }
 0x6f9   :  { %v5505_v5 = vpop.eup %5504  ;;  %v2204_v15 = vadd.f32 1.0, %v5503_v37  ;;  %v6794_v37 = vld [vmem:[#allocation12 + $0x190] sm:$0xff] }
 0x6fa   :  { %v2200_v55 = vadd.f32 1.0, %v5505_v5  ;;  %v6797_v5 = vld [vmem:[#allocation12 + $0x178] sm:$0xff] }
 0x6fb   :  { %v2205_v43 = vmul.f32 0.5, %v2204_v15  ;;  %v6800_v15 = vld [vmem:[#allocation12 + $0x170] sm:$0xff] }
 0x6fc   :  { %v2201_v60 = vmul.f32 0.5, %v2200_v55  ;;  %v6777_v55 = vld [vmem:[#allocation12 + $0x1f0] sm:$0xff] }
 0x6fd   :  { %v2211_v49 = vmul.f32 %v2205_v43, %v6656_v58  ;;  %v6781_v43 = vld [vmem:[#allocation12 + $0x1d0] sm:$0xff]  ;;  %v6784_v58 = vld [vmem:[#allocation12 + $0x1b8] sm:$0xff] }
 0x708   :  { %v2189_v23 = vpop.f32.mrf.mxu0 }
 0x709   :  { %v2196_v7 = vadd.f32 %v2189_v23, %v6486_v45 }
 0x70a   :  { %v2191_v38 = vpop.f32.mrf.mxu0 }
 0x70b   :  { %5506 = vtanh.f32 %v2196_v7  ;;  %v2197_v32 = vadd.f32 %v2191_v38, %v7893_v19  ;;  %v6779_v38 = vld [vmem:[#allocation12 + $0x1d8] sm:$0xff]  ;;  %v6788_v19 = vld [vmem:[#allocation12 + $0x1b0] sm:$0xff] }
 0x70d   :  { %v2207_v63 = vmul.f32 0.5, %v2197_v32  ;;  %v6791_v32 = vld [vmem:[#allocation12 + $0x198] sm:$0xff] }
 0x70f   :  { %5508 = vtanh.f32 %v2207_v63 }
 0x718   :  { %v5507_v34 = vpop.eup %5506 }
 0x719   :  { %v2212_v25 = vmul.f32 %v5507_v34, %v2201_v60  ;;  %v6803_v60 = vld [vmem:[#allocation12 + $0x158] sm:$0xff]  ;;  %v6806_v34 = vld [vmem:[#allocation12 + $0x150] sm:$0xff] }
 0x71b   :  { %v6772_v21 = vadd.f32 %v2212_v25, %v2211_v49  ;;  %v6895_v49 = vld [vmem:[#allocation12 + $0xe8] sm:$0xff]  ;;  %v6898_v25 = vld [vmem:[#allocation12 + $0xe0] sm:$0xff] }
 0x71c   :  { %v5509_v45 = vpop.eup %5508  ;;  %7898 = vst [vmem:[#allocation49_spill] sm:$0xff] %v6895_v49  ;;  %7899 = vst [vmem:[#allocation51_spill] sm:$0xff] %v6898_v25 }
 0x71d   :  { %5510 = vtanh.f32 %v6772_v21  ;;  %v2209_v36 = vadd.f32 1.0, %v5509_v45  ;;  %v6901_v45 = vld [vmem:[#allocation12 + $0xc8] sm:$0xff] }
 0x71e   :  { %7900 = vst [vmem:[#allocation53_spill] sm:$0xff] %v6901_v45 }
 0x71f   :  { %v2210_v33 = vmul.f32 0.5, %v2209_v36  ;;  %v6904_v36 = vld [vmem:[#allocation12 + $0xc0] sm:$0xff] }
 0x720   :  { %7901 = vst [vmem:[#allocation55_spill] sm:$0xff] %v6904_v36 }
 0x72a   :  { %v5511_v11 = vpop.eup %5510 }
 0x72b   :  { %v2215_v23 = vmul.f32 %v5511_v11, %v2210_v33  ;;  %v5448_v33 = vld [vmem:[%s7675_s12 + $0x18] sm:$0xff]   ;;  %v6910_v11 = vld [vmem:[#allocation12 + $0xa8] sm:$0xff] }
 0x72c   :  { %7902 = vst [vmem:[#allocation57_spill] sm:$0xff] %v6910_v11 }
 0x72d   :  { %2514 = vmatmul.mubr.f32.vlgmr.msra.gmra.mxu0 %v2215_v23  ;;  %v2216_v7 = vmax.f32 %v2215_v23, 0.0 }
 0x72e   :  { %5222 = vmatprep.mubr.msk.bf16.mxu0 %vm5712_vm0, %v7820_v47 }
 0x72f   :  { %v2217_v63 = vpack.c.bf16 %v2216_v7, %v2216_v7  ;;  %v6915_v7 = vld [vmem:[#allocation12 + $0x88] sm:$0xff] }
 0x730   :  { %7904 = vst [vmem:[#allocation61_spill] sm:$0xff] %v6915_v7 }
 0x731   :  { %5203 = vmatmul.mubr.bf16.vlgmr.msra.gmra.mxu1 %v2217_v63  ;;  %v6918_v63 = vld [vmem:[#allocation12 + $0x80] sm:$0xff] }
 0x732   :  { %2521 = vmatpush1.msra.mxu1 %v6777_v55  ;;  %2584 = vmatprep.mubr.f32.mxu1 %v7820_v47  ;;  %7905 = vst [vmem:[#allocation63_spill] sm:$0xff] %v6918_v63 }
 0x733   :  { %2522 = vmatprep.subr.mxu1 %v6779_v38 }
 0x734   :  { %2523 = vmatpush1.msra.mxu1 %v6781_v43 }
 0x735   :  { %2524 = vmatprep.subr.mxu1 %v6784_v58 }
 0x736   :  { %2525 = vmatpush1.msra.mxu1 %v6788_v19 }
 0x737   :  { %2526 = vmatprep.subr.mxu1 %v6791_v32 }
 0x738   :  { %2527 = vmatpush1.msra.mxu1 %v6794_v37 }
 0x739   :  { %2528 = vmatprep.subr.mxu1 %v6797_v5 }
 0x73a   :  { %2529 = vmatpush1.msra.mxu1 %v6800_v15 }
 0x73b   :  { %2530 = vmatprep.subr.mxu1 %v6803_v60 }
 0x73c   :  { %2531 = vmatpush1.msra.mxu1 %v6806_v34 }
 0x73d   :  { %2532 = vmatprep.subr.mxu1 %v6146_v26  ;;  %v6832_v26 = vld [vmem:[#allocation12 + $0x1e8] sm:$0xff] }
 0x73e   :  { %2533 = vmatpush1.msra.mxu1 %v6152_v29  ;;  %v6835_v29 = vld [vmem:[#allocation12 + $0x1e0] sm:$0xff] }
 0x73f   :  { %2534 = vmatprep.subr.mxu1 %v6158_v31  ;;  %v6838_v31 = vld [vmem:[#allocation12 + $0x1c8] sm:$0xff] }
 0x740   :  { %2535 = vmatpush1.msra.mxu1 %v6164_v35  ;;  %v6841_v35 = vld [vmem:[#allocation12 + $0x1c0] sm:$0xff] }
 0x741   :  { %2536 = vmatprep.subr.mxu1 %v6170_v40  ;;  %v5444_v40 = vld [vmem:[%s7675_s12 + $0x38] sm:$0xff]  }
 0x742   :  { %2537 = vmatpush1.msra.mxu1 %v6176_v44  ;;  %v6847_v44 = vld [vmem:[#allocation12 + $0x1a8] sm:$0xff]  ;;  %5207 = vmatpush3.bf16.msra.mxu0 %v5444_v40  ;;  %v5449_v40 = vld [vmem:[%s7675_s12 + $0x10] sm:$0xff]  }
 0x743   :  { %2538 = vmatprep.subr.mxu1 %v7844_v9  ;;  %v6850_v9 = vld [vmem:[#allocation12 + $0x1a0] sm:$0xff]  ;;  %5208 = vmatprep.subr.bf16.mxu0 %v7820_v47 }
 0x744   :  { %2539 = vmatpush1.msra.mxu1 %v7845_v12  ;;  %v6853_v12 = vld [vmem:[#allocation12 + $0x188] sm:$0xff] }
 0x745   :  { %2540 = vmatprep.subr.mxu1 %v7846_v14  ;;  %v6857_v14 = vld [vmem:[#allocation12 + $0x180] sm:$0xff] }
 0x746   :  { %2541 = vmatpush1.msra.mxu1 %v7847_v16  ;;  %v5445_v16 = vld [vmem:[%s7675_s12 + $0x30] sm:$0xff]  }
 0x747   :  { %2542 = vmatprep.subr.mxu1 %v7848_v18  ;;  %v6863_v18 = vld [vmem:[#allocation12 + $0x168] sm:$0xff]  ;;  %5209 = vmatpush3.bf16.msra.mxu0 %v5445_v16 }
 0x748   :  { %2543 = vmatpush1.msra.mxu1 %v7849_v20  ;;  %v6866_v20 = vld [vmem:[#allocation12 + $0x160] sm:$0xff]  ;;  %5210 = vmatprep.subr.bf16.mxu0 %v7820_v47  ;;  %v6925_v16 = vld [vmem:[#allocation12 + $0x68] sm:$0xff] }
 0x749   :  { %2544 = vmatprep.subr.mxu1 %v7850_v22  ;;  %v6869_v22 = vld [vmem:[#allocation12 + $0x148] sm:$0xff]  ;;  %7906 = vst [vmem:[#allocation18_spill] sm:$0xff] %v6925_v16 }
 0x74a   :  { %2545 = vmatpush1.msra.mxu1 %v7851_v24  ;;  %v6873_v24 = vld [vmem:[#allocation12 + $0x140] sm:$0xff] }
 0x74b   :  { %2546 = vmatprep.subr.mxu1 %v7852_v2  ;;  %v5446_v2 = vld [vmem:[%s7675_s12 + $0x28] sm:$0xff]  }
 0x74c   :  { %2547 = vmatpush1.msra.mxu1 %v7853_v4  ;;  %v6879_v4 = vld [vmem:[#allocation12 + $0x128] sm:$0xff]  ;;  %5211 = vmatpush3.bf16.msra.mxu0 %v5446_v2  ;;  %v6928_v2 = vld [vmem:[#allocation12 + $0x60] sm:$0xff] }
 0x74d   :  { %2548 = vmatprep.subr.mxu1 %v7854_v8  ;;  %7894 = vst [vmem:[#allocation41_spill] sm:$0xff] %v6879_v4  ;;  %v6882_v8 = vld [vmem:[#allocation12 + $0x120] sm:$0xff]  ;;  %5212 = vmatprep.subr.bf16.mxu0 %v7820_v47  ;;  %7907 = vst [vmem:[#allocation19_spill] sm:$0xff] %v6928_v2 }
 0x74e   :  { %2549 = vmatpush1.msra.mxu1 %v7855_v62  ;;  %7895 = vst [vmem:[#allocation43_spill] sm:$0xff] %v6882_v8  ;;  %v6885_v62 = vld [vmem:[#allocation12 + $0x108] sm:$0xff] }
 0x74f   :  { %2550 = vmatprep.subr.mxu1 %v7856_v46  ;;  %7896 = vst [vmem:[#allocation45_spill] sm:$0xff] %v6885_v62  ;;  %v6889_v46 = vld [vmem:[#allocation12 + $0x100] sm:$0xff] }
 0x750   :  { %2551 = vmatpush1.msra.mxu1 %v7857_v13  ;;  %7897 = vst [vmem:[#allocation47_spill] sm:$0xff] %v6889_v46  ;;  %v5447_v13 = vld [vmem:[%s7675_s12 + $0x20] sm:$0xff]  }
 0x751   :  { %2585 = vmatmul.mubr.f32.vlgmr.msra.gmra.mxu1 %v2215_v23  ;;  %2846 = vmatprep.subr.mxu1 %v6832_v26  ;;  %v6912_v23 = vld [vmem:[#allocation12 + $0xa0] sm:$0xff] }
 0x752   :  { %2910 = vmatprep.mubr.f32.mxu1 %v7820_v47  ;;  %2847 = vmatpush1.msra.mxu1 %v6835_v29  ;;  %7903 = vst [vmem:[#allocation59_spill] sm:$0xff] %v6912_v23 }
 0x753   :  { %2848 = vmatprep.subr.mxu1 %v6838_v31  ;;  %5213 = vmatpush3.bf16.msra.mxu0 %v5447_v13  ;;  %v6931_v13 = vld [vmem:[#allocation12 + $0x48] sm:$0xff] }
 0x754   :  { %2849 = vmatpush1.msra.mxu1 %v6841_v35  ;;  %5214 = vmatprep.subr.bf16.mxu0 %v7820_v47  ;;  %7908 = vst [vmem:[#allocation20_spill] sm:$0xff] %v6931_v13 }
 0x755   :  { %2850 = vmatprep.subr.mxu1 %v6847_v44 }
 0x756   :  { %2851 = vmatpush1.msra.mxu1 %v6850_v9 }
 0x757   :  { %2852 = vmatprep.subr.mxu1 %v6853_v12  ;;  %5215 = vmatpush3.bf16.msra.mxu0 %v5448_v33  ;;  %v6934_v33 = vld [vmem:[#allocation12 + $0x40] sm:$0xff] }
 0x758   :  { %2853 = vmatpush1.msra.mxu1 %v6857_v14  ;;  %5216 = vmatprep.subr.bf16.mxu0 %v7820_v47  ;;  %7909 = vst [vmem:[#allocation21_spill] sm:$0xff] %v6934_v33 }
 0x759   :  { %2854 = vmatprep.subr.mxu1 %v6863_v18 }
 0x75a   :  { %2855 = vmatpush1.msra.mxu1 %v6866_v20 }
 0x75b   :  { %2856 = vmatprep.subr.mxu1 %v6869_v22  ;;  %5217 = vmatpush3.bf16.msra.mxu0 %v5449_v40  ;;  %v6947_v40 = vld [vmem:[#allocation12 + $0x8] sm:$0xff] }
 0x75c   :  { %2857 = vmatpush1.msra.mxu1 %v6873_v24  ;;  %5218 = vmatprep.subr.bf16.mxu0 %v7820_v47  ;;  %7912 = vst [vmem:[#allocation24_spill] sm:$0xff] %v6947_v40 }
 0x75d   :  { %2858 = vmatprep.subr.mxu1 %v6879_v4 }
 0x75e   :  { %2859 = vmatpush1.msra.mxu1 %v6882_v8 }
 0x75f   :  { %2860 = vmatprep.subr.mxu1 %v6885_v62  ;;  %5219 = vmatpush3.bf16.msra.mxu0 %v5450_v28 }
 0x760   :  { %2861 = vmatpush1.msra.mxu1 %v6889_v46  ;;  %5220 = vmatprep.subr.bf16.mxu0 %v7820_v47 }
 0x761   :  { %2862 = vmatprep.subr.mxu1 %v6895_v49 }
 0x762   :  { %2863 = vmatpush1.msra.mxu1 %v6898_v25 }
 0x763   :  { %2864 = vmatprep.subr.mxu1 %v6901_v45  ;;  %5221 = vmatpush3.bf16.msra.mxu0 %v5451_v30 }
 0x764   :  { %2865 = vmatpush1.msra.mxu1 %v6904_v36  ;;  %2917 = vmatprep.subr.mxu0 %v6758_v42 }
 0x765   :  { %2866 = vmatprep.subr.mxu1 %v6910_v11 }
 0x766   :  { %2867 = vmatpush1.msra.mxu1 %v6912_v23 }
 0x767   :  { %2868 = vmatprep.subr.mxu1 %v6915_v7 }
 0x768   :  { %2869 = vmatpush1.msra.mxu1 %v6918_v63 }
 0x769   :  { %2870 = vmatprep.subr.mxu1 %v6925_v16 }
 0x76a   :  { %2871 = vmatpush1.msra.mxu1 %v6928_v2 }
 0x76b   :  { %2872 = vmatprep.subr.mxu1 %v6931_v13 }
 0x76c   :  { %2873 = vmatpush1.msra.mxu1 %v6934_v33 }
 0x76d   :  { %2874 = vmatprep.subr.mxu1 %v6941_v41 }
 0x76e   :  { %2875 = vmatpush1.msra.mxu1 %v6944_v51 }
 0x76f   :  { %2876 = vmatprep.subr.mxu1 %v6947_v40 }
 0x770   :  { %2877 = vmatpush1.msra.mxu1 %v6950_v57 }
 0x771   :  { %5226 = vmatprep.subr.bf16.mxu1 %v7820_v47 }
 0x7ed   :  { %v2515_v17 = vpop.f32.mrf.mxu0 }
 0x7ee   :  { %v2591_v61 = vadd.f32 %v2515_v17, %v6503_v53 }
 0x7ef   :  { %v2517_v27 = vpop.f32.mrf.mxu0 }
 0x7f0   :  { %v2592_v50 = vadd.f32 %v2517_v27, %v6508_v56  ;;  %v2595_v54 = vmul.f32 0.5, %v2591_v61 }
 0x7f1   :  { %v2323_v28 = vpop.f32.mrf.mxu1 }
 0x7f2   :  { %v2324_v6 = vadd.f32 %v6764_v3, %v2323_v28  ;;  %v2599_v59 = vmul.f32 0.5, %v2592_v50 }
 0x7f3   :  { %v5204_v0 = vpop.f32.mrf.mxu1 }
 0x7f4   :  { %2330 = vst [vmem:[#allocation13 + $0x2] sm:$0x3] %v2324_v6  ;;  %5512 = vtanh.f32 %v2599_v59 }
 0x7f5   :  { %v2326_v48 = vpop.f32.mrf.mxu1  ;;  %5514 = vtanh.f32 %v2595_v54 }
 0x7f7   :  { %v5205_v52 = vpop.f32.mrf.mxu1 }
 0x801   :  { %v5513_v6 = vpop.eup %5512 }
 0x802   :  { %v5515_v48 = vpop.eup %5514  ;;  %v2601_v52 = vadd.f32 1.0, %v5513_v6  ;;  %v6997_v6 = vld [vmem:[#allocation12 + $0xf0] sm:$0xff] }
 0x803   :  { %v2597_v3 = vadd.f32 1.0, %v5515_v48  ;;  %v7000_v48 = vld [vmem:[#allocation12 + $0xd8] sm:$0xff] }
 0x804   :  { %v2602_v57 = vmul.f32 0.5, %v2601_v52  ;;  %v7003_v52 = vld [vmem:[#allocation12 + $0xd0] sm:$0xff] }
 0x805   :  { %v2598_v56 = vmul.f32 0.5, %v2597_v3  ;;  %v6985_v3 = vld [vmem:[#allocation12 + $0x130] sm:$0xff] }
 0x806   :  { %v2608_v50 = vmul.f32 %v2602_v57, %v6772_v21  ;;  %v6982_v57 = vld [vmem:[#allocation12 + $0x138] sm:$0xff] }
 0x807   :  { %v6988_v21 = vld [vmem:[#allocation12 + $0x118] sm:$0xff] }
 0x811   :  { %v2586_v30 = vpop.f32.mrf.mxu1 }
 0x812   :  { %v2593_v39 = vadd.f32 %v2586_v30, %v6513_v10  ;;  %v6991_v30 = vld [vmem:[#allocation12 + $0x110] sm:$0xff] }
 0x813   :  { %v2588_v42 = vpop.f32.mrf.mxu1 }
 0x814   :  { %5516 = vtanh.f32 %v2593_v39  ;;  %v2594_v0 = vadd.f32 %v2588_v42, %v6518_v1 }
 0x816   :  { %v2604_v28 = vmul.f32 0.5, %v2594_v0  ;;  %v6994_v0 = vld [vmem:[#allocation12 + $0xf8] sm:$0xff] }
 0x818   :  { %5518 = vtanh.f32 %v2604_v28  ;;  %v7006_v28 = vld [vmem:[#allocation12 + $0xb8] sm:$0xff] }
 0x821   :  { %v5517_v53 = vpop.eup %5516 }
 0x822   :  { %v2609_v59 = vmul.f32 %v5517_v53, %v2598_v56  ;;  %v7009_v56 = vld [vmem:[#allocation12 + $0xb0] sm:$0xff]  ;;  %v7012_v53 = vld [vmem:[#allocation12 + $0x98] sm:$0xff] }
 0x824   :  { %v6967_v54 = vadd.f32 %v2609_v59, %v2608_v50  ;;  %v7015_v50 = vld [vmem:[#allocation12 + $0x90] sm:$0xff]  ;;  %v7018_v59 = vld [vmem:[#allocation12 + $0x78] sm:$0xff] }
 0x825   :  { %v5519_v10 = vpop.eup %5518  ;;  %7914 = vst [vmem:[#allocation26_spill] sm:$0xff] %v7015_v50 }
 0x826   :  { %5520 = vtanh.f32 %v6967_v54  ;;  %v2606_v39 = vadd.f32 1.0, %v5519_v10  ;;  %v7021_v10 = vld [vmem:[#allocation12 + $0x70] sm:$0xff] }
 0x828   :  { %v2607_v61 = vmul.f32 0.5, %v2606_v39  ;;  %v7024_v39 = vld [vmem:[#allocation12 + $0x58] sm:$0xff] }
 0x833   :  { %v5521_v1 = vpop.eup %5520 }
 0x834   :  { %v2612_v27 = vmul.f32 %v5521_v1, %v2607_v61  ;;  %v7027_v61 = vld [vmem:[#allocation12 + $0x50] sm:$0xff]  ;;  %v7030_v1 = vld [vmem:[#allocation12 + $0x38] sm:$0xff] }
 0x836   :  { %2911 = vmatmul.mubr.f32.vlgmr.msra.gmra.mxu1 %v2612_v27  ;;  %v2613_v17 = vmax.f32 %v2612_v27, 0.0 }
 0x837   :  { %5242 = vmatprep.mubr.msk.bf16.mxu1 %vm5712_vm0, %v7820_v47 }
 0x838   :  { %v2614_v42 = vpack.c.bf16 %v2613_v17, %v2613_v17  ;;  %v7033_v17 = vld [vmem:[#allocation12 + $0x30] sm:$0xff] }
 0x83a   :  { %5223 = vmatmul.mubr.bf16.vlgmr.msra.gmra.mxu0 %v2614_v42  ;;  %v7036_v42 = vld [vmem:[#allocation12 + $0x18] sm:$0xff] }
 0x83b   :  { %2918 = vmatpush1.msra.mxu0 %v6777_v55  ;;  %2981 = vmatprep.mubr.f32.mxu0 %v7820_v47 }
 0x83c   :  { %2919 = vmatprep.subr.mxu0 %v6779_v38 }
 0x83d   :  { %2920 = vmatpush1.msra.mxu0 %v6781_v43 }
 0x83e   :  { %2921 = vmatprep.subr.mxu0 %v6784_v58 }
 0x83f   :  { %2922 = vmatpush1.msra.mxu0 %v6788_v19 }
 0x840   :  { %2923 = vmatprep.subr.mxu0 %v6791_v32 }
 0x841   :  { %2924 = vmatpush1.msra.mxu0 %v6794_v37 }
 0x842   :  { %2925 = vmatprep.subr.mxu0 %v6797_v5 }
 0x843   :  { %2926 = vmatpush1.msra.mxu0 %v6800_v15 }
 0x844   :  { %2927 = vmatprep.subr.mxu0 %v6803_v60 }
 0x845   :  { %2928 = vmatpush1.msra.mxu0 %v6806_v34 }
 0x846   :  { %2929 = vmatprep.subr.mxu0 %v6982_v57 }
 0x847   :  { %2930 = vmatpush1.msra.mxu0 %v6985_v3 }
 0x848   :  { %2931 = vmatprep.subr.mxu0 %v6988_v21 }
 0x849   :  { %2932 = vmatpush1.msra.mxu0 %v6991_v30 }
 0x84a   :  { %2933 = vmatprep.subr.mxu0 %v6994_v0 }
 0x84b   :  { %2934 = vmatpush1.msra.mxu0 %v6997_v6 }
 0x84c   :  { %2935 = vmatprep.subr.mxu0 %v7000_v48 }
 0x84d   :  { %2936 = vmatpush1.msra.mxu0 %v7003_v52 }
 0x84e   :  { %2937 = vmatprep.subr.mxu0 %v7006_v28 }
 0x84f   :  { %2938 = vmatpush1.msra.mxu0 %v7009_v56 }
 0x850   :  { %2939 = vmatprep.subr.mxu0 %v7012_v53 }
 0x851   :  { %2940 = vmatpush1.msra.mxu0 %v7015_v50  ;;  %v7039_v50 = vld [vmem:[#allocation12 + $0x10] sm:$0xff] }
 0x852   :  { %2941 = vmatprep.subr.mxu0 %v7018_v59 }
 0x853   :  { %2942 = vmatpush1.msra.mxu0 %v7021_v10 }
 0x854   :  { %2943 = vmatprep.subr.mxu0 %v7024_v39 }
 0x855   :  { %2944 = vmatpush1.msra.mxu0 %v7027_v61 }
 0x856   :  { %2945 = vmatprep.subr.mxu0 %v7030_v1 }
 0x857   :  { %2946 = vmatpush1.msra.mxu0 %v7033_v17 }
 0x858   :  { %2947 = vmatprep.subr.mxu0 %v7036_v42 }
 0x859   :  { %2948 = vmatpush1.msra.mxu0 %v7039_v50 }
 0x85a   :  { %2982 = vmatmul.mubr.f32.vlgmr.msra.gmra.mxu0 %v2612_v27  ;;  %3243 = vmatprep.subr.mxu0 %v6832_v26  ;;  %v7915_v27 = vld [vmem:[#allocation25_spill] sm:$0xff] }
 0x85b   :  { %3244 = vmatpush1.msra.mxu0 %v6835_v29  ;;  %3307 = vmatprep.mubr.f32.mxu0 %v7820_v47 }
 0x85c   :  { %3245 = vmatprep.subr.mxu0 %v6838_v31 }
 0x85d   :  { %3246 = vmatpush1.msra.mxu0 %v6841_v35 }
 0x85e   :  { %3247 = vmatprep.subr.mxu0 %v6847_v44 }
 0x85f   :  { %3248 = vmatpush1.msra.mxu0 %v6850_v9 }
 0x860   :  { %3249 = vmatprep.subr.mxu0 %v6853_v12 }
 0x861   :  { %3250 = vmatpush1.msra.mxu0 %v6857_v14 }
 0x862   :  { %3251 = vmatprep.subr.mxu0 %v6863_v18 }
 0x863   :  { %3252 = vmatpush1.msra.mxu0 %v6866_v20 }
 0x864   :  { %3253 = vmatprep.subr.mxu0 %v6869_v22 }
 0x865   :  { %3254 = vmatpush1.msra.mxu0 %v6873_v24 }
 0x866   :  { %3255 = vmatprep.subr.mxu0 %v6879_v4 }
 0x867   :  { %3256 = vmatpush1.msra.mxu0 %v6882_v8 }
 0x868   :  { %3257 = vmatprep.subr.mxu0 %v6885_v62 }
 0x869   :  { %3258 = vmatpush1.msra.mxu0 %v6889_v46  ;;  %v7920_v46 = vld [vmem:[#allocation68_spill] sm:$0xff] }
 0x86a   :  { %3259 = vmatprep.subr.mxu0 %v6895_v49 }
 0x86b   :  { %3260 = vmatpush1.msra.mxu0 %v6898_v25 }
 0x86c   :  { %3261 = vmatprep.subr.mxu0 %v6901_v45 }
 0x86d   :  { %3262 = vmatpush1.msra.mxu0 %v6904_v36  ;;  %v7919_v36 = vld [vmem:[#allocation66_spill] sm:$0xff] }
 0x86e   :  { %3263 = vmatprep.subr.mxu0 %v6910_v11  ;;  %v7918_v11 = vld [vmem:[#allocation67_spill] sm:$0xff] }
 0x86f   :  { %3264 = vmatpush1.msra.mxu0 %v6912_v23 }
 0x870   :  { %3265 = vmatprep.subr.mxu0 %v6915_v7 }
 0x871   :  { %3266 = vmatpush1.msra.mxu0 %v6918_v63 }
 0x872   :  { %3267 = vmatprep.subr.mxu0 %v6925_v16  ;;  %v5452_v16 = vld [vmem:[%s7675_s12 + $0x38] sm:$0xff]  }
 0x873   :  { %3268 = vmatpush1.msra.mxu0 %v6928_v2  ;;  %5227 = vmatpush3.bf16.msra.mxu1 %v5452_v16  ;;  %v5455_v16 = vld [vmem:[%s7675_s12 + $0x20] sm:$0xff]  }
 0x874   :  { %3269 = vmatprep.subr.mxu0 %v6931_v13  ;;  %5228 = vmatprep.subr.bf16.mxu1 %v7820_v47 }
 0x875   :  { %3270 = vmatpush1.msra.mxu0 %v6934_v33  ;;  %v5453_v33 = vld [vmem:[%s7675_s12 + $0x30] sm:$0xff]  }
 0x876   :  { %3271 = vmatprep.subr.mxu0 %v6941_v41  ;;  %v7917_v41 = vld [vmem:[#allocation39_spill] sm:$0xff] }
 0x877   :  { %3272 = vmatpush1.msra.mxu0 %v6944_v51  ;;  %5229 = vmatpush3.bf16.msra.mxu1 %v5453_v33  ;;  %v5457_v33 = vld [vmem:[%s7675_s12 + $0x10] sm:$0xff]  }
 0x878   :  { %3273 = vmatprep.subr.mxu0 %v6947_v40  ;;  %5230 = vmatprep.subr.bf16.mxu1 %v7820_v47  ;;  %v5456_v40 = vld [vmem:[%s7675_s12 + $0x18] sm:$0xff]  }
 0x879   :  { %3274 = vmatpush1.msra.mxu0 %v7915_v27  ;;  %v5454_v27 = vld [vmem:[%s7675_s12 + $0x28] sm:$0xff]  }
 0x87a   :  { %5246 = vmatprep.subr.bf16.mxu0 %v7820_v47 }
 0x87b   :  { %5231 = vmatpush3.bf16.msra.mxu1 %v5454_v27  ;;  %v5458_v27 = vld [vmem:[%s7675_s12 + $0x8] sm:$0xff]  }
 0x87c   :  { %5232 = vmatprep.subr.bf16.mxu1 %v7820_v47 }
 0x87f   :  { %5233 = vmatpush3.bf16.msra.mxu1 %v5455_v16  ;;  %v5459_v16 = vld [vmem:[%s7675_s12] sm:$0xff]  }
 0x880   :  { %5234 = vmatprep.subr.bf16.mxu1 %v7820_v47 }
 0x883   :  { %5235 = vmatpush3.bf16.msra.mxu1 %v5456_v40  ;;  %v7916_v40 = vld [vmem:[#allocation37_spill] sm:$0xff] }
 0x884   :  { %5236 = vmatprep.subr.bf16.mxu1 %v7820_v47 }
 0x887   :  { %5237 = vmatpush3.bf16.msra.mxu1 %v5457_v33 }
 0x888   :  { %5238 = vmatprep.subr.bf16.mxu1 %v7820_v47 }
 0x88b   :  { %5239 = vmatpush3.bf16.msra.mxu1 %v5458_v27 }
 0x88c   :  { %5240 = vmatprep.subr.bf16.mxu1 %v7820_v47 }
 0x88f   :  { %5241 = vmatpush3.bf16.msra.mxu1 %v5459_v16 }
 0x890   :  { %3314 = vmatprep.subr.mxu1 %v7916_v40 }
 0x8f6   :  { %v2912_v7 = vpop.f32.mrf.mxu1 }
 0x8f7   :  { %v2988_v45 = vadd.f32 %v2912_v7, %v7919_v36 }
 0x8f8   :  { %v2914_v23 = vpop.f32.mrf.mxu1 }
 0x8f9   :  { %v2989_v27 = vadd.f32 %v2914_v23, %v7918_v11  ;;  %v2992_v49 = vmul.f32 0.5, %v2988_v45 }
 0x8fa   :  { %v2720_v51 = vpop.f32.mrf.mxu0 }
 0x8fb   :  { %v2721_v13 = vadd.f32 %v7917_v41, %v2720_v51  ;;  %v2996_v25 = vmul.f32 0.5, %v2989_v27  ;;  %v7921_v51 = vld [vmem:[#allocation69_spill] sm:$0xff] }
 0x8fc   :  { %v5224_v33 = vpop.f32.mrf.mxu0 }
 0x8fd   :  { %2727 = vst [vmem:[#allocation13 + $0x4] sm:$0x3] %v2721_v13  ;;  %5522 = vtanh.f32 %v2996_v25 }
 0x8fe   :  { %v2723_v2 = vpop.f32.mrf.mxu0  ;;  %5524 = vtanh.f32 %v2992_v49 }
 0x900   :  { %v5225_v63 = vpop.f32.mrf.mxu0 }
 0x90a   :  { %v5523_v13 = vpop.eup %5522 }
 0x90b   :  { %v5525_v2 = vpop.eup %5524  ;;  %v2998_v63 = vadd.f32 1.0, %v5523_v13  ;;  %v5467_v13 = vld [vmem:[%s7675_s12] sm:$0xff]  }
 0x90c   :  { %v2994_v8 = vadd.f32 1.0, %v5525_v2  ;;  %v7218_v2 = vld [vmem:[#allocation12 + $0x1f8] sm:$0xff] }
 0x90d   :  { %v2999_v4 = vmul.f32 0.5, %v2998_v63  ;;  %7943 = vst [vmem:[#allocation27_spill] sm:$0xff] %v7218_v2  ;;  %v7224_v63 = vld [vmem:[%s7676_s13] ss:$0 sm:$0xff] }
 0x90e   :  { %v2995_v11 = vmul.f32 0.5, %v2994_v8  ;;  %v5463_v8 = vld [vmem:[%s7675_s12 + $0x20] sm:$0xff]   ;;  %7944 = vst [vmem:[#allocation28_spill] sm:$0xff] %v7224_v63 }
 0x90f   :  { %v3005_v45 = vmul.f32 %v2999_v4, %v6967_v54  ;;  %v5462_v4 = vld [vmem:[%s7675_s12 + $0x28] sm:$0xff]   ;;  %v5464_v54 = vld [vmem:[%s7675_s12 + $0x18] sm:$0xff]  }
 0x91a   :  { %v2983_v16 = vpop.f32.mrf.mxu0 }
 0x91b   :  { %v2990_v40 = vadd.f32 %v2983_v16, %v7920_v46 }
 0x91c   :  { %v2985_v62 = vpop.f32.mrf.mxu0 }
 0x91d   :  { %5526 = vtanh.f32 %v2990_v40  ;;  %v2991_v41 = vadd.f32 %v2985_v62, %v7921_v51  ;;  %v5465_v51 = vld [vmem:[%s7675_s12 + $0x10] sm:$0xff]  }
 0x91f   :  { %v3001_v33 = vmul.f32 0.5, %v2991_v41  ;;  %v5466_v41 = vld [vmem:[%s7675_s12 + $0x8] sm:$0xff]  }
 0x921   :  { %5528 = vtanh.f32 %v3001_v33 }
 0x92a   :  { %v5527_v36 = vpop.eup %5526 }
 0x92b   :  { %v3006_v25 = vmul.f32 %v5527_v36, %v2995_v11 }
 0x92d   :  { %v7116_v49 = vadd.f32 %v3006_v25, %v3005_v45 }
 0x92e   :  { %v5529_v46 = vpop.eup %5528 }
 0x92f   :  { %5530 = vtanh.f32 %v7116_v49  ;;  %v3003_v23 = vadd.f32 1.0, %v5529_v46 }
 0x931   :  { %v3004_v7 = vmul.f32 0.5, %v3003_v23 }
 0x93c   :  { %v5531_v62 = vpop.eup %5530 }
 0x93d   :  { %v3009_v27 = vmul.f32 %v5531_v62, %v3004_v7  ;;  %v7945_v7 = vld [vmem:[#allocation71_spill] sm:$0xff] }
 0x93f   :  { %3308 = vmatmul.mubr.f32.vlgmr.msra.gmra.mxu0 %v3009_v27  ;;  %v3010_v16 = vmax.f32 %v3009_v27, 0.0 }
 0x940   :  { %5262 = vmatprep.mubr.msk.bf16.mxu0 %vm5712_vm0, %v7820_v47 }
 0x941   :  { %v3011_v40 = vpack.c.bf16 %v3010_v16, %v3010_v16 }
 0x943   :  { %5243 = vmatmul.mubr.bf16.vlgmr.msra.gmra.mxu1 %v3011_v40 }
 0x944   :  { %3315 = vmatpush1.msra.mxu1 %v6777_v55  ;;  %3378 = vmatprep.mubr.f32.mxu1 %v7820_v47  ;;  %v7922_v55 = vld [vmem:[#allocation26_spill] sm:$0xff] }
 0x945   :  { %3316 = vmatprep.subr.mxu1 %v6779_v38  ;;  %v7923_v38 = vld [vmem:[#allocation41_spill] sm:$0xff] }
 0x946   :  { %3317 = vmatpush1.msra.mxu1 %v6781_v43  ;;  %v7924_v43 = vld [vmem:[#allocation43_spill] sm:$0xff] }
 0x947   :  { %3318 = vmatprep.subr.mxu1 %v6784_v58  ;;  %v7925_v58 = vld [vmem:[#allocation45_spill] sm:$0xff] }
 0x948   :  { %3319 = vmatpush1.msra.mxu1 %v6788_v19  ;;  %v7926_v19 = vld [vmem:[#allocation47_spill] sm:$0xff] }
 0x949   :  { %3320 = vmatprep.subr.mxu1 %v6791_v32  ;;  %v7927_v32 = vld [vmem:[#allocation49_spill] sm:$0xff] }
 0x94a   :  { %3321 = vmatpush1.msra.mxu1 %v6794_v37  ;;  %v7928_v37 = vld [vmem:[#allocation51_spill] sm:$0xff] }
 0x94b   :  { %3322 = vmatprep.subr.mxu1 %v6797_v5  ;;  %v7929_v5 = vld [vmem:[#allocation53_spill] sm:$0xff] }
 0x94c   :  { %3323 = vmatpush1.msra.mxu1 %v6800_v15  ;;  %v7930_v15 = vld [vmem:[#allocation55_spill] sm:$0xff] }
 0x94d   :  { %3324 = vmatprep.subr.mxu1 %v6803_v60  ;;  %v7931_v60 = vld [vmem:[#allocation57_spill] sm:$0xff] }
 0x94e   :  { %3325 = vmatpush1.msra.mxu1 %v6806_v34  ;;  %v7932_v34 = vld [vmem:[#allocation59_spill] sm:$0xff] }
 0x94f   :  { %3326 = vmatprep.subr.mxu1 %v6982_v57 }
 0x950   :  { %3327 = vmatpush1.msra.mxu1 %v6985_v3 }
 0x951   :  { %3328 = vmatprep.subr.mxu1 %v6988_v21 }
 0x952   :  { %3329 = vmatpush1.msra.mxu1 %v6991_v30 }
 0x953   :  { %3330 = vmatprep.subr.mxu1 %v6994_v0 }
 0x954   :  { %3331 = vmatpush1.msra.mxu1 %v6997_v6 }
 0x955   :  { %3332 = vmatprep.subr.mxu1 %v7000_v48 }
 0x956   :  { %3333 = vmatpush1.msra.mxu1 %v7003_v52 }
 0x957   :  { %3334 = vmatprep.subr.mxu1 %v7006_v28 }
 0x958   :  { %3335 = vmatpush1.msra.mxu1 %v7009_v56 }
 0x959   :  { %3336 = vmatprep.subr.mxu1 %v7012_v53 }
 0x95a   :  { %3337 = vmatpush1.msra.mxu1 %v7922_v55 }
 0x95b   :  { %3338 = vmatprep.subr.mxu1 %v7018_v59 }
 0x95c   :  { %3339 = vmatpush1.msra.mxu1 %v7021_v10 }
 0x95d   :  { %3340 = vmatprep.subr.mxu1 %v7024_v39 }
 0x95e   :  { %3341 = vmatpush1.msra.mxu1 %v7027_v61 }
 0x95f   :  { %3342 = vmatprep.subr.mxu1 %v7030_v1 }
 0x960   :  { %3343 = vmatpush1.msra.mxu1 %v7033_v17 }
 0x961   :  { %3344 = vmatprep.subr.mxu1 %v7036_v42 }
 0x962   :  { %3345 = vmatpush1.msra.mxu1 %v7039_v50 }
 0x963   :  { %3379 = vmatmul.mubr.f32.vlgmr.msra.gmra.mxu1 %v3009_v27  ;;  %3640 = vmatprep.subr.mxu1 %v6832_v26  ;;  %v7933_v26 = vld [vmem:[#allocation61_spill] sm:$0xff]  ;;  %v7946_v27 = vld [vmem:[#allocation70_spill] sm:$0xff] }
 0x964   :  { %3641 = vmatpush1.msra.mxu1 %v6835_v29  ;;  %3704 = vmatprep.mubr.f32.mxu1 %v7820_v47  ;;  %v7934_v29 = vld [vmem:[#allocation63_spill] sm:$0xff] }
 0x965   :  { %3642 = vmatprep.subr.mxu1 %v6838_v31  ;;  %v7935_v31 = vld [vmem:[#allocation18_spill] sm:$0xff] }
 0x966   :  { %3643 = vmatpush1.msra.mxu1 %v6841_v35  ;;  %v7936_v35 = vld [vmem:[#allocation19_spill] sm:$0xff] }
 0x967   :  { %3644 = vmatprep.subr.mxu1 %v6847_v44  ;;  %v7937_v44 = vld [vmem:[#allocation20_spill] sm:$0xff] }
 0x968   :  { %3645 = vmatpush1.msra.mxu1 %v6850_v9  ;;  %v7938_v9 = vld [vmem:[#allocation21_spill] sm:$0xff] }
 0x969   :  { %3646 = vmatprep.subr.mxu1 %v6853_v12  ;;  %v7939_v12 = vld [vmem:[#allocation22_spill] sm:$0xff] }
 0x96a   :  { %3647 = vmatpush1.msra.mxu1 %v6857_v14  ;;  %v7940_v14 = vld [vmem:[#allocation23_spill] sm:$0xff] }
 0x96b   :  { %3648 = vmatprep.subr.mxu1 %v6863_v18  ;;  %v7941_v18 = vld [vmem:[#allocation24_spill] sm:$0xff] }
 0x96c   :  { %3649 = vmatpush1.msra.mxu1 %v6866_v20  ;;  %v7942_v20 = vld [vmem:[#allocation25_spill] sm:$0xff] }
 0x96d   :  { %3650 = vmatprep.subr.mxu1 %v6869_v22  ;;  %v5460_v22 = vld [vmem:[%s7675_s12 + $0x38] sm:$0xff]  }
 0x96e   :  { %3651 = vmatpush1.msra.mxu1 %v6873_v24  ;;  %5247 = vmatpush3.bf16.msra.mxu0 %v5460_v22  ;;  %v5461_v24 = vld [vmem:[%s7675_s12 + $0x30] sm:$0xff]  }
 0x96f   :  { %3652 = vmatprep.subr.mxu1 %v7923_v38  ;;  %5248 = vmatprep.subr.bf16.mxu0 %v7820_v47 }
 0x970   :  { %3653 = vmatpush1.msra.mxu1 %v7924_v43 }
 0x971   :  { %3654 = vmatprep.subr.mxu1 %v7925_v58  ;;  %v7947_v58 = vld [vmem:[#allocation72_spill] sm:$0xff] }
 0x972   :  { %3655 = vmatpush1.msra.mxu1 %v7926_v19  ;;  %5249 = vmatpush3.bf16.msra.mxu0 %v5461_v24 }
 0x973   :  { %3656 = vmatprep.subr.mxu1 %v7927_v32  ;;  %5250 = vmatprep.subr.bf16.mxu0 %v7820_v47 }
 0x974   :  { %3657 = vmatpush1.msra.mxu1 %v7928_v37  ;;  %v7948_v37 = vld [vmem:[#allocation73_spill] sm:$0xff] }
 0x975   :  { %3658 = vmatprep.subr.mxu1 %v7929_v5 }
 0x976   :  { %3659 = vmatpush1.msra.mxu1 %v7930_v15  ;;  %5251 = vmatpush3.bf16.msra.mxu0 %v5462_v4 }
 0x977   :  { %3660 = vmatprep.subr.mxu1 %v7931_v60  ;;  %5252 = vmatprep.subr.bf16.mxu0 %v7820_v47 }
 0x978   :  { %3661 = vmatpush1.msra.mxu1 %v7932_v34 }
 0x979   :  { %3662 = vmatprep.subr.mxu1 %v7933_v26 }
 0x97a   :  { %3663 = vmatpush1.msra.mxu1 %v7934_v29  ;;  %5253 = vmatpush3.bf16.msra.mxu0 %v5463_v8 }
 0x97b   :  { %3664 = vmatprep.subr.mxu1 %v7935_v31  ;;  %5254 = vmatprep.subr.bf16.mxu0 %v7820_v47 }
 0x97c   :  { %3665 = vmatpush1.msra.mxu1 %v7936_v35 }
 0x97d   :  { %3666 = vmatprep.subr.mxu1 %v7937_v44 }
 0x97e   :  { %3667 = vmatpush1.msra.mxu1 %v7938_v9  ;;  %5255 = vmatpush3.bf16.msra.mxu0 %v5464_v54 }
 0x97f   :  { %3668 = vmatprep.subr.mxu1 %v7939_v12  ;;  %5256 = vmatprep.subr.bf16.mxu0 %v7820_v47 }
 0x980   :  { %3669 = vmatpush1.msra.mxu1 %v7940_v14 }
 0x981   :  { %3670 = vmatprep.subr.mxu1 %v7941_v18 }
 0x982   :  { %3671 = vmatpush1.msra.mxu1 %v7942_v20  ;;  %5257 = vmatpush3.bf16.msra.mxu0 %v5465_v51  ;;  %v7237_v51 = vld [vmem:[#allocation12 + $0x1f0] sm:$0xff] }
 0x983   :  { %5266 = vmatprep.subr.bf16.mxu1 %v7820_v47  ;;  %5258 = vmatprep.subr.bf16.mxu0 %v7820_v47 }
 0x986   :  { %5259 = vmatpush3.bf16.msra.mxu0 %v5466_v41  ;;  %v7239_v41 = vld [vmem:[#allocation12 + $0x1d8] sm:$0xff] }
 0x987   :  { %5260 = vmatprep.subr.bf16.mxu0 %v7820_v47 }
 0x98a   :  { %5261 = vmatpush3.bf16.msra.mxu0 %v5467_v13  ;;  %v7244_v13 = vld [vmem:[#allocation12 + $0x1b8] sm:$0xff] }
 0x98b   :  { %3711 = vmatprep.subr.mxu0 %v7218_v2 }
 0x9ff   :  { %v3309_v46 = vpop.f32.mrf.mxu0 }
 0xa00   :  { %v3385_v16 = vadd.f32 %v3309_v46, %v7946_v27  ;;  %v7263_v46 = vld [vmem:[#allocation12 + $0x158] sm:$0xff]  ;;  %v7359_v27 = vld [vmem:[#allocation12 + $0xc8] sm:$0xff] }
 0xa01   :  { %v3311_v23 = vpop.f32.mrf.mxu0 }
 0xa02   :  { %v3386_v62 = vadd.f32 %v3311_v23, %v7945_v7  ;;  %v3389_v38 = vmul.f32 0.5, %v3385_v16  ;;  %v7266_v23 = vld [vmem:[#allocation12 + $0x150] sm:$0xff]  ;;  %v7354_v7 = vld [vmem:[#allocation12 + $0xe8] sm:$0xff]  ;;  %v7362_v16 = vld [vmem:[#allocation12 + $0xc0] sm:$0xff] }
 0xa03   :  { %v3117_v33 = vpop.f32.mrf.mxu1 }
 0xa04   :  { %v3118_v11 = vadd.f32 %v7224_v63, %v3117_v33  ;;  %v3393_v40 = vmul.f32 0.5, %v3386_v62  ;;  %v7248_v33 = vld [vmem:[#allocation12 + $0x1b0] sm:$0xff]  ;;  %v7356_v62 = vld [vmem:[#allocation12 + $0xe0] sm:$0xff] }
 0xa05   :  { %v5244_v36 = vpop.f32.mrf.mxu1 }
 0xa06   :  { %3124 = vst [vmem:[#allocation13 + $0x6] sm:$0x3] %v3118_v11  ;;  %5532 = vtanh.f32 %v3393_v40  ;;  %v7251_v11 = vld [vmem:[#allocation12 + $0x198] sm:$0xff]  ;;  %v7254_v36 = vld [vmem:[#allocation12 + $0x190] sm:$0xff]  ;;  %v5472_v40 = vld [vmem:[%s7675_s12 + $0x18] sm:$0xff]  }
 0xa07   :  { %v3120_v45 = vpop.f32.mrf.mxu1  ;;  %5534 = vtanh.f32 %v3389_v38  ;;  %v7369_v38 = vld [vmem:[#allocation12 + $0xa8] sm:$0xff] }
 0xa08   :  { %v7257_v45 = vld [vmem:[#allocation12 + $0x178] sm:$0xff] }
 0xa09   :  { %v5245_v25 = vpop.f32.mrf.mxu1 }
 0xa0a   :  { %v7260_v25 = vld [vmem:[#allocation12 + $0x170] sm:$0xff] }
 0xa13   :  { %v5533_v15 = vpop.eup %5532 }
 0xa14   :  { %v5535_v60 = vpop.eup %5534  ;;  %v3395_v34 = vadd.f32 1.0, %v5533_v15  ;;  %v7391_v15 = vld [vmem:[#allocation12 + $0x48] sm:$0xff] }
 0xa15   :  { %v3391_v29 = vadd.f32 1.0, %v5535_v60  ;;  %v7394_v60 = vld [vmem:[#allocation12 + $0x40] sm:$0xff] }
 0xa16   :  { %v3396_v31 = vmul.f32 0.5, %v3395_v34  ;;  %v5474_v34 = vld [vmem:[%s7675_s12 + $0x8] sm:$0xff]  }
 0xa17   :  { %v3392_v35 = vmul.f32 0.5, %v3391_v29  ;;  %v7404_v29 = vld [vmem:[#allocation12 + $0x20] sm:$0xff] }
 0xa18   :  { %v3402_v9 = vmul.f32 %v3396_v31, %v7116_v49  ;;  %v7241_v49 = vld [vmem:[#allocation12 + $0x1d0] sm:$0xff]  ;;  %v7407_v31 = vld [vmem:[#allocation12 + $0x8] sm:$0xff] }
 0xa23   :  { %v3380_v43 = vpop.f32.mrf.mxu1 }
 0xa24   :  { %v3387_v19 = vadd.f32 %v3380_v43, %v7947_v58  ;;  %v7372_v43 = vld [vmem:[#allocation12 + $0xa0] sm:$0xff]  ;;  %v7375_v58 = vld [vmem:[#allocation12 + $0x88] sm:$0xff] }
 0xa25   :  { %v3382_v32 = vpop.f32.mrf.mxu1 }
 0xa26   :  { %5536 = vtanh.f32 %v3387_v19  ;;  %v3388_v5 = vadd.f32 %v3382_v32, %v7948_v37  ;;  %v7378_v19 = vld [vmem:[#allocation12 + $0x80] sm:$0xff]  ;;  %v5473_v32 = vld [vmem:[%s7675_s12 + $0x10] sm:$0xff]   ;;  %v7385_v37 = vld [vmem:[#allocation12 + $0x68] sm:$0xff] }
 0xa28   :  { %v3398_v26 = vmul.f32 0.5, %v3388_v5  ;;  %v7388_v5 = vld [vmem:[#allocation12 + $0x60] sm:$0xff] }
 0xa2a   :  { %5538 = vtanh.f32 %v3398_v26  ;;  %v7401_v26 = vld [vmem:[#allocation12 + $0x28] sm:$0xff] }
 0xa33   :  { %v5537_v44 = vpop.eup %5536 }
 0xa34   :  { %v3403_v12 = vmul.f32 %v5537_v44, %v3392_v35  ;;  %v7410_v35 = vld [vmem:[#allocation12] sm:$0xff]  ;;  %v5475_v44 = vld [vmem:[%s7675_s12] sm:$0xff]  }
 0xa35   :  { %7949 = vst [vmem:[#allocation29_spill] sm:$0xff] %v7410_v35 }
 0xa36   :  { %v7232_v14 = vadd.f32 %v3403_v12, %v3402_v9 }
 0xa37   :  { %v5539_v18 = vpop.eup %5538 }
 0xa38   :  { %5540 = vtanh.f32 %v7232_v14  ;;  %v3400_v20 = vadd.f32 1.0, %v5539_v18 }
 0xa3a   :  { %v3401_v22 = vmul.f32 0.5, %v3400_v20 }
 0xa45   :  { %v5541_v24 = vpop.eup %5540 }
 0xa46   :  { %v3406_v4 = vmul.f32 %v5541_v24, %v3401_v22 }
 0xa48   :  { %3705 = vmatmul.mubr.f32.vlgmr.msra.gmra.mxu1 %v3406_v4  ;;  %v3407_v8 = vmax.f32 %v3406_v4, 0.0 }
 0xa49   :  { %5282 = vmatprep.mubr.msk.bf16.mxu1 %vm5712_vm0, %v7820_v47 }
 0xa4a   :  { %v3408_v54 = vpack.c.bf16 %v3407_v8, %v3407_v8  ;;  %v7950_v8 = vld [vmem:[#allocation75_spill] sm:$0xff] }
 0xa4c   :  { %5263 = vmatmul.mubr.bf16.vlgmr.msra.gmra.mxu0 %v3408_v54 }
 0xa4d   :  { %3712 = vmatpush1.msra.mxu0 %v7237_v51  ;;  %3775 = vmatprep.mubr.f32.mxu0 %v7820_v47 }
 0xa4e   :  { %3713 = vmatprep.subr.mxu0 %v7239_v41 }
 0xa4f   :  { %3714 = vmatpush1.msra.mxu0 %v7241_v49 }
 0xa50   :  { %3715 = vmatprep.subr.mxu0 %v7244_v13 }
 0xa51   :  { %3716 = vmatpush1.msra.mxu0 %v7248_v33 }
 0xa52   :  { %3717 = vmatprep.subr.mxu0 %v7251_v11 }
 0xa53   :  { %3718 = vmatpush1.msra.mxu0 %v7254_v36 }
 0xa54   :  { %3719 = vmatprep.subr.mxu0 %v7257_v45 }
 0xa55   :  { %3720 = vmatpush1.msra.mxu0 %v7260_v25 }
 0xa56   :  { %3721 = vmatprep.subr.mxu0 %v7263_v46 }
 0xa57   :  { %3722 = vmatpush1.msra.mxu0 %v7266_v23 }
 0xa58   :  { %3723 = vmatprep.subr.mxu0 %v6982_v57  ;;  %v7292_v57 = vld [vmem:[#allocation12 + $0x1e8] sm:$0xff] }
 0xa59   :  { %3724 = vmatpush1.msra.mxu0 %v6985_v3  ;;  %v7295_v3 = vld [vmem:[#allocation12 + $0x1e0] sm:$0xff] }
 0xa5a   :  { %3725 = vmatprep.subr.mxu0 %v6988_v21  ;;  %v7298_v21 = vld [vmem:[#allocation12 + $0x1c8] sm:$0xff] }
 0xa5b   :  { %3726 = vmatpush1.msra.mxu0 %v6991_v30  ;;  %v7301_v30 = vld [vmem:[#allocation12 + $0x1c0] sm:$0xff] }
 0xa5c   :  { %3727 = vmatprep.subr.mxu0 %v6994_v0  ;;  %v5468_v0 = vld [vmem:[%s7675_s12 + $0x38] sm:$0xff]  }
 0xa5d   :  { %3728 = vmatpush1.msra.mxu0 %v6997_v6  ;;  %v7307_v6 = vld [vmem:[#allocation12 + $0x1a8] sm:$0xff]  ;;  %5267 = vmatpush3.bf16.msra.mxu1 %v5468_v0  ;;  %v7951_v0 = vld [vmem:[#allocation74_spill] sm:$0xff] }
 0xa5e   :  { %3729 = vmatprep.subr.mxu0 %v7000_v48  ;;  %v7310_v48 = vld [vmem:[#allocation12 + $0x1a0] sm:$0xff]  ;;  %5268 = vmatprep.subr.bf16.mxu1 %v7820_v47 }
 0xa5f   :  { %3730 = vmatpush1.msra.mxu0 %v7003_v52  ;;  %v7313_v52 = vld [vmem:[#allocation12 + $0x188] sm:$0xff] }
 0xa60   :  { %3731 = vmatprep.subr.mxu0 %v7006_v28  ;;  %v7317_v28 = vld [vmem:[#allocation12 + $0x180] sm:$0xff] }
 0xa61   :  { %3732 = vmatpush1.msra.mxu0 %v7009_v56  ;;  %v5469_v56 = vld [vmem:[%s7675_s12 + $0x30] sm:$0xff]  }
 0xa62   :  { %3733 = vmatprep.subr.mxu0 %v7012_v53  ;;  %v7323_v53 = vld [vmem:[#allocation12 + $0x168] sm:$0xff]  ;;  %5269 = vmatpush3.bf16.msra.mxu1 %v5469_v56 }
 0xa63   :  { %3734 = vmatpush1.msra.mxu0 %v7922_v55  ;;  %5270 = vmatprep.subr.bf16.mxu1 %v7820_v47  ;;  %v5471_v55 = vld [vmem:[%s7675_s12 + $0x20] sm:$0xff]  }
 0xa64   :  { %3735 = vmatprep.subr.mxu0 %v7018_v59  ;;  %v7329_v59 = vld [vmem:[#allocation12 + $0x148] sm:$0xff] }
 0xa65   :  { %3736 = vmatpush1.msra.mxu0 %v7021_v10  ;;  %v7333_v10 = vld [vmem:[#allocation12 + $0x140] sm:$0xff] }
 0xa66   :  { %3737 = vmatprep.subr.mxu0 %v7024_v39  ;;  %v5470_v39 = vld [vmem:[%s7675_s12 + $0x28] sm:$0xff]  }
 0xa67   :  { %3738 = vmatpush1.msra.mxu0 %v7027_v61  ;;  %v7339_v61 = vld [vmem:[#allocation12 + $0x128] sm:$0xff]  ;;  %5271 = vmatpush3.bf16.msra.mxu1 %v5470_v39 }
 0xa68   :  { %3739 = vmatprep.subr.mxu0 %v7030_v1  ;;  %v7342_v1 = vld [vmem:[#allocation12 + $0x120] sm:$0xff]  ;;  %5272 = vmatprep.subr.bf16.mxu1 %v7820_v47 }
 0xa69   :  { %3740 = vmatpush1.msra.mxu0 %v7033_v17  ;;  %v7345_v17 = vld [vmem:[#allocation12 + $0x108] sm:$0xff] }
 0xa6a   :  { %3741 = vmatprep.subr.mxu0 %v7036_v42  ;;  %v7348_v42 = vld [vmem:[#allocation12 + $0x100] sm:$0xff] }
 0xa6b   :  { %3742 = vmatpush1.msra.mxu0 %v7039_v50  ;;  %v7326_v50 = vld [vmem:[#allocation12 + $0x160] sm:$0xff]  ;;  %5273 = vmatpush3.bf16.msra.mxu1 %v5471_v55 }
 0xa6c   :  { %3776 = vmatmul.mubr.f32.vlgmr.msra.gmra.mxu0 %v3406_v4  ;;  %4037 = vmatprep.subr.mxu0 %v7292_v57 }
 0xa6d   :  { %4101 = vmatprep.mubr.f32.mxu0 %v7820_v47  ;;  %4038 = vmatpush1.msra.mxu0 %v7295_v3 }
 0xa6e   :  { %4039 = vmatprep.subr.mxu0 %v7298_v21  ;;  %5274 = vmatprep.subr.bf16.mxu1 %v7820_v47 }
 0xa6f   :  { %4040 = vmatpush1.msra.mxu0 %v7301_v30  ;;  %5275 = vmatpush3.bf16.msra.mxu1 %v5472_v40 }
 0xa70   :  { %4041 = vmatprep.subr.mxu0 %v7307_v6  ;;  %5276 = vmatprep.subr.bf16.mxu1 %v7820_v47 }
 0xa71   :  { %4042 = vmatpush1.msra.mxu0 %v7310_v48 }
 0xa72   :  { %4043 = vmatprep.subr.mxu0 %v7313_v52 }
 0xa73   :  { %4044 = vmatpush1.msra.mxu0 %v7317_v28  ;;  %5277 = vmatpush3.bf16.msra.mxu1 %v5473_v32  ;;  %v7952_v32 = vld [vmem:[#allocation76_spill] sm:$0xff] }
 0xa74   :  { %4045 = vmatprep.subr.mxu0 %v7323_v53  ;;  %5278 = vmatprep.subr.bf16.mxu1 %v7820_v47 }
 0xa75   :  { %4046 = vmatpush1.msra.mxu0 %v7326_v50 }
 0xa76   :  { %4047 = vmatprep.subr.mxu0 %v7329_v59 }
 0xa77   :  { %4048 = vmatpush1.msra.mxu0 %v7333_v10  ;;  %5279 = vmatpush3.bf16.msra.mxu1 %v5474_v34 }
 0xa78   :  { %4049 = vmatprep.subr.mxu0 %v7339_v61  ;;  %5280 = vmatprep.subr.bf16.mxu1 %v7820_v47 }
 0xa79   :  { %4050 = vmatpush1.msra.mxu0 %v7342_v1 }
 0xa7a   :  { %4051 = vmatprep.subr.mxu0 %v7345_v17 }
 0xa7b   :  { %4052 = vmatpush1.msra.mxu0 %v7348_v42  ;;  %5281 = vmatpush3.bf16.msra.mxu1 %v5475_v44 }
 0xa7c   :  { %4053 = vmatprep.subr.mxu0 %v7354_v7  ;;  %4108 = vmatprep.subr.mxu1 %v7218_v2 }
 0xa7d   :  { %4054 = vmatpush1.msra.mxu0 %v7356_v62 }
 0xa7e   :  { %4055 = vmatprep.subr.mxu0 %v7359_v27 }
 0xa7f   :  { %4056 = vmatpush1.msra.mxu0 %v7362_v16 }
 0xa80   :  { %4057 = vmatprep.subr.mxu0 %v7369_v38 }
 0xa81   :  { %4058 = vmatpush1.msra.mxu0 %v7372_v43 }
 0xa82   :  { %4059 = vmatprep.subr.mxu0 %v7375_v58 }
 0xa83   :  { %4060 = vmatpush1.msra.mxu0 %v7378_v19 }
 0xa84   :  { %4061 = vmatprep.subr.mxu0 %v7385_v37 }
 0xa85   :  { %4062 = vmatpush1.msra.mxu0 %v7388_v5 }
 0xa86   :  { %4063 = vmatprep.subr.mxu0 %v7391_v15 }
 0xa87   :  { %4064 = vmatpush1.msra.mxu0 %v7394_v60 }
 0xa88   :  { %4065 = vmatprep.subr.mxu0 %v7401_v26 }
 0xa89   :  { %4066 = vmatpush1.msra.mxu0 %v7404_v29 }
 0xa8a   :  { %4067 = vmatprep.subr.mxu0 %v7407_v31 }
 0xa8b   :  { %4068 = vmatpush1.msra.mxu0 %v7410_v35 }
 0xa8c   :  { %5286 = vmatprep.subr.bf16.mxu0 %v7820_v47 }
 0xb08   :  { %v3706_v24 = vpop.f32.mrf.mxu1 }
 0xb09   :  { %v3782_v56 = vadd.f32 %v3706_v24, %v7951_v0 }
 0xb0a   :  { %v3708_v4 = vpop.f32.mrf.mxu1 }
 0xb0b   :  { %v3783_v54 = vadd.f32 %v3708_v4, %v7950_v8  ;;  %v3786_v55 = vmul.f32 0.5, %v3782_v56 }
 0xb0c   :  { %v3514_v9 = vpop.f32.mrf.mxu0 }
 0xb0d   :  { %v3515_v12 = vadd.f32 %v7224_v63, %v3514_v9  ;;  %v3790_v39 = vmul.f32 0.5, %v3783_v54  ;;  %v7953_v9 = vld [vmem:[#allocation77_spill] sm:$0xff] }
 0xb0e   :  { %v5264_v18 = vpop.f32.mrf.mxu0 }
 0xb0f   :  { %3521 = vst [vmem:[#allocation13 + $0x8] sm:$0x3] %v3515_v12  ;;  %5542 = vtanh.f32 %v3790_v39 }
 0xb10   :  { %v3517_v20 = vpop.f32.mrf.mxu0  ;;  %5544 = vtanh.f32 %v3786_v55 }
 0xb12   :  { %v5265_v22 = vpop.f32.mrf.mxu0 }
 0xb1c   :  { %v5543_v12 = vpop.eup %5542 }
 0xb1d   :  { %v5545_v20 = vpop.eup %5544  ;;  %v3792_v22 = vadd.f32 1.0, %v5543_v12  ;;  %v7460_v12 = vld [vmem:[#allocation12 + $0xd8] sm:$0xff] }
 0xb1e   :  { %v3788_v2 = vadd.f32 1.0, %v5545_v20  ;;  %v7463_v20 = vld [vmem:[#allocation12 + $0xd0] sm:$0xff] }
 0xb1f   :  { %v3793_v35 = vmul.f32 0.5, %v3792_v22  ;;  %v7466_v22 = vld [vmem:[#allocation12 + $0xb8] sm:$0xff] }
 0xb20   :  { %v3789_v4 = vmul.f32 0.5, %v3788_v2  ;;  %v7442_v2 = vld [vmem:[#allocation12 + $0x138] sm:$0xff] }
 0xb21   :  { %v3799_v8 = vmul.f32 %v3793_v35, %v7232_v14  ;;  %v7445_v14 = vld [vmem:[#allocation12 + $0x130] sm:$0xff]  ;;  %v7448_v35 = vld [vmem:[#allocation12 + $0x118] sm:$0xff] }
 0xb2c   :  { %v3777_v40 = vpop.f32.mrf.mxu0 }
 0xb2d   :  { %v3784_v34 = vadd.f32 %v3777_v40, %v7952_v32 }
 0xb2e   :  { %v3779_v44 = vpop.f32.mrf.mxu0 }
 0xb2f   :  { %5546 = vtanh.f32 %v3784_v34  ;;  %v3785_v18 = vadd.f32 %v3779_v44, %v7953_v9  ;;  %v7451_v44 = vld [vmem:[#allocation12 + $0x110] sm:$0xff]  ;;  %v7454_v9 = vld [vmem:[#allocation12 + $0xf8] sm:$0xff] }
 0xb31   :  { %v3795_v63 = vmul.f32 0.5, %v3785_v18  ;;  %v7457_v18 = vld [vmem:[#allocation12 + $0xf0] sm:$0xff] }
 0xb33   :  { %5548 = vtanh.f32 %v3795_v63 }
 0xb3c   :  { %v5547_v24 = vpop.eup %5546 }
 0xb3d   :  { %v3800_v54 = vmul.f32 %v5547_v24, %v3789_v4  ;;  %v7469_v4 = vld [vmem:[#allocation12 + $0xb0] sm:$0xff]  ;;  %v7472_v24 = vld [vmem:[#allocation12 + $0x98] sm:$0xff] }
 0xb3f   :  { %v7427_v0 = vadd.f32 %v3800_v54, %v3799_v8  ;;  %v7475_v8 = vld [vmem:[#allocation12 + $0x90] sm:$0xff]  ;;  %v7478_v54 = vld [vmem:[#allocation12 + $0x78] sm:$0xff] }
 0xb40   :  { %v5549_v56 = vpop.eup %5548  ;;  %7954 = vst [vmem:[#allocation30_spill] sm:$0xff] %v7475_v8 }
 0xb41   :  { %5550 = vtanh.f32 %v7427_v0  ;;  %v3797_v39 = vadd.f32 1.0, %v5549_v56  ;;  %v7481_v56 = vld [vmem:[#allocation12 + $0x70] sm:$0xff] }
 0xb43   :  { %v3798_v55 = vmul.f32 0.5, %v3797_v39  ;;  %v7484_v39 = vld [vmem:[#allocation12 + $0x58] sm:$0xff] }
 0xb4e   :  { %v5551_v40 = vpop.eup %5550 }
 0xb4f   :  { %v3803_v32 = vmul.f32 %v5551_v40, %v3798_v55  ;;  %v7487_v55 = vld [vmem:[#allocation12 + $0x50] sm:$0xff]  ;;  %v7490_v40 = vld [vmem:[#allocation12 + $0x38] sm:$0xff] }
 0xb51   :  { %4102 = vmatmul.mubr.f32.vlgmr.msra.gmra.mxu0 %v3803_v32  ;;  %v3804_v34 = vmax.f32 %v3803_v32, 0.0 }
 0xb52   :  { %5302 = vmatprep.mubr.msk.bf16.mxu0 %vm5712_vm0, %v7820_v47 }
 0xb53   :  { %v3805_v63 = vpack.c.bf16 %v3804_v34, %v3804_v34  ;;  %v7493_v34 = vld [vmem:[#allocation12 + $0x30] sm:$0xff] }
 0xb55   :  { %5283 = vmatmul.mubr.bf16.vlgmr.msra.gmra.mxu1 %v3805_v63  ;;  %v7496_v63 = vld [vmem:[#allocation12 + $0x18] sm:$0xff] }
 0xb56   :  { %4109 = vmatpush1.msra.mxu1 %v7237_v51  ;;  %4172 = vmatprep.mubr.f32.mxu1 %v7820_v47 }
 0xb57   :  { %4110 = vmatprep.subr.mxu1 %v7239_v41 }
 0xb58   :  { %4111 = vmatpush1.msra.mxu1 %v7241_v49 }
 0xb59   :  { %4112 = vmatprep.subr.mxu1 %v7244_v13 }
 0xb5a   :  { %4113 = vmatpush1.msra.mxu1 %v7248_v33 }
 0xb5b   :  { %4114 = vmatprep.subr.mxu1 %v7251_v11 }
 0xb5c   :  { %4115 = vmatpush1.msra.mxu1 %v7254_v36 }
 0xb5d   :  { %4116 = vmatprep.subr.mxu1 %v7257_v45 }
 0xb5e   :  { %4117 = vmatpush1.msra.mxu1 %v7260_v25 }
 0xb5f   :  { %4118 = vmatprep.subr.mxu1 %v7263_v46 }
 0xb60   :  { %4119 = vmatpush1.msra.mxu1 %v7266_v23 }
 0xb61   :  { %4120 = vmatprep.subr.mxu1 %v7442_v2 }
 0xb62   :  { %4121 = vmatpush1.msra.mxu1 %v7445_v14 }
 0xb63   :  { %4122 = vmatprep.subr.mxu1 %v7448_v35 }
 0xb64   :  { %4123 = vmatpush1.msra.mxu1 %v7451_v44 }
 0xb65   :  { %4124 = vmatprep.subr.mxu1 %v7454_v9 }
 0xb66   :  { %4125 = vmatpush1.msra.mxu1 %v7457_v18 }
 0xb67   :  { %4126 = vmatprep.subr.mxu1 %v7460_v12 }
 0xb68   :  { %4127 = vmatpush1.msra.mxu1 %v7463_v20 }
 0xb69   :  { %4128 = vmatprep.subr.mxu1 %v7466_v22 }
 0xb6a   :  { %4129 = vmatpush1.msra.mxu1 %v7469_v4 }
 0xb6b   :  { %4130 = vmatprep.subr.mxu1 %v7472_v24 }
 0xb6c   :  { %4131 = vmatpush1.msra.mxu1 %v7475_v8  ;;  %v7499_v8 = vld [vmem:[#allocation12 + $0x10] sm:$0xff] }
 0xb6d   :  { %4132 = vmatprep.subr.mxu1 %v7478_v54 }
 0xb6e   :  { %4133 = vmatpush1.msra.mxu1 %v7481_v56 }
 0xb6f   :  { %4134 = vmatprep.subr.mxu1 %v7484_v39 }
 0xb70   :  { %4135 = vmatpush1.msra.mxu1 %v7487_v55 }
 0xb71   :  { %4136 = vmatprep.subr.mxu1 %v7490_v40 }
 0xb72   :  { %4137 = vmatpush1.msra.mxu1 %v7493_v34 }
 0xb73   :  { %4138 = vmatprep.subr.mxu1 %v7496_v63 }
 0xb74   :  { %4139 = vmatpush1.msra.mxu1 %v7499_v8 }
 0xb75   :  { %4173 = vmatmul.mubr.f32.vlgmr.msra.gmra.mxu1 %v3803_v32  ;;  %4434 = vmatprep.subr.mxu1 %v7292_v57  ;;  %v7955_v57 = vld [vmem:[#allocation29_spill] sm:$0xff] }
 0xb76   :  { %4435 = vmatpush1.msra.mxu1 %v7295_v3  ;;  %4498 = vmatprep.mubr.f32.mxu1 %v7820_v47  ;;  %v5476_v3 = vld [vmem:[%s7675_s12 + $0x38] sm:$0xff]  }
 0xb77   :  { %4436 = vmatprep.subr.mxu1 %v7298_v21  ;;  %5287 = vmatpush3.bf16.msra.mxu0 %v5476_v3  ;;  %v5477_v21 = vld [vmem:[%s7675_s12 + $0x30] sm:$0xff]  }
 0xb78   :  { %4437 = vmatpush1.msra.mxu1 %v7301_v30  ;;  %5288 = vmatprep.subr.bf16.mxu0 %v7820_v47  ;;  %v5478_v30 = vld [vmem:[%s7675_s12 + $0x28] sm:$0xff]  }
 0xb79   :  { %4438 = vmatprep.subr.mxu1 %v7307_v6  ;;  %v5479_v6 = vld [vmem:[%s7675_s12 + $0x20] sm:$0xff]  }
 0xb7a   :  { %4439 = vmatpush1.msra.mxu1 %v7310_v48  ;;  %v5480_v48 = vld [vmem:[%s7675_s12 + $0x18] sm:$0xff]  }
 0xb7b   :  { %4440 = vmatprep.subr.mxu1 %v7313_v52  ;;  %5289 = vmatpush3.bf16.msra.mxu0 %v5477_v21  ;;  %v5481_v52 = vld [vmem:[%s7675_s12 + $0x10] sm:$0xff]  }
 0xb7c   :  { %4441 = vmatpush1.msra.mxu1 %v7317_v28  ;;  %5290 = vmatprep.subr.bf16.mxu0 %v7820_v47  ;;  %v5482_v28 = vld [vmem:[%s7675_s12 + $0x8] sm:$0xff]  }
 0xb7d   :  { %4442 = vmatprep.subr.mxu1 %v7323_v53  ;;  %v5483_v53 = vld [vmem:[%s7675_s12] sm:$0xff]  }
 0xb7e   :  { %4443 = vmatpush1.msra.mxu1 %v7326_v50  ;;  %v7956_v50 = vld [vmem:[#allocation27_spill] sm:$0xff] }
 0xb7f   :  { %4444 = vmatprep.subr.mxu1 %v7329_v59  ;;  %5291 = vmatpush3.bf16.msra.mxu0 %v5478_v30 }
 0xb80   :  { %4445 = vmatpush1.msra.mxu1 %v7333_v10  ;;  %5292 = vmatprep.subr.bf16.mxu0 %v7820_v47  ;;  %v7957_v10 = vld [vmem:[#allocation28_spill] sm:$0xff] }
 0xb81   :  { %4446 = vmatprep.subr.mxu1 %v7339_v61 }
 0xb82   :  { %4447 = vmatpush1.msra.mxu1 %v7342_v1 }
 0xb83   :  { %4448 = vmatprep.subr.mxu1 %v7345_v17  ;;  %5293 = vmatpush3.bf16.msra.mxu0 %v5479_v6 }
 0xb84   :  { %4449 = vmatpush1.msra.mxu1 %v7348_v42  ;;  %5294 = vmatprep.subr.bf16.mxu0 %v7820_v47 }
 0xb85   :  { %4450 = vmatprep.subr.mxu1 %v7354_v7 }
 0xb86   :  { %4451 = vmatpush1.msra.mxu1 %v7356_v62 }
 0xb87   :  { %4452 = vmatprep.subr.mxu1 %v7359_v27  ;;  %5295 = vmatpush3.bf16.msra.mxu0 %v5480_v48  ;;  %v7958_v27 = vld [vmem:[#allocation79_spill] sm:$0xff] }
 0xb88   :  { %4453 = vmatpush1.msra.mxu1 %v7362_v16  ;;  %5296 = vmatprep.subr.bf16.mxu0 %v7820_v47 }
 0xb89   :  { %4454 = vmatprep.subr.mxu1 %v7369_v38  ;;  %v7959_v38 = vld [vmem:[#allocation78_spill] sm:$0xff] }
 0xb8a   :  { %4455 = vmatpush1.msra.mxu1 %v7372_v43 }
 0xb8b   :  { %4456 = vmatprep.subr.mxu1 %v7375_v58  ;;  %5297 = vmatpush3.bf16.msra.mxu0 %v5481_v52 }
 0xb8c   :  { %4457 = vmatpush1.msra.mxu1 %v7378_v19  ;;  %5298 = vmatprep.subr.bf16.mxu0 %v7820_v47 }
 0xb8d   :  { %4458 = vmatprep.subr.mxu1 %v7385_v37 }
 0xb8e   :  { %4459 = vmatpush1.msra.mxu1 %v7388_v5  ;;  %v7960_v5 = vld [vmem:[#allocation80_spill] sm:$0xff] }
 0xb8f   :  { %4460 = vmatprep.subr.mxu1 %v7391_v15  ;;  %5299 = vmatpush3.bf16.msra.mxu0 %v5482_v28 }
 0xb90   :  { %4461 = vmatpush1.msra.mxu1 %v7394_v60  ;;  %5300 = vmatprep.subr.bf16.mxu0 %v7820_v47 }
 0xb91   :  { %4462 = vmatprep.subr.mxu1 %v7401_v26  ;;  %v7961_v26 = vld [vmem:[#allocation81_spill] sm:$0xff] }
 0xb92   :  { %4463 = vmatpush1.msra.mxu1 %v7404_v29 }
 0xb93   :  { %4464 = vmatprep.subr.mxu1 %v7407_v31  ;;  %5301 = vmatpush3.bf16.msra.mxu0 %v5483_v53 }
 0xb94   :  { %4465 = vmatpush1.msra.mxu1 %v7955_v57  ;;  %4505 = vmatprep.subr.mxu0 %v7956_v50 }
 0xb95   :  { %5306 = vmatprep.subr.bf16.mxu1 %v7820_v47 }
 0xc11   :  { %v4103_v7 = vpop.f32.mrf.mxu0 }
 0xc12   :  { %v4179_v43 = vadd.f32 %v4103_v7, %v7959_v38 }
 0xc13   :  { %v4105_v62 = vpop.f32.mrf.mxu0 }
 0xc14   :  { %v4180_v16 = vadd.f32 %v4105_v62, %v7958_v27  ;;  %v4183_v19 = vmul.f32 0.5, %v4179_v43 }
 0xc15   :  { %v3911_v59 = vpop.f32.mrf.mxu1 }
 0xc16   :  { %v3912_v61 = vadd.f32 %v7957_v10, %v3911_v59  ;;  %v4187_v58 = vmul.f32 0.5, %v4180_v16 }
 0xc17   :  { %v5284_v1 = vpop.f32.mrf.mxu1 }
 0xc18   :  { %3918 = vst [vmem:[#allocation13 + $0xa] sm:$0x3] %v3912_v61  ;;  %5552 = vtanh.f32 %v4187_v58 }
 0xc19   :  { %v3914_v17 = vpop.f32.mrf.mxu1  ;;  %5554 = vtanh.f32 %v4183_v19 }
 0xc1b   :  { %v5285_v42 = vpop.f32.mrf.mxu1 }
 0xc25   :  { %v5553_v31 = vpop.eup %5552 }
 0xc26   :  { %v5555_v32 = vpop.eup %5554  ;;  %v4189_v57 = vadd.f32 1.0, %v5553_v31 }
 0xc27   :  { %v4185_v21 = vadd.f32 1.0, %v5555_v32 }
 0xc28   :  { %v4190_v30 = vmul.f32 0.5, %v4189_v57 }
 0xc29   :  { %v4186_v6 = vmul.f32 0.5, %v4185_v21 }
 0xc2a   :  { %v4196_v52 = vmul.f32 %v4190_v30, %v7427_v0 }
 0xc35   :  { %v4174_v37 = vpop.f32.mrf.mxu1 }
 0xc36   :  { %v4181_v15 = vadd.f32 %v4174_v37, %v7960_v5 }
 0xc37   :  { %v4176_v60 = vpop.f32.mrf.mxu1 }
 0xc38   :  { %5556 = vtanh.f32 %v4181_v15  ;;  %v4182_v29 = vadd.f32 %v4176_v60, %v7961_v26 }
 0xc3a   :  { %v4192_v3 = vmul.f32 0.5, %v4182_v29 }
 0xc3c   :  { %5558 = vtanh.f32 %v4192_v3 }
 0xc45   :  { %v5557_v48 = vpop.eup %5556 }
 0xc46   :  { %v4197_v28 = vmul.f32 %v5557_v48, %v4186_v6 }
 0xc48   :  { %v7576_v53 = vadd.f32 %v4197_v28, %v4196_v52 }
 0xc49   :  { %v5559_v50 = vpop.eup %5558 }
 0xc4a   :  { %5560 = vtanh.f32 %v7576_v53  ;;  %v4194_v59 = vadd.f32 1.0, %v5559_v50 }
 0xc4c   :  { %v4195_v10 = vmul.f32 0.5, %v4194_v59 }
 0xc57   :  { %v5561_v61 = vpop.eup %5560 }
 0xc58   :  { %v4200_v1 = vmul.f32 %v5561_v61, %v4195_v10 }
 0xc5a   :  { %4499 = vmatmul.mubr.f32.vlgmr.msra.gmra.mxu1 %v4200_v1  ;;  %v4201_v17 = vmax.f32 %v4200_v1, 0.0 }
 0xc5b   :  { %5322 = vmatprep.mubr.msk.bf16.mxu1 %vm5712_vm0, %v7820_v47 }
 0xc5c   :  { %v4202_v42 = vpack.c.bf16 %v4201_v17, %v4201_v17 }
 0xc5e   :  { %5303 = vmatmul.mubr.bf16.vlgmr.msra.gmra.mxu0 %v4202_v42 }
 0xc5f   :  { %4506 = vmatpush1.msra.mxu0 %v7237_v51  ;;  %4569 = vmatprep.mubr.f32.mxu0 %v7820_v47  ;;  %v7962_v51 = vld [vmem:[#allocation30_spill] sm:$0xff] }
 0xc60   :  { %4507 = vmatprep.subr.mxu0 %v7239_v41  ;;  %v5484_v41 = vld [vmem:[%s7675_s12 + $0x38] sm:$0xff]  }
 0xc61   :  { %4508 = vmatpush1.msra.mxu0 %v7241_v49  ;;  %5307 = vmatpush3.bf16.msra.mxu1 %v5484_v41  ;;  %v5485_v49 = vld [vmem:[%s7675_s12 + $0x30] sm:$0xff]  }
 0xc62   :  { %4509 = vmatprep.subr.mxu0 %v7244_v13  ;;  %5308 = vmatprep.subr.bf16.mxu1 %v7820_v47  ;;  %v5486_v13 = vld [vmem:[%s7675_s12 + $0x28] sm:$0xff]  }
 0xc63   :  { %4510 = vmatpush1.msra.mxu0 %v7248_v33  ;;  %v5487_v33 = vld [vmem:[%s7675_s12 + $0x20] sm:$0xff]  }
 0xc64   :  { %4511 = vmatprep.subr.mxu0 %v7251_v11  ;;  %v5488_v11 = vld [vmem:[%s7675_s12 + $0x18] sm:$0xff]  }
 0xc65   :  { %4512 = vmatpush1.msra.mxu0 %v7254_v36  ;;  %5309 = vmatpush3.bf16.msra.mxu1 %v5485_v49  ;;  %v5489_v36 = vld [vmem:[%s7675_s12 + $0x10] sm:$0xff]  }
 0xc66   :  { %4513 = vmatprep.subr.mxu0 %v7257_v45  ;;  %5310 = vmatprep.subr.bf16.mxu1 %v7820_v47  ;;  %v5490_v45 = vld [vmem:[%s7675_s12 + $0x8] sm:$0xff]  }
 0xc67   :  { %4514 = vmatpush1.msra.mxu0 %v7260_v25  ;;  %v5491_v25 = vld [vmem:[%s7675_s12] sm:$0xff]  }
 0xc68   :  { %4515 = vmatprep.subr.mxu0 %v7263_v46  ;;  %v4912_v46 = vld [vmem:[%s7676_s13] ss:$0 sm:$0xff] }
 0xc69   :  { %4516 = vmatpush1.msra.mxu0 %v7266_v23  ;;  %5311 = vmatpush3.bf16.msra.mxu1 %v5486_v13 }
 0xc6a   :  { %4517 = vmatprep.subr.mxu0 %v7442_v2  ;;  %5312 = vmatprep.subr.bf16.mxu1 %v7820_v47 }
 0xc6b   :  { %4518 = vmatpush1.msra.mxu0 %v7445_v14 }
 0xc6c   :  { %4519 = vmatprep.subr.mxu0 %v7448_v35 }
 0xc6d   :  { %4520 = vmatpush1.msra.mxu0 %v7451_v44  ;;  %5313 = vmatpush3.bf16.msra.mxu1 %v5487_v33 }
 0xc6e   :  { %4521 = vmatprep.subr.mxu0 %v7454_v9  ;;  %5314 = vmatprep.subr.bf16.mxu1 %v7820_v47 }
 0xc6f   :  { %4522 = vmatpush1.msra.mxu0 %v7457_v18  ;;  %v7963_v18 = vld [vmem:[#allocation83_spill] sm:$0xff] }
 0xc70   :  { %4523 = vmatprep.subr.mxu0 %v7460_v12 }
 0xc71   :  { %4524 = vmatpush1.msra.mxu0 %v7463_v20  ;;  %5315 = vmatpush3.bf16.msra.mxu1 %v5488_v11  ;;  %v7964_v20 = vld [vmem:[#allocation82_spill] sm:$0xff] }
 0xc72   :  { %4525 = vmatprep.subr.mxu0 %v7466_v22  ;;  %5316 = vmatprep.subr.bf16.mxu1 %v7820_v47 }
 0xc73   :  { %4526 = vmatpush1.msra.mxu0 %v7469_v4 }
 0xc74   :  { %4527 = vmatprep.subr.mxu0 %v7472_v24 }
 0xc75   :  { %4528 = vmatpush1.msra.mxu0 %v7962_v51  ;;  %5317 = vmatpush3.bf16.msra.mxu1 %v5489_v36 }
 0xc76   :  { %4529 = vmatprep.subr.mxu0 %v7478_v54  ;;  %5318 = vmatprep.subr.bf16.mxu1 %v7820_v47 }
 0xc77   :  { %4530 = vmatpush1.msra.mxu0 %v7481_v56 }
 0xc78   :  { %4531 = vmatprep.subr.mxu0 %v7484_v39  ;;  %v7966_v39 = vld [vmem:[#allocation85_spill] sm:$0xff] }
 0xc79   :  { %4532 = vmatpush1.msra.mxu0 %v7487_v55  ;;  %5319 = vmatpush3.bf16.msra.mxu1 %v5490_v45 }
 0xc7a   :  { %4533 = vmatprep.subr.mxu0 %v7490_v40  ;;  %5320 = vmatprep.subr.bf16.mxu1 %v7820_v47 }
 0xc7b   :  { %4534 = vmatpush1.msra.mxu0 %v7493_v34 }
 0xc7c   :  { %4535 = vmatprep.subr.mxu0 %v7496_v63 }
 0xc7d   :  { %4536 = vmatpush1.msra.mxu0 %v7499_v8  ;;  %5321 = vmatpush3.bf16.msra.mxu1 %v5491_v25  ;;  %v7965_v8 = vld [vmem:[#allocation84_spill] sm:$0xff] }
 0xc7e   :  { %4570 = vmatmul.mubr.f32.vlgmr.msra.gmra.mxu0 %v4200_v1 }
 0xd1a   :  { %v4500_v44 = vpop.f32.mrf.mxu1 }
 0xd1b   :  { %v4576_v22 = vadd.f32 %v4500_v44, %v7964_v20 }
 0xd1c   :  { %v4502_v9 = vpop.f32.mrf.mxu1 }
 0xd1d   :  { %v4577_v12 = vadd.f32 %v4502_v9, %v7963_v18  ;;  %v4580_v24 = vmul.f32 0.5, %v4576_v22 }
 0xd1e   :  { %v4308_v23 = vpop.f32.mrf.mxu0 }
 0xd1f   :  { %v4309_v0 = vadd.f32 %v4912_v46, %v4308_v23  ;;  %v4584_v4 = vmul.f32 0.5, %v4577_v12 }
 0xd20   :  { %v5304_v2 = vpop.f32.mrf.mxu0 }
 0xd21   :  { %4315 = vst [vmem:[#allocation13 + $0xc] sm:$0x3] %v4309_v0  ;;  %5562 = vtanh.f32 %v4584_v4 }
 0xd22   :  { %v4311_v14 = vpop.f32.mrf.mxu0  ;;  %5564 = vtanh.f32 %v4580_v24 }
 0xd24   :  { %v5305_v35 = vpop.f32.mrf.mxu0 }
 0xd2e   :  { %v5563_v40 = vpop.eup %5562 }
 0xd2f   :  { %v5565_v34 = vpop.eup %5564  ;;  %v4586_v63 = vadd.f32 1.0, %v5563_v40 }
 0xd30   :  { %v4582_v62 = vadd.f32 1.0, %v5565_v34 }
 0xd31   :  { %v4587_v27 = vmul.f32 0.5, %v4586_v63 }
 0xd32   :  { %v4583_v16 = vmul.f32 0.5, %v4582_v62 }
 0xd33   :  { %v4593_v43 = vmul.f32 %v4587_v27, %v7576_v53 }
 0xd3e   :  { %v4571_v47 = vpop.f32.mrf.mxu0 }
 0xd3f   :  { %v4578_v54 = vadd.f32 %v4571_v47, %v7965_v8 }
 0xd40   :  { %v4573_v56 = vpop.f32.mrf.mxu0 }
 0xd41   :  { %5566 = vtanh.f32 %v4578_v54  ;;  %v4579_v55 = vadd.f32 %v4573_v56, %v7966_v39 }
 0xd43   :  { %v4589_v7 = vmul.f32 0.5, %v4579_v55 }
 0xd45   :  { %5568 = vtanh.f32 %v4589_v7 }
 0xd4e   :  { %v5567_v38 = vpop.eup %5566 }
 0xd4f   :  { %v4594_v58 = vmul.f32 %v5567_v38, %v4583_v16 }
 0xd51   :  { %v4595_v19 = vadd.f32 %v4594_v58, %v4593_v43 }
 0xd52   :  { %v5569_v37 = vpop.eup %5568 }
 0xd53   :  { %5570 = vtanh.f32 %v4595_v19  ;;  %4714 = vst [vmem:[%s7679_s16] sm:$0x3] %v4595_v19  ;;  %v4591_v5 = vadd.f32 1.0, %v5569_v37  ;;  %s5672_s16 = scalar_lea.vmem %s4721_s9, 256 }
 0xd54   :  { %p5673_p11 = scmp.ne.s32.totalorder %s4721_s9, %s5672_s16  ;;  %p5678_p13 = scmp.lt.s32.totalorder %s5672_s16, %s5672_s16 }
 0xd55   :  { %v4592_v15 = vmul.f32 0.5, %v4591_v5 }
 0xd56   :  { %p5679_p0 = por %p5678_p13, %p5677_p12 }
 0xd58   :  { %p5680_p1 = pnand %p5679_p0, %p5673_p11 }
 0xd60   :  { %v5571_v60 = vpop.eup %5570 }
 0xd61   :  { %v4597_v26 = vmul.f32 %v5571_v60, %v4592_v15 }
 0xd63   :  { %4713 = vst [vmem:[%s7678_s15] sm:$0x3] %v4597_v26  ;;  %v4598_v29 = vmax.f32 %v4597_v26, 0.0 }
 0xd65   :  { %v4599_v31 = vpack.c.bf16 %v4598_v29, %v4598_v29 }
 0xd67   :  { %5323 = vmatmul.mubr.bf16.vlgmr.msra.gmra.mxu1 %v4599_v31 }
 0xe27   :  { %v4705_v32 = vpop.f32.mrf.mxu1 }
 0xe28   :  { %v4706_v57 = vadd.f32 %v4912_v46, %v4705_v32 }
 0xe29   :  { %v5324_v3 = vpop.f32.mrf.mxu1 }
 0xe2a   :  { %4712 = vst [vmem:[#allocation13 + $0xe] sm:$0x3] %v4706_v57 }
 0xe2b   :  { %v4708_v21 = vpop.f32.mrf.mxu1 }
 0xe2c   :  { %5683 = shalt.err (!%p5680_p1)
}
 0xe2d   :  { %s5715_s24 = smov 2   ;;  %v5325_v30 = vpop.f32.mrf.mxu1 }
 0xe2e   :  { %4726 = dma.vmem_to_hbm [thread:$0]  %s4721_s9, 256, %s7677_s14, [#allocation6], %s5710_s18, %s5710_s18, %s5715_s24  }
 0xe2f   :  { %5698 = dma.done.wait [#allocation6], 256  }
 0xe30   :  { %5699 = vsyncadd [#allocation6], 4294967040 }
 0xe31   :  { %4738 = vsyncpa [#allocation5], 1 }
 0xe32   :  { %4739 = vsyncpa [#allocation8], 1 }
 0xe33   :  { %4740 = vsyncpa [#allocation11], 1 }
 0xe34   :  { %4741 = vsyncpa [#allocation6], 1 }

</bundles_post_ra>
